<compile_context>
chip_gen: v5e
topology: v5e:2x2
jax: 0.10.0
libtpu: 0.0.40
codegen_flags: <defaults>
</compile_context>

<pallas_src>
import functools

import jax
import jax.numpy as jnp
from jax import lax
from jax.experimental import pallas as pl
from jax.experimental.pallas import tpu as pltpu


# ---------------------------------------------------------------------------
# Fused Pallas kernel: a chain of  h <- relu?(h @ W_i + b_i)  layers.
# All matmuls use bf16 operands with f32 accumulation on the MXU.
# ---------------------------------------------------------------------------
def _chain_kernel(x_ref, *refs, relu_flags):
    o_ref = refs[-1]
    h = x_ref[...]
    for i, do_relu in enumerate(relu_flags):
        w_ref = refs[2 * i]
        b_ref = refs[2 * i + 1]
        acc = jnp.dot(h.astype(jnp.bfloat16), w_ref[...],
                      preferred_element_type=jnp.float32)
        acc = acc + b_ref[...].astype(jnp.float32)        # (1, N) broadcast
        if do_relu:
            acc = jnp.maximum(acc, 0.0)
        h = acc
    o_ref[...] = h.astype(o_ref.dtype)


def matmul_chain(x, layers, *, out_dtype, tm=256):
    """x: (M, K0) bf16. layers: [(W_i bf16 (K_i, N_i), b_i f32 (N_i,), relu)].

    Returns act_chain(x) of shape (M, N_last) in `out_dtype`.  The M axis is
    tiled with a "parallel" grid when it divides `tm`; otherwise a single
    full-extent block is used (no host-side padding of the activations).
    """
    M, K0 = x.shape
    relu_flags = tuple(bool(r) for (_, _, r) in layers)

    pad = 0
    if M > tm and M % tm == 0:
        tm_eff, mp = tm, M
    elif M <= 2 * tm:
        tm_eff, mp = M, M                    # single full-extent block
    else:                                    # rare fallback for ragged large M
        tm_eff = tm
        mp = ((M + tm - 1) // tm) * tm
        pad = mp - M
        x = jnp.pad(x, ((0, pad), (0, 0)))

    in_specs = [pl.BlockSpec((tm_eff, K0), lambda i: (i, 0))]
    operands = [x]
    flops = 0
    bytes_accessed = M * K0 * x.dtype.itemsize
    k = K0
    for (w, b, _) in layers:
        kw_, n = w.shape
        assert kw_ == k, (kw_, k)
        in_specs.append(pl.BlockSpec((kw_, n), lambda i: (0, 0)))
        in_specs.append(pl.BlockSpec((1, n), lambda i: (0, 0)))
        operands += [w, b.reshape(1, n)]
        flops += 2 * M * kw_ * n
        bytes_accessed += w.size * w.dtype.itemsize + n * 4
        k = n
    n_last = layers[-1][0].shape[1]
    bytes_accessed += M * n_last * jnp.dtype(out_dtype).itemsize

    out = pl.pallas_call(
        functools.partial(_chain_kernel, relu_flags=relu_flags),
        out_shape=jax.ShapeDtypeStruct((mp, n_last), out_dtype),
        grid_spec=pltpu.PrefetchScalarGridSpec(
            num_scalar_prefetch=0,
            grid=(mp // tm_eff,),
            in_specs=in_specs,
            out_specs=pl.BlockSpec((tm_eff, n_last), lambda i: (i, 0)),
        ),
        compiler_params=pltpu.CompilerParams(
            dimension_semantics=("parallel",),
        ),
        cost_estimate=pl.CostEstimate(
            flops=int(flops), transcendentals=0,
            bytes_accessed=int(bytes_accessed)),
    )(*operands)

    if pad:
        out = out[:M]
    return out


# ---------------------------------------------------------------------------
# Conv2d(+ReLU) via im2col + the fused Pallas matmul kernel
# ---------------------------------------------------------------------------
def _im2col(x_nhwc, ksize, stride, padding):
    """(B,H,W,C) -> (B*Ho*Wo, k*k*C) patches, K-order = (kh, kw, cin)."""
    if padding:
        x_nhwc = jnp.pad(
            x_nhwc, ((0, 0), (padding, padding), (padding, padding), (0, 0)))
    B, Hp, Wp, C = x_nhwc.shape
    Ho = (Hp - ksize) // stride + 1
    Wo = (Wp - ksize) // stride + 1
    cols = []
    for kh in range(ksize):
        for kw in range(ksize):
            sl = lax.slice(
                x_nhwc,
                (0, kh, kw, 0),
                (B, kh + stride * (Ho - 1) + 1, kw + stride * (Wo - 1) + 1, C),
                (1, stride, stride, 1),
            )
            cols.append(sl)
    patches = jnp.concatenate(cols, axis=-1)            # (B, Ho, Wo, k*k*C)
    return patches.reshape(B * Ho * Wo, ksize * ksize * C), (B, Ho, Wo)


def conv2d_relu(x_nhwc, w_packed, b, *, stride, padding):
    """x: (B,H,W,Cin_pad) bf16, w_packed: (9*Cin_pad, Cout_pad) bf16, b: f32."""
    patches, (B, Ho, Wo) = _im2col(x_nhwc, 3, stride, padding)
    out = matmul_chain(patches, [(w_packed, b, True)], out_dtype=jnp.bfloat16)
    return out.reshape(B, Ho, Wo, w_packed.shape[1])


# ---------------------------------------------------------------------------
# VGG11Feat: parameters, packing, forward
# ---------------------------------------------------------------------------
_CONV_CONFIGS = (
    # (Cout, stride, padding)  -- kernel_size is always 3
    (32, 1, 1),
    (32, 2, 0),
    (64, 1, 1),
    (64, 2, 0),
    (128, 1, 1),
    (128, 2, 0),
)


def _conv_out_hw(h, w, k, s, p):
    return (h + 2 * p - k) // s + 1, (w + 2 * p - k) // s + 1


def _round_up(x, m):
    return (x + m - 1) // m * m


def init_vgg11_params(key, input_size):
    """Logical (un-padded, f32) parameters, shared by Pallas path & reference."""
    c, h, w = input_size
    keys = jax.random.split(key, 2 * len(_CONV_CONFIGS) + 4)
    ki = iter(keys)
    conv_params = []
    cin = c
    for cout, stride, pad in _CONV_CONFIGS:
        fan_in = 3 * 3 * cin
        wk = jax.random.normal(next(ki), (3, 3, cin, cout), jnp.float32)
        wk = wk / jnp.sqrt(jnp.float32(fan_in))
        bk = jax.random.normal(next(ki), (cout,), jnp.float32) * 0.01
        conv_params.append((wk, bk))
        h, w = _conv_out_hw(h, w, 3, stride, pad)
        cin = cout
    d = cin * h * w
    w1 = jax.random.normal(next(ki), (d, 1024), jnp.float32) / jnp.sqrt(
        jnp.float32(d))
    b1 = jax.random.normal(next(ki), (1024,), jnp.float32) * 0.01
    w2 = jax.random.normal(next(ki), (1024, 128), jnp.float32) / jnp.sqrt(
        jnp.float32(1024))
    b2 = jax.random.normal(next(ki), (128,), jnp.float32) * 0.01
    return {"conv": conv_params, "dense": [(w1, b1), (w2, b2)]}


def pack_params(params):
    """Pad conv channels to 128 (lane-dense), reshape to matmul form, cast bf16."""
    conv_packed = []
    prev_cout_pad = None
    for li, (w, b) in enumerate(params["conv"]):
        kh, kw, cin, cout = w.shape
        cin_pad = cin if li == 0 else prev_cout_pad
        cout_pad = _round_up(cout, 128)
        wp = jnp.zeros((kh, kw, cin_pad, cout_pad), jnp.float32)
        wp = wp.at[:, :, :cin, :cout].set(w)
        bp = jnp.zeros((cout_pad,), jnp.float32).at[:cout].set(b)
        conv_packed.append(
            (wp.reshape(kh * kw * cin_pad, cout_pad).astype(jnp.bfloat16), bp))
        prev_cout_pad = cout_pad
    # The last conv must be natively lane-dense (Cout == pad) so that the NCHW
    # flatten feeding the dense head needs no channel un-padding.
    assert params["conv"][-1][0].shape[3] == prev_cout_pad
    (w1, b1), (w2, b2) = params["dense"]
    dense_packed = [(w1.astype(jnp.bfloat16), b1),
                    (w2.astype(jnp.bfloat16), b2)]
    return {"conv": conv_packed, "dense": dense_packed}


def vgg11_feat_forward(packed, x_nchw):
    # NCHW -> NHWC (channels-last is the lane-dense TPU layout), bf16 operands.
    x = jnp.transpose(x_nchw, (0, 2, 3, 1)).astype(jnp.bfloat16)

    conv = packed["conv"]
    for (wk, bk), (_, stride, pad) in zip(conv[:-1], _CONV_CONFIGS[:-1]):
        x = conv2d_relu(x, wk, bk, stride=stride, padding=pad)

    w6, b6 = conv[-1]
    _, s6, p6 = _CONV_CONFIGS[-1]
    (w1, b1), (w2, b2) = packed["dense"]
    B, H5, W5, C5 = x.shape

    if p6 == 0 and H5 == 3 and W5 == 3:
        # conv6's single 3x3 valid patch covers the whole feature map, so its
        # im2col row is just the (h, w, c)-ordered flatten -> fuse conv6 and
        # both Linear layers into ONE pallas_call (weights resident in VMEM).
        x = x.reshape(B, H5 * W5 * C5)
        out = matmul_chain(
            x, [(w6, b6, True), (w1, b1, True), (w2, b2, False)],
            out_dtype=jnp.float32)
    else:
        # General fallback: separate conv6, then fused Linear+ReLU+Linear.
        x = conv2d_relu(x, w6, b6, stride=s6, padding=p6)
        # Flatten in PyTorch NCHW order: (B, C, H, W) -> (B, C*H*W).
        x = jnp.transpose(x, (0, 3, 1, 2)).reshape(B, -1).astype(jnp.bfloat16)
        out = matmul_chain(
            x, [(w1, b1, True), (w2, b2, False)], out_dtype=jnp.float32)
    return out


def vgg11_feat_reference(params, x_nchw):
    """Pure-JAX reference with matching bf16-operand / f32-accumulate precision."""
    x = jnp.transpose(x_nchw, (0, 2, 3, 1))
    for (wk, bk), (_, stride, pad) in zip(params["conv"], _CONV_CONFIGS):
        x = lax.conv_general_dilated(
            x.astype(jnp.bfloat16), wk.astype(jnp.bfloat16),
            window_strides=(stride, stride),
            padding=[(pad, pad), (pad, pad)],
            dimension_numbers=("NHWC", "HWIO", "NHWC"),
            preferred_element_type=jnp.float32)
        x = jnp.maximum(x + bk, 0.0)
    x = jnp.transpose(x, (0, 3, 1, 2)).reshape(x.shape[0], -1)
    (w1, b1), (w2, b2) = params["dense"]
    x = jnp.maximum(
        jnp.dot(x.astype(jnp.bfloat16), w1.astype(jnp.bfloat16),
                preferred_element_type=jnp.float32) + b1, 0.0)
    x = jnp.dot(x.astype(jnp.bfloat16), w2.astype(jnp.bfloat16),
                preferred_element_type=jnp.float32) + b2
    return x


if __name__ == "__main__":
    key = jax.random.PRNGKey(0)
    kx, kp = jax.random.split(key)

    input_size = (4, 16, 16)                  # (C, H, W)
    x = jax.random.normal(kx, (2, *input_size), dtype=jnp.float32)
    params = init_vgg11_params(kp, input_size)
    packed = pack_params(params)

    fwd = jax.jit(vgg11_feat_forward)
    y = fwd(packed, x)
    jax.block_until_ready(y)

    ref = vgg11_feat_reference(params, x)
    assert y.shape == (2, 128), y.shape
    # Both paths use bf16 operands with f32 accumulation; only summation order
    # differs, so a modest tolerance suffices.
    assert jnp.allclose(y, ref, atol=2e-2, rtol=2e-2), float(
        jnp.max(jnp.abs(y - ref)))

    print("KERNEL_OK")
</pallas_src>

<mosaic_0001>
module attributes {stable_mosaic.version = 11 : i64} {
  func.func @_chain_kernel(%arg0: i32, %arg1: memref<256x36xbf16, #tpu.memory_space<vmem>>, %arg2: memref<36x128xbf16, #tpu.memory_space<vmem>>, %arg3: memref<1x128xf32, #tpu.memory_space<vmem>>, %arg4: memref<256x128xbf16, #tpu.memory_space<vmem>>) attributes {dimension_semantics = [#tpu.dimension_semantics<parallel>], iteration_bounds = array<i64: 2>, scalar_prefetch = 0 : i64, scratch_operands = 0 : i64, tpu.core_type = #tpu.core_type<tc>, window_params = [{transform_indices = @transform_0, window_bounds = array<i64: 256, 36>}, {pipeline_mode = #tpu.pipeline_mode<synchronous>, transform_indices = @transform_1, window_bounds = array<i64: 36, 128>}, {pipeline_mode = #tpu.pipeline_mode<synchronous>, transform_indices = @transform_2, window_bounds = array<i64: 1, 128>}, {transform_indices = @transform_3, window_bounds = array<i64: 256, 128>}]} {
    %c0 = arith.constant 0 : index
    %c0_0 = arith.constant 0 : index
    %0 = vector.load %arg1[%c0, %c0_0] : memref<256x36xbf16, #tpu.memory_space<vmem>>, vector<256x36xbf16>
    %c0_1 = arith.constant 0 : index
    %c0_2 = arith.constant 0 : index
    %1 = vector.load %arg2[%c0_1, %c0_2] : memref<36x128xbf16, #tpu.memory_space<vmem>>, vector<36x128xbf16>
    %cst = arith.constant dense<0.000000e+00> : vector<256x128xf32>
    %2 = tpu.matmul %0, %1, %cst {dimension_numbers = #tpu.dot_dimension_numbers<[1], [0], [0], [1], [0, 0, 1, 1], [], []>} : vector<256x36xbf16>, vector<36x128xbf16>, vector<256x128xf32> -> vector<256x128xf32>
    %c0_3 = arith.constant 0 : index
    %c0_4 = arith.constant 0 : index
    %3 = vector.load %arg3[%c0_3, %c0_4] : memref<1x128xf32, #tpu.memory_space<vmem>>, vector<1x128xf32>
    %4 = vector.broadcast %3 : vector<1x128xf32> to vector<256x128xf32>
    %5 = arith.addf %2, %4 : vector<256x128xf32>
    %cst_5 = arith.constant 0.000000e+00 : f32
    %6 = vector.broadcast %cst_5 : f32 to vector<256x128xf32>
    %7 = arith.maximumf %5, %6 : vector<256x128xf32>
    %8 = arith.truncf %7 : vector<256x128xf32> to vector<256x128xbf16>
    %c0_6 = arith.constant 0 : index
    %c0_7 = arith.constant 0 : index
    %9 = vector.load %arg4[%c0_6, %c0_7] : memref<256x128xbf16, #tpu.memory_space<vmem>>, vector<256x128xbf16>
    tpu.vector_store %arg4[%c0_6, %c0_7], %8 {strides = array<i32>} : memref<256x128xbf16, #tpu.memory_space<vmem>>, vector<256x128xbf16>,
    return
  }
  func.func @transform_0(%arg0: i32) -> (i32, i32) {
    %c0_i32 = arith.constant 0 : i32
    %c0_i32_0 = arith.constant 0 : i32
    return %arg0, %c0_i32 : i32, i32
  }
  func.func @transform_1(%arg0: i32) -> (i32, i32) {
    %c0_i32 = arith.constant 0 : i32
    %c0_i32_0 = arith.constant 0 : i32
    %c0_i32_1 = arith.constant 0 : i32
    return %c0_i32, %c0_i32_0 : i32, i32
  }
  func.func @transform_2(%arg0: i32) -> (i32, i32) {
    %c0_i32 = arith.constant 0 : i32
    %c0_i32_0 = arith.constant 0 : i32
    %c0_i32_1 = arith.constant 0 : i32
    return %c0_i32, %c0_i32_0 : i32, i32
  }
  func.func @transform_3(%arg0: i32) -> (i32, i32) {
    %c0_i32 = arith.constant 0 : i32
    %c0_i32_0 = arith.constant 0 : i32
    return %arg0, %c0_i32 : i32, i32
  }
}

module attributes {stable_mosaic.version = 11 : i64} {
  func.func @_chain_kernel(%arg0: i32, %arg1: memref<98x1152xbf16, #tpu.memory_space<vmem>>, %arg2: memref<1152x128xbf16, #tpu.memory_space<vmem>>, %arg3: memref<1x128xf32, #tpu.memory_space<vmem>>, %arg4: memref<98x128xbf16, #tpu.memory_space<vmem>>) attributes {dimension_semantics = [#tpu.dimension_semantics<parallel>], iteration_bounds = array<i64: 1>, scalar_prefetch = 0 : i64, scratch_operands = 0 : i64, tpu.core_type = #tpu.core_type<tc>, window_params = [{transform_indices = @transform_0, window_bounds = array<i64: 98, 1152>}, {pipeline_mode = #tpu.pipeline_mode<synchronous>, transform_indices = @transform_1, window_bounds = array<i64: 1152, 128>}, {pipeline_mode = #tpu.pipeline_mode<synchronous>, transform_indices = @transform_2, window_bounds = array<i64: 1, 128>}, {transform_indices = @transform_3, window_bounds = array<i64: 98, 128>}]} {
    %c0 = arith.constant 0 : index
    %c0_0 = arith.constant 0 : index
    %0 = vector.load %arg1[%c0, %c0_0] : memref<98x1152xbf16, #tpu.memory_space<vmem>>, vector<98x1152xbf16>
    %c0_1 = arith.constant 0 : index
    %c0_2 = arith.constant 0 : index
    %1 = vector.load %arg2[%c0_1, %c0_2] : memref<1152x128xbf16, #tpu.memory_space<vmem>>, vector<1152x128xbf16>
    %cst = arith.constant dense<0.000000e+00> : vector<98x128xf32>
    %2 = tpu.matmul %0, %1, %cst {dimension_numbers = #tpu.dot_dimension_numbers<[1], [0], [0], [1], [0, 0, 1, 1], [], []>} : vector<98x1152xbf16>, vector<1152x128xbf16>, vector<98x128xf32> -> vector<98x128xf32>
    %c0_3 = arith.constant 0 : index
    %c0_4 = arith.constant 0 : index
    %3 = vector.load %arg3[%c0_3, %c0_4] : memref<1x128xf32, #tpu.memory_space<vmem>>, vector<1x128xf32>
    %4 = vector.broadcast %3 : vector<1x128xf32> to vector<98x128xf32>
    %5 = arith.addf %2, %4 : vector<98x128xf32>
    %cst_5 = arith.constant 0.000000e+00 : f32
    %6 = vector.broadcast %cst_5 : f32 to vector<98x128xf32>
    %7 = arith.maximumf %5, %6 : vector<98x128xf32>
    %8 = arith.truncf %7 : vector<98x128xf32> to vector<98x128xbf16>
    %c0_6 = arith.constant 0 : index
    %c0_7 = arith.constant 0 : index
    %9 = vector.load %arg4[%c0_6, %c0_7] : memref<98x128xbf16, #tpu.memory_space<vmem>>, vector<98x128xbf16>
    tpu.vector_store %arg4[%c0_6, %c0_7], %8 {strides = array<i32>} : memref<98x128xbf16, #tpu.memory_space<vmem>>, vector<98x128xbf16>,
    return
  }
  func.func @transform_0(%arg0: i32) -> (i32, i32) {
    %c0_i32 = arith.constant 0 : i32
    %c0_i32_0 = arith.constant 0 : i32
    return %arg0, %c0_i32 : i32, i32
  }
  func.func @transform_1(%arg0: i32) -> (i32, i32) {
    %c0_i32 = arith.constant 0 : i32
    %c0_i32_0 = arith.constant 0 : i32
    %c0_i32_1 = arith.constant 0 : i32
    return %c0_i32, %c0_i32_0 : i32, i32
  }
  func.func @transform_2(%arg0: i32) -> (i32, i32) {
    %c0_i32 = arith.constant 0 : i32
    %c0_i32_0 = arith.constant 0 : i32
    %c0_i32_1 = arith.constant 0 : i32
    return %c0_i32, %c0_i32_0 : i32, i32
  }
  func.func @transform_3(%arg0: i32) -> (i32, i32) {
    %c0_i32 = arith.constant 0 : i32
    %c0_i32_0 = arith.constant 0 : i32
    return %arg0, %c0_i32 : i32, i32
  }
}

module attributes {stable_mosaic.version = 11 : i64} {
  func.func @_chain_kernel(%arg0: i32, %arg1: memref<18x1152xbf16, #tpu.memory_space<vmem>>, %arg2: memref<1152x128xbf16, #tpu.memory_space<vmem>>, %arg3: memref<1x128xf32, #tpu.memory_space<vmem>>, %arg4: memref<18x128xbf16, #tpu.memory_space<vmem>>) attributes {dimension_semantics = [#tpu.dimension_semantics<parallel>], iteration_bounds = array<i64: 1>, scalar_prefetch = 0 : i64, scratch_operands = 0 : i64, tpu.core_type = #tpu.core_type<tc>, window_params = [{transform_indices = @transform_0, window_bounds = array<i64: 18, 1152>}, {pipeline_mode = #tpu.pipeline_mode<synchronous>, transform_indices = @transform_1, window_bounds = array<i64: 1152, 128>}, {pipeline_mode = #tpu.pipeline_mode<synchronous>, transform_indices = @transform_2, window_bounds = array<i64: 1, 128>}, {transform_indices = @transform_3, window_bounds = array<i64: 18, 128>}]} {
    %c0 = arith.constant 0 : index
    %c0_0 = arith.constant 0 : index
    %0 = vector.load %arg1[%c0, %c0_0] : memref<18x1152xbf16, #tpu.memory_space<vmem>>, vector<18x1152xbf16>
    %c0_1 = arith.constant 0 : index
    %c0_2 = arith.constant 0 : index
    %1 = vector.load %arg2[%c0_1, %c0_2] : memref<1152x128xbf16, #tpu.memory_space<vmem>>, vector<1152x128xbf16>
    %cst = arith.constant dense<0.000000e+00> : vector<18x128xf32>
    %2 = tpu.matmul %0, %1, %cst {dimension_numbers = #tpu.dot_dimension_numbers<[1], [0], [0], [1], [0, 0, 1, 1], [], []>} : vector<18x1152xbf16>, vector<1152x128xbf16>, vector<18x128xf32> -> vector<18x128xf32>
    %c0_3 = arith.constant 0 : index
    %c0_4 = arith.constant 0 : index
    %3 = vector.load %arg3[%c0_3, %c0_4] : memref<1x128xf32, #tpu.memory_space<vmem>>, vector<1x128xf32>
    %4 = vector.broadcast %3 : vector<1x128xf32> to vector<18x128xf32>
    %5 = arith.addf %2, %4 : vector<18x128xf32>
    %cst_5 = arith.constant 0.000000e+00 : f32
    %6 = vector.broadcast %cst_5 : f32 to vector<18x128xf32>
    %7 = arith.maximumf %5, %6 : vector<18x128xf32>
    %8 = arith.truncf %7 : vector<18x128xf32> to vector<18x128xbf16>
    %c0_6 = arith.constant 0 : index
    %c0_7 = arith.constant 0 : index
    %9 = vector.load %arg4[%c0_6, %c0_7] : memref<18x128xbf16, #tpu.memory_space<vmem>>, vector<18x128xbf16>
    tpu.vector_store %arg4[%c0_6, %c0_7], %8 {strides = array<i32>} : memref<18x128xbf16, #tpu.memory_space<vmem>>, vector<18x128xbf16>,
    return
  }
  func.func @transform_0(%arg0: i32) -> (i32, i32) {
    %c0_i32 = arith.constant 0 : i32
    %c0_i32_0 = arith.constant 0 : i32
    return %arg0, %c0_i32 : i32, i32
  }
  func.func @transform_1(%arg0: i32) -> (i32, i32) {
    %c0_i32 = arith.constant 0 : i32
    %c0_i32_0 = arith.constant 0 : i32
    %c0_i32_1 = arith.constant 0 : i32
    return %c0_i32, %c0_i32_0 : i32, i32
  }
  func.func @transform_2(%arg0: i32) -> (i32, i32) {
    %c0_i32 = arith.constant 0 : i32
    %c0_i32_0 = arith.constant 0 : i32
    %c0_i32_1 = arith.constant 0 : i32
    return %c0_i32, %c0_i32_0 : i32, i32
  }
  func.func @transform_3(%arg0: i32) -> (i32, i32) {
    %c0_i32 = arith.constant 0 : i32
    %c0_i32_0 = arith.constant 0 : i32
    return %arg0, %c0_i32 : i32, i32
  }
}

module attributes {stable_mosaic.version = 11 : i64} {
  func.func @_chain_kernel(%arg0: i32, %arg1: memref<2x1152xbf16, #tpu.memory_space<vmem>>, %arg2: memref<1152x128xbf16, #tpu.memory_space<vmem>>, %arg3: memref<1x128xf32, #tpu.memory_space<vmem>>, %arg4: memref<128x1024xbf16, #tpu.memory_space<vmem>>, %arg5: memref<1x1024xf32, #tpu.memory_space<vmem>>, %arg6: memref<1024x128xbf16, #tpu.memory_space<vmem>>, %arg7: memref<1x128xf32, #tpu.memory_space<vmem>>, %arg8: memref<2x128xf32, #tpu.memory_space<vmem>>) attributes {dimension_semantics = [#tpu.dimension_semantics<parallel>], iteration_bounds = array<i64: 1>, scalar_prefetch = 0 : i64, scratch_operands = 0 : i64, tpu.core_type = #tpu.core_type<tc>, window_params = [{transform_indices = @transform_0, window_bounds = array<i64: 2, 1152>}, {pipeline_mode = #tpu.pipeline_mode<synchronous>, transform_indices = @transform_1, window_bounds = array<i64: 1152, 128>}, {pipeline_mode = #tpu.pipeline_mode<synchronous>, transform_indices = @transform_2, window_bounds = array<i64: 1, 128>}, {pipeline_mode = #tpu.pipeline_mode<synchronous>, transform_indices = @transform_3, window_bounds = array<i64: 128, 1024>}, {pipeline_mode = #tpu.pipeline_mode<synchronous>, transform_indices = @transform_4, window_bounds = array<i64: 1, 1024>}, {pipeline_mode = #tpu.pipeline_mode<synchronous>, transform_indices = @transform_5, window_bounds = array<i64: 1024, 128>}, {pipeline_mode = #tpu.pipeline_mode<synchronous>, transform_indices = @transform_6, window_bounds = array<i64: 1, 128>}, {transform_indices = @transform_7, window_bounds = array<i64: 2, 128>}]} {
    %c0 = arith.constant 0 : index
    %c0_0 = arith.constant 0 : index
    %0 = vector.load %arg1[%c0, %c0_0] : memref<2x1152xbf16, #tpu.memory_space<vmem>>, vector<2x1152xbf16>
    %c0_1 = arith.constant 0 : index
    %c0_2 = arith.constant 0 : index
    %1 = vector.load %arg2[%c0_1, %c0_2] : memref<1152x128xbf16, #tpu.memory_space<vmem>>, vector<1152x128xbf16>
    %cst = arith.constant dense<0.000000e+00> : vector<2x128xf32>
    %2 = tpu.matmul %0, %1, %cst {dimension_numbers = #tpu.dot_dimension_numbers<[1], [0], [0], [1], [0, 0, 1, 1], [], []>} : vector<2x1152xbf16>, vector<1152x128xbf16>, vector<2x128xf32> -> vector<2x128xf32>
    %c0_3 = arith.constant 0 : index
    %c0_4 = arith.constant 0 : index
    %3 = vector.load %arg3[%c0_3, %c0_4] : memref<1x128xf32, #tpu.memory_space<vmem>>, vector<1x128xf32>
    %4 = vector.broadcast %3 : vector<1x128xf32> to vector<2x128xf32>
    %5 = arith.addf %2, %4 : vector<2x128xf32>
    %cst_5 = arith.constant 0.000000e+00 : f32
    %6 = vector.broadcast %cst_5 : f32 to vector<2x128xf32>
    %7 = arith.maximumf %5, %6 : vector<2x128xf32>
    %8 = arith.truncf %7 : vector<2x128xf32> to vector<2x128xbf16>
    %c0_6 = arith.constant 0 : index
    %c0_7 = arith.constant 0 : index
    %9 = vector.load %arg4[%c0_6, %c0_7] : memref<128x1024xbf16, #tpu.memory_space<vmem>>, vector<128x1024xbf16>
    %cst_8 = arith.constant dense<0.000000e+00> : vector<2x1024xf32>
    %10 = tpu.matmul %8, %9, %cst_8 {dimension_numbers = #tpu.dot_dimension_numbers<[1], [0], [0], [1], [0, 0, 1, 1], [], []>} : vector<2x128xbf16>, vector<128x1024xbf16>, vector<2x1024xf32> -> vector<2x1024xf32>
    %c0_9 = arith.constant 0 : index
    %c0_10 = arith.constant 0 : index
    %11 = vector.load %arg5[%c0_9, %c0_10] : memref<1x1024xf32, #tpu.memory_space<vmem>>, vector<1x1024xf32>
    %12 = vector.broadcast %11 : vector<1x1024xf32> to vector<2x1024xf32>
    %13 = arith.addf %10, %12 : vector<2x1024xf32>
    %cst_11 = arith.constant 0.000000e+00 : f32
    %14 = vector.broadcast %cst_11 : f32 to vector<2x1024xf32>
    %15 = arith.maximumf %13, %14 : vector<2x1024xf32>
    %16 = arith.truncf %15 : vector<2x1024xf32> to vector<2x1024xbf16>
    %c0_12 = arith.constant 0 : index
    %c0_13 = arith.constant 0 : index
    %17 = vector.load %arg6[%c0_12, %c0_13] : memref<1024x128xbf16, #tpu.memory_space<vmem>>, vector<1024x128xbf16>
    %cst_14 = arith.constant dense<0.000000e+00> : vector<2x128xf32>
    %18 = tpu.matmul %16, %17, %cst_14 {dimension_numbers = #tpu.dot_dimension_numbers<[1], [0], [0], [1], [0, 0, 1, 1], [], []>} : vector<2x1024xbf16>, vector<1024x128xbf16>, vector<2x128xf32> -> vector<2x128xf32>
    %c0_15 = arith.constant 0 : index
    %c0_16 = arith.constant 0 : index
    %19 = vector.load %arg7[%c0_15, %c0_16] : memref<1x128xf32, #tpu.memory_space<vmem>>, vector<1x128xf32>
    %20 = vector.broadcast %19 : vector<1x128xf32> to vector<2x128xf32>
    %21 = arith.addf %18, %20 : vector<2x128xf32>
    %c0_17 = arith.constant 0 : index
    %c0_18 = arith.constant 0 : index
    %22 = vector.load %arg8[%c0_17, %c0_18] : memref<2x128xf32, #tpu.memory_space<vmem>>, vector<2x128xf32>
    tpu.vector_store %arg8[%c0_17, %c0_18], %21 {strides = array<i32>} : memref<2x128xf32, #tpu.memory_space<vmem>>, vector<2x128xf32>,
    return
  }
  func.func @transform_0(%arg0: i32) -> (i32, i32) {
    %c0_i32 = arith.constant 0 : i32
    %c0_i32_0 = arith.constant 0 : i32
    return %arg0, %c0_i32 : i32, i32
  }
  func.func @transform_1(%arg0: i32) -> (i32, i32) {
    %c0_i32 = arith.constant 0 : i32
    %c0_i32_0 = arith.constant 0 : i32
    %c0_i32_1 = arith.constant 0 : i32
    return %c0_i32, %c0_i32_0 : i32, i32
  }
  func.func @transform_2(%arg0: i32) -> (i32, i32) {
    %c0_i32 = arith.constant 0 : i32
    %c0_i32_0 = arith.constant 0 : i32
    %c0_i32_1 = arith.constant 0 : i32
    return %c0_i32, %c0_i32_0 : i32, i32
  }
  func.func @transform_3(%arg0: i32) -> (i32, i32) {
    %c0_i32 = arith.constant 0 : i32
    %c0_i32_0 = arith.constant 0 : i32
    %c0_i32_1 = arith.constant 0 : i32
    return %c0_i32, %c0_i32_0 : i32, i32
  }
  func.func @transform_4(%arg0: i32) -> (i32, i32) {
    %c0_i32 = arith.constant 0 : i32
    %c0_i32_0 = arith.constant 0 : i32
    %c0_i32_1 = arith.constant 0 : i32
    return %c0_i32, %c0_i32_0 : i32, i32
  }
  func.func @transform_5(%arg0: i32) -> (i32, i32) {
    %c0_i32 = arith.constant 0 : i32
    %c0_i32_0 = arith.constant 0 : i32
    %c0_i32_1 = arith.constant 0 : i32
    return %c0_i32, %c0_i32_0 : i32, i32
  }
  func.func @transform_6(%arg0: i32) -> (i32, i32) {
    %c0_i32 = arith.constant 0 : i32
    %c0_i32_0 = arith.constant 0 : i32
    %c0_i32_1 = arith.constant 0 : i32
    return %c0_i32, %c0_i32_0 : i32, i32
  }
  func.func @transform_7(%arg0: i32) -> (i32, i32) {
    %c0_i32 = arith.constant 0 : i32
    %c0_i32_0 = arith.constant 0 : i32
    return %arg0, %c0_i32 : i32, i32
  }
}

</mosaic_0001>

<bundles_post_ra>
// kernel: vgg11_feat_forward.6
= control target key start
LH: loop header
LB: loop body
LE: loop exit
PB: predicated region body
PF: predicated region fallthrough
CT: control target
= control target key end

     0   :  { %s863_s12 = smov 0   ;;  %s985_s0 = inlined_call_operand.vmem [shape: bf16[512,36], index: 0, kind: input, shape index: {}]   ;;  %s986_s1 = inlined_call_operand.vmem [shape: bf16[36,128], index: 1, kind: input, shape index: {}]   ;;  %s987_s2 = inlined_call_operand.vmem [shape: f32[1,128], index: 2, kind: input, shape index: {}]   ;;  %s988_s3 = inlined_call_operand.vmem [shape: bf16[512,128], index: 3, kind: output, shape index: {}]  }
   0x1 LB: > { %s605_s13 = sadd.s32 4294967295, %s841_s12   ;;  %p609_p0 = scmp.ge.s32.totalorder %s841_s12, 1  ;;  %s841_s12 = sphi %s863_s12, %s13_s12  }
   0x2   : > { %p138_p1 = scmp.lt.s32.totalorder %s841_s12, 3 }
   0x4   : > { %p139_p2 = pnand %p609_p0, %p138_p1 }
   0x5   : > { %s610_s16 = sshll.u32 (!%p139_p2), %s605_s13, 5 }
   0x6   : > { %142 = sbr.rel (%p139_p2) target bundleno = 225 (0xe1), region = 32  ;;  %p163_p3 = scmp.lt.s32.totalorder (!%p139_p2), %s610_s16, 63 }
   0xb   : > { %v211_v0 = vld [vmem:[%s986_s1 + $0x10] sm:$0x3]  ;;  %vm360_vm0 = vcmask 1041408   ;;  %s990_s16 = smov (!%p163_p3, %s610_s16), 63  ;;  %v721_v4 = vld [vmem:[%s986_s1 + $0x8] sm:$0xff]  ;;  %v720_v5 = vld [vmem:[%s986_s1] sm:$0xff] }
   0xc   : > { %v305_v1 = vunpack.c.l.b16 %v211_v0  ;;  %s611_s19 = sshll.u32 %s990_s16, 2  ;;  %vm311_vm1 = vcmask 293888   ;;  %v925_v24 = vld [vmem:[%s987_s2] ss:$0 sm:$0xff] }
   0xd   : > { %s888_s24 = scalar_lea.vmem %s985_s0, %s611_s19  ;;  %s936_s29 = scalar_lea.vmem %s988_s3, %s611_s19 }
   0xe   : > { %v308_v2 = vpack.c.b16 %v305_v1, %v305_v1  ;;  %v704_v6 = vld [vmem:[%s888_s24] sm:$0xff]  ;;  %v705_v10 = vld [vmem:[%s888_s24 + $0x8] sm:$0xff]  ;;  %v706_v14 = vld [vmem:[%s888_s24 + $0x10] sm:$0xff] }
   0xf   : > { %v708_v7 = vld [vmem:[%s888_s24 + $0x20] sm:$0xff]  ;;  %v709_v11 = vld [vmem:[%s888_s24 + $0x28] sm:$0xff]  ;;  %v710_v15 = vld [vmem:[%s888_s24 + $0x30] sm:$0xff] }
  0x10   : > { %v362_v3 = vsel %vm360_vm0, %v308_v2, 0  ;;  %v712_v8 = vld [vmem:[%s888_s24 + $0x40] sm:$0xff]  ;;  %v713_v12 = vld [vmem:[%s888_s24 + $0x48] sm:$0xff]  ;;  %v714_v16 = vld [vmem:[%s888_s24 + $0x50] sm:$0xff] }
  0x11   : > { %369 = vmatpush.bf16.msra.mxu0 %v362_v3  ;;  %817 = vmatpush.bf16.msra.mxu1 %v362_v3  ;;  %v716_v9 = vld [vmem:[%s888_s24 + $0x60] sm:$0xff]  ;;  %v717_v13 = vld [vmem:[%s888_s24 + $0x68] sm:$0xff]  ;;  %v718_v17 = vld [vmem:[%s888_s24 + $0x70] sm:$0xff] }
  0x12   : > { %818 = vmatpush.bf16.msra.mxu2 %v362_v3  ;;  %819 = vmatpush.bf16.msra.mxu3 %v362_v3  ;;  %v707_v18 = vld [vmem:[%s888_s24 + $0x18] sm:$0xff] }
  0x13   : > { %v711_v19 = vld [vmem:[%s888_s24 + $0x38] sm:$0xff] }
  0x14   : > { %v715_v20 = vld [vmem:[%s888_s24 + $0x58] sm:$0xff] }
  0x15   : > { %370 = vmatpush.bf16.msra.mxu0 %v721_v4  ;;  %820 = vmatpush.bf16.msra.mxu1 %v721_v4  ;;  %v719_v21 = vld [vmem:[%s888_s24 + $0x78] sm:$0xff] }
  0x16   : > { %821 = vmatpush.bf16.msra.mxu2 %v721_v4  ;;  %822 = vmatpush.bf16.msra.mxu3 %v721_v4 }
  0x19   : > { %371 = vmatpush.bf16.msra.mxu0 %v720_v5  ;;  %823 = vmatpush.bf16.msra.mxu1 %v720_v5 }
  0x1a   : > { %824 = vmatpush.bf16.msra.mxu2 %v720_v5  ;;  %825 = vmatpush.bf16.msra.mxu3 %v720_v5 }
  0x1c   : > { %686 = vmatmul.msk.bf16.vlgmr.msra.gmra.mxu0 %vm311_vm1, %v704_v6  ;;  %690 = vmatmul.msk.bf16.vlgmr.msra.gmra.mxu1 %vm311_vm1, %v708_v7 }
  0x1d   : > { %694 = vmatmul.msk.bf16.vlgmr.msra.gmra.mxu2 %vm311_vm1, %v712_v8  ;;  %698 = vmatmul.msk.bf16.vlgmr.msra.gmra.mxu3 %vm311_vm1, %v716_v9 }
  0x2c   : > { %687 = vmatmul.msk.bf16.gmra.mxu0 %vm311_vm1, %v705_v10  ;;  %691 = vmatmul.msk.bf16.gmra.mxu1 %vm311_vm1, %v709_v11 }
  0x2d   : > { %695 = vmatmul.msk.bf16.gmra.mxu2 %vm311_vm1, %v713_v12  ;;  %699 = vmatmul.msk.bf16.gmra.mxu3 %vm311_vm1, %v717_v13 }
  0x3c   : > { %688 = vmatmul.msk.bf16.gmra.mxu0 %vm311_vm1, %v706_v14  ;;  %692 = vmatmul.msk.bf16.gmra.mxu1 %vm311_vm1, %v710_v15 }
  0x3d   : > { %696 = vmatmul.msk.bf16.gmra.mxu2 %vm311_vm1, %v714_v16  ;;  %700 = vmatmul.msk.bf16.gmra.mxu3 %vm311_vm1, %v718_v17 }
  0x4c   : > { %689 = vmatmul.msk.bf16.gmra.mxu0 %vm311_vm1, %v707_v18  ;;  %693 = vmatmul.msk.bf16.gmra.mxu1 %vm311_vm1, %v711_v19 }
  0x4d   : > { %697 = vmatmul.msk.bf16.gmra.mxu2 %vm311_vm1, %v715_v20  ;;  %701 = vmatmul.msk.bf16.gmra.mxu3 %vm311_vm1, %v719_v21 }
  0x99   : > { %v373_v22 = vpop.f32.mrf.mxu0  ;;  %v393_v23 = vpop.f32.mrf.mxu1 }
  0x9a   : > { %v374_v25 = vadd.f32 %v925_v24, %v373_v22  ;;  %v394_v26 = vadd.f32 %v925_v24, %v393_v23 }
  0x9c   : > { %v453_v33 = vmax.f32 %v374_v25, 0.0  ;;  %v461_v34 = vmax.f32 %v394_v26, 0.0 }
  0xa0   : > { %v413_v27 = vpop.f32.mrf.mxu2  ;;  %v433_v28 = vpop.f32.mrf.mxu3 }
  0xa1   : > { %v375_v29 = vpop.f32.mrf.mxu0  ;;  %v395_v30 = vpop.f32.mrf.mxu1  ;;  %v414_v39 = vadd.f32 %v925_v24, %v413_v27  ;;  %v434_v40 = vadd.f32 %v925_v24, %v433_v28 }
  0xa2   : > { %v376_v31 = vadd.f32 %v925_v24, %v375_v29  ;;  %v396_v32 = vadd.f32 %v925_v24, %v395_v30 }
  0xa3   : > { %v469_v47 = vmax.f32 %v414_v39, 0.0  ;;  %v477_v48 = vmax.f32 %v434_v40, 0.0 }
  0xa4   : > { %v454_v35 = vmax.f32 %v376_v31, 0.0  ;;  %v462_v36 = vmax.f32 %v396_v32, 0.0 }
  0xa6   : > { %v725_v37 = vpack.c.bf16 %v454_v35, %v453_v33  ;;  %v745_v38 = vpack.c.bf16 %v462_v36, %v461_v34 }
  0xa8   : > { %726 = vst [vmem:[%s936_s29] sm:$0xff] %v725_v37   ;;  %v415_v41 = vpop.f32.mrf.mxu2  ;;  %v435_v42 = vpop.f32.mrf.mxu3 }
  0xa9   : > { %805 = vst [vmem:[%s936_s29 + $0x20] sm:$0xff] %v745_v38   ;;  %v416_v43 = vadd.f32 %v925_v24, %v415_v41  ;;  %v436_v44 = vadd.f32 %v925_v24, %v435_v42  ;;  %v378_v45 = vpop.f32.mrf.mxu0  ;;  %v398_v46 = vpop.f32.mrf.mxu1 }
  0xaa   : > { %v379_v53 = vadd.f32 %v925_v24, %v378_v45  ;;  %v399_v54 = vadd.f32 %v925_v24, %v398_v46 }
  0xab   : > { %v470_v49 = vmax.f32 %v416_v43, 0.0  ;;  %v478_v50 = vmax.f32 %v436_v44, 0.0 }
  0xac   : > { %v455_v61 = vmax.f32 %v379_v53, 0.0  ;;  %v463_v62 = vmax.f32 %v399_v54, 0.0 }
  0xad   : > { %v765_v51 = vpack.c.bf16 %v470_v49, %v469_v47  ;;  %v785_v52 = vpack.c.bf16 %v478_v50, %v477_v48 }
  0xaf   : > { %809 = vst [vmem:[%s936_s29 + $0x40] sm:$0xff] %v765_v51  }
  0xb0   : > { %813 = vst [vmem:[%s936_s29 + $0x60] sm:$0xff] %v785_v52   ;;  %v418_v55 = vpop.f32.mrf.mxu2  ;;  %v438_v56 = vpop.f32.mrf.mxu3 }
  0xb1   : > { %v380_v57 = vpop.f32.mrf.mxu0  ;;  %v400_v58 = vpop.f32.mrf.mxu1  ;;  %v419_v3 = vadd.f32 %v925_v24, %v418_v55  ;;  %v439_v4 = vadd.f32 %v925_v24, %v438_v56 }
  0xb2   : > { %v381_v59 = vadd.f32 %v925_v24, %v380_v57  ;;  %v401_v60 = vadd.f32 %v925_v24, %v400_v58 }
  0xb3   : > { %v471_v11 = vmax.f32 %v419_v3, 0.0  ;;  %v479_v12 = vmax.f32 %v439_v4, 0.0 }
  0xb4   : > { %v456_v63 = vmax.f32 %v381_v59, 0.0  ;;  %v464_v0 = vmax.f32 %v401_v60, 0.0 }
  0xb6   : > { %v730_v1 = vpack.c.bf16 %v456_v63, %v455_v61  ;;  %v750_v2 = vpack.c.bf16 %v464_v0, %v463_v62 }
  0xb8   : > { %802 = vst [vmem:[%s936_s29 + $0x8] sm:$0xff] %v730_v1   ;;  %v420_v5 = vpop.f32.mrf.mxu2  ;;  %v440_v6 = vpop.f32.mrf.mxu3 }
  0xb9   : > { %806 = vst [vmem:[%s936_s29 + $0x28] sm:$0xff] %v750_v2   ;;  %v421_v7 = vadd.f32 %v925_v24, %v420_v5  ;;  %v441_v8 = vadd.f32 %v925_v24, %v440_v6  ;;  %v383_v9 = vpop.f32.mrf.mxu0  ;;  %v403_v10 = vpop.f32.mrf.mxu1 }
  0xba   : > { %v384_v17 = vadd.f32 %v925_v24, %v383_v9  ;;  %v404_v18 = vadd.f32 %v925_v24, %v403_v10 }
  0xbb   : > { %v472_v13 = vmax.f32 %v421_v7, 0.0  ;;  %v480_v14 = vmax.f32 %v441_v8, 0.0 }
  0xbc   : > { %v457_v26 = vmax.f32 %v384_v17, 0.0  ;;  %v465_v27 = vmax.f32 %v404_v18, 0.0 }
  0xbd   : > { %v770_v15 = vpack.c.bf16 %v472_v13, %v471_v11  ;;  %v790_v16 = vpack.c.bf16 %v480_v14, %v479_v12 }
  0xbf   : > { %810 = vst [vmem:[%s936_s29 + $0x48] sm:$0xff] %v770_v15  }
  0xc0   : > { %814 = vst [vmem:[%s936_s29 + $0x68] sm:$0xff] %v790_v16   ;;  %v423_v19 = vpop.f32.mrf.mxu2  ;;  %v443_v20 = vpop.f32.mrf.mxu3 }
  0xc1   : > { %v385_v21 = vpop.f32.mrf.mxu0  ;;  %v405_v22 = vpop.f32.mrf.mxu1  ;;  %v424_v32 = vadd.f32 %v925_v24, %v423_v19  ;;  %v444_v33 = vadd.f32 %v925_v24, %v443_v20 }
  0xc2   : > { %v386_v23 = vadd.f32 %v925_v24, %v385_v21  ;;  %v406_v25 = vadd.f32 %v925_v24, %v405_v22 }
  0xc3   : > { %v473_v40 = vmax.f32 %v424_v32, 0.0  ;;  %v481_v41 = vmax.f32 %v444_v33, 0.0 }
  0xc4   : > { %v458_v28 = vmax.f32 %v386_v23, 0.0  ;;  %v466_v29 = vmax.f32 %v406_v25, 0.0 }
  0xc6   : > { %v735_v30 = vpack.c.bf16 %v458_v28, %v457_v26  ;;  %v755_v31 = vpack.c.bf16 %v466_v29, %v465_v27 }
  0xc8   : > { %803 = vst [vmem:[%s936_s29 + $0x10] sm:$0xff] %v735_v30   ;;  %v425_v34 = vpop.f32.mrf.mxu2  ;;  %v445_v35 = vpop.f32.mrf.mxu3 }
  0xc9   : > { %807 = vst [vmem:[%s936_s29 + $0x30] sm:$0xff] %v755_v31   ;;  %v426_v36 = vadd.f32 %v925_v24, %v425_v34  ;;  %v446_v37 = vadd.f32 %v925_v24, %v445_v35  ;;  %v388_v38 = vpop.f32.mrf.mxu0  ;;  %v408_v39 = vpop.f32.mrf.mxu1 }
  0xca   : > { %v389_v46 = vadd.f32 %v925_v24, %v388_v38  ;;  %v409_v47 = vadd.f32 %v925_v24, %v408_v39 }
  0xcb   : > { %v474_v42 = vmax.f32 %v426_v36, 0.0  ;;  %v482_v43 = vmax.f32 %v446_v37, 0.0 }
  0xcc   : > { %v459_v54 = vmax.f32 %v389_v46, 0.0  ;;  %v467_v55 = vmax.f32 %v409_v47, 0.0 }
  0xcd   : > { %v775_v44 = vpack.c.bf16 %v474_v42, %v473_v40  ;;  %v795_v45 = vpack.c.bf16 %v482_v43, %v481_v41 }
  0xcf   : > { %811 = vst [vmem:[%s936_s29 + $0x50] sm:$0xff] %v775_v44  }
  0xd0   : > { %815 = vst [vmem:[%s936_s29 + $0x70] sm:$0xff] %v795_v45   ;;  %v428_v48 = vpop.f32.mrf.mxu2  ;;  %v448_v49 = vpop.f32.mrf.mxu3 }
  0xd1   : > { %v390_v50 = vpop.f32.mrf.mxu0  ;;  %v410_v51 = vpop.f32.mrf.mxu1  ;;  %v429_v60 = vadd.f32 %v925_v24, %v428_v48  ;;  %v449_v61 = vadd.f32 %v925_v24, %v448_v49 }
  0xd2   : > { %v391_v52 = vadd.f32 %v925_v24, %v390_v50  ;;  %v411_v53 = vadd.f32 %v925_v24, %v410_v51 }
  0xd3   : > { %v475_v2 = vmax.f32 %v429_v60, 0.0  ;;  %v483_v3 = vmax.f32 %v449_v61, 0.0 }
  0xd4   : > { %v460_v56 = vmax.f32 %v391_v52, 0.0  ;;  %v468_v57 = vmax.f32 %v411_v53, 0.0 }
  0xd6   : > { %v740_v58 = vpack.c.bf16 %v460_v56, %v459_v54  ;;  %v760_v59 = vpack.c.bf16 %v468_v57, %v467_v55 }
  0xd8   : > { %804 = vst [vmem:[%s936_s29 + $0x18] sm:$0xff] %v740_v58   ;;  %v430_v62 = vpop.f32.mrf.mxu2  ;;  %v450_v63 = vpop.f32.mrf.mxu3 }
  0xd9   : > { %808 = vst [vmem:[%s936_s29 + $0x38] sm:$0xff] %v760_v59   ;;  %v431_v0 = vadd.f32 %v925_v24, %v430_v62  ;;  %v451_v1 = vadd.f32 %v925_v24, %v450_v63 }
  0xdb   : > { %v476_v4 = vmax.f32 %v431_v0, 0.0  ;;  %v484_v5 = vmax.f32 %v451_v1, 0.0 }
  0xdd   : > { %v780_v6 = vpack.c.bf16 %v476_v4, %v475_v2  ;;  %v800_v7 = vpack.c.bf16 %v484_v5, %v483_v3 }
  0xdf   : > { %812 = vst [vmem:[%s936_s29 + $0x58] sm:$0xff] %v780_v6  }
  0xe0   : > { %816 = vst [vmem:[%s936_s29 + $0x78] sm:$0xff] %v800_v7  }
  0xe1 PF: > { %s13_s12 = sadd.s32 1, %s841_s12  }
  0xe2   : > { %p10_p4 = scmp.ge.s32.totalorder %s13_s12, 4  }
  0xe4   :  { %12 = sbr.rel (!%p10_p4) target bundleno = 1 (0x1), region = 62 }

// kernel: vgg11_feat_forward.7
= control target key start
LH: loop header
LB: loop body
LE: loop exit
PB: predicated region body
PF: predicated region fallthrough
CT: control target
= control target key end

     0   :  { %s2775_s1 = inlined_call_operand.vmem [shape: bf16[1152,128], index: 1, kind: input, shape index: {}]   ;;  %s2776_s2 = inlined_call_operand.vmem [shape: f32[1,128], index: 2, kind: input, shape index: {}]   ;;  %s2777_s0 = inlined_call_operand.vmem [shape: bf16[98,1152], index: 0, kind: input, shape index: {}]   ;;  %s2778_s3 = inlined_call_operand.vmem [shape: bf16[98,128], index: 3, kind: output, shape index: {}]  }
   0x1   :  { %v1962_v0 = vld [vmem:[%s2775_s1 + $0x38] sm:$0xff]  ;;  %v1961_v1 = vld [vmem:[%s2775_s1 + $0x30] sm:$0xff]  ;;  %v1960_v2 = vld [vmem:[%s2775_s1 + $0x28] sm:$0xff] }
   0x2   :  { %2062 = vmatpush.bf16.msra.mxu1 %v1962_v0  ;;  %2063 = vmatpush.bf16.msra.mxu2 %v1962_v0  ;;  %v1959_v3 = vld [vmem:[%s2775_s1 + $0x20] sm:$0xff]  ;;  %v1958_v4 = vld [vmem:[%s2775_s1 + $0x18] sm:$0xff]  ;;  %v1957_v5 = vld [vmem:[%s2775_s1 + $0x10] sm:$0xff] }
   0x3   :  { %2064 = vmatpush.bf16.msra.mxu3 %v1962_v0  ;;  %967 = vmatpush.bf16.msra.mxu0 %v1962_v0  ;;  %v1956_v6 = vld [vmem:[%s2775_s1 + $0x8] sm:$0xff]  ;;  %v2131_v7 = vld [vmem:[%s2777_s0 + $0x1b0] sm:$0x11]  ;;  %v1955_v8 = vld [vmem:[%s2775_s1] sm:$0xff] }
   0x4   :  { %v1471_v9 = vld [vmem:[%s2777_s0 + $0x90] sm:$0xf]  ;;  %v1923_v10 = vld [vmem:[%s2777_s0 + $0xb0] sm:$0xf0]  ;;  %v1543_v11 = vld [vmem:[%s2777_s0 + $0x120] sm:$0xf]  ;;  %v400_v15 = vunpack.c.l.b16 %v2131_v7 }
   0x5   :  { %v1941_v12 = vld [vmem:[%s2777_s0 + $0x140] sm:$0xf0]  ;;  %v1399_v13 = vld [vmem:[%s2777_s0] sm:$0xf]  ;;  %v1986_v16 = vld [vmem:[%s2775_s1 + $0xf8] sm:$0xff]  ;;  %v1472_v18 = vor.u32 %v1923_v10, %v1471_v9 }
   0x6   :  { %2065 = vmatpush.bf16.msra.mxu1 %v1961_v1  ;;  %2066 = vmatpush.bf16.msra.mxu2 %v1961_v1  ;;  %v1905_v14 = vld [vmem:[%s2777_s0 + $0x20] sm:$0xf0]  ;;  %v1978_v17 = vld [vmem:[%s2775_s1 + $0xb8] sm:$0xff]  ;;  %v1544_v19 = vor.u32 %v1941_v12, %v1543_v11  ;;  %v463_v23 = vpack.c.b16 %v400_v15, %v400_v15  ;;  %v1985_v24 = vld [vmem:[%s2775_s1 + $0xf0] sm:$0xff] }
   0x7   :  { %2067 = vmatpush.bf16.msra.mxu3 %v1961_v1  ;;  %968 = vmatpush.bf16.msra.mxu0 %v1961_v1  ;;  %v1400_v20 = vor.u32 %v1905_v14, %v1399_v13  ;;  %v1970_v21 = vld [vmem:[%s2775_s1 + $0x78] sm:$0xff]  ;;  %v1977_v25 = vld [vmem:[%s2775_s1 + $0xb0] sm:$0xff]  ;;  %v1984_v28 = vld [vmem:[%s2775_s1 + $0xe8] sm:$0xff] }
   0x8   :  { %v1994_v22 = vld [vmem:[%s2775_s1 + $0x138] sm:$0xff]  ;;  %v1969_v26 = vld [vmem:[%s2775_s1 + $0x70] sm:$0xff]  ;;  %v1976_v29 = vld [vmem:[%s2775_s1 + $0xa8] sm:$0xff] }
   0x9   :  { %v1993_v27 = vld [vmem:[%s2775_s1 + $0x130] sm:$0xff]  ;;  %v1968_v30 = vld [vmem:[%s2775_s1 + $0x68] sm:$0xff]  ;;  %v1983_v32 = vld [vmem:[%s2775_s1 + $0xe0] sm:$0xff] }
   0xa   :  { %2068 = vmatpush.bf16.msra.mxu1 %v1960_v2  ;;  %2069 = vmatpush.bf16.msra.mxu2 %v1960_v2  ;;  %v1992_v31 = vld [vmem:[%s2775_s1 + $0x128] sm:$0xff]  ;;  %v1975_v33 = vld [vmem:[%s2775_s1 + $0xa0] sm:$0xff]  ;;  %v1507_v35 = vld [vmem:[%s2777_s0 + $0xd8] sm:$0xf] }
   0xb   :  { %2070 = vmatpush.bf16.msra.mxu3 %v1960_v2  ;;  %969 = vmatpush.bf16.msra.mxu0 %v1960_v2  ;;  %v1967_v34 = vld [vmem:[%s2775_s1 + $0x60] sm:$0xff]  ;;  %v1932_v36 = vld [vmem:[%s2777_s0 + $0xf8] sm:$0xf0]  ;;  %v1579_v37 = vld [vmem:[%s2777_s0 + $0x168] sm:$0xf] }
   0xc   :  { %v1950_v38 = vld [vmem:[%s2777_s0 + $0x188] sm:$0xf0]  ;;  %v1991_v39 = vld [vmem:[%s2775_s1 + $0x120] sm:$0xff]  ;;  %v1435_v40 = vld [vmem:[%s2777_s0 + $0x48] sm:$0xf]  ;;  %v1508_v44 = vor.u32 %v1932_v36, %v1507_v35 }
   0xd   :  { %v1914_v41 = vld [vmem:[%s2777_s0 + $0x68] sm:$0xf0]  ;;  %v1982_v42 = vld [vmem:[%s2775_s1 + $0xd8] sm:$0xff]  ;;  %v1580_v45 = vor.u32 %v1950_v38, %v1579_v37  ;;  %v1981_v49 = vld [vmem:[%s2775_s1 + $0xd0] sm:$0xff] }
   0xe   :  { %2071 = vmatpush.bf16.msra.mxu1 %v1959_v3  ;;  %2072 = vmatpush.bf16.msra.mxu2 %v1959_v3  ;;  %v1974_v43 = vld [vmem:[%s2775_s1 + $0x98] sm:$0xff]  ;;  %v1436_v46 = vor.u32 %v1914_v41, %v1435_v40  ;;  %v1973_v50 = vld [vmem:[%s2775_s1 + $0x90] sm:$0xff]  ;;  %v1980_v53 = vld [vmem:[%s2775_s1 + $0xc8] sm:$0xff] }
   0xf   :  { %2073 = vmatpush.bf16.msra.mxu3 %v1959_v3  ;;  %970 = vmatpush.bf16.msra.mxu0 %v1959_v3  ;;  %v1966_v47 = vld [vmem:[%s2775_s1 + $0x58] sm:$0xff]  ;;  %v1965_v51 = vld [vmem:[%s2775_s1 + $0x50] sm:$0xff]  ;;  %v1972_v54 = vld [vmem:[%s2775_s1 + $0x88] sm:$0xff] }
  0x10   :  { %v1990_v48 = vld [vmem:[%s2775_s1 + $0x118] sm:$0xff]  ;;  %v1989_v52 = vld [vmem:[%s2775_s1 + $0x110] sm:$0xff]  ;;  %v1964_v55 = vld [vmem:[%s2775_s1 + $0x48] sm:$0xff] }
  0x11   :  { %v1979_v56 = vld [vmem:[%s2775_s1 + $0xc0] sm:$0xff]  ;;  %v1988_v57 = vld [vmem:[%s2775_s1 + $0x108] sm:$0xff]  ;;  %v1409_v61 = vld [vmem:[%s2777_s0 + $0x2c] sm:$0xf0] }
  0x12   :  { %2074 = vmatpush.bf16.msra.mxu1 %v1958_v4  ;;  %2075 = vmatpush.bf16.msra.mxu2 %v1958_v4  ;;  %v1971_v58 = vld [vmem:[%s2775_s1 + $0x80] sm:$0xff]  ;;  %v1902_v60 = vld [vmem:[%s2777_s0 + $0xc] sm:$0xf]  ;;  %v2010_v63 = vld [vmem:[%s2775_s1 + $0x1b8] sm:$0xff] }
  0x13   :  { %2076 = vmatpush.bf16.msra.mxu3 %v1958_v4  ;;  %971 = vmatpush.bf16.msra.mxu0 %v1958_v4  ;;  %v1963_v59 = vld [vmem:[%s2775_s1 + $0x40] sm:$0xff]  ;;  %v2018_v0 = vld [vmem:[%s2775_s1 + $0x1f8] sm:$0xff]  ;;  %v1401_v1 = vld [vmem:[%s2777_s0 + $0x24] sm:$0xf0]  ;;  %v1412_v4 = vor.u32 %v1902_v60, %v1409_v61 }
  0x14   :  { %v1901_v62 = vld [vmem:[%s2777_s0 + $0x4] sm:$0xf]  ;;  %v1407_v2 = vld [vmem:[%s2777_s0 + $0x8] sm:$0xf]  ;;  %v1906_v3 = vld [vmem:[%s2777_s0 + $0x28] sm:$0xf0] }
  0x15   :  { %v2002_v9 = vld [vmem:[%s2775_s1 + $0x178] sm:$0xff]  ;;  %v1404_v11 = vor.u32 %v1901_v62, %v1401_v1  ;;  %v1408_v12 = vor.u32 %v1906_v3, %v1407_v2  ;;  %v2009_v14 = vld [vmem:[%s2775_s1 + $0x1b0] sm:$0xff]  ;;  %v1999_v36 = vld [vmem:[%s2775_s1 + $0x160] sm:$0xff] }
  0x16   :  { %2077 = vmatpush.bf16.msra.mxu1 %v1957_v5  ;;  %2078 = vmatpush.bf16.msra.mxu2 %v1957_v5  ;;  %v2026_v10 = vld [vmem:[%s2775_s1 + $0x238] sm:$0xff]  ;;  %v2017_v15 = vld [vmem:[%s2775_s1 + $0x1f0] sm:$0xff]  ;;  %v2023_v37 = vld [vmem:[%s2775_s1 + $0x220] sm:$0xff] }
  0x17   :  { %2079 = vmatpush.bf16.msra.mxu3 %v1957_v5  ;;  %972 = vmatpush.bf16.msra.mxu0 %v1957_v5  ;;  %v1987_v5 = vld [vmem:[%s2775_s1 + $0x100] sm:$0xff]  ;;  %v2006_v38 = vld [vmem:[%s2775_s1 + $0x198] sm:$0xff]  ;;  %v1934_v1 = vld [vmem:[%s2777_s0 + $0x108] sm:$0xf0] }
  0x18   :  { %v1998_v40 = vld [vmem:[%s2775_s1 + $0x158] sm:$0xff]  ;;  %v1509_v60 = vld [vmem:[%s2777_s0 + $0xfc] sm:$0xf0]  ;;  %v1933_v62 = vld [vmem:[%s2777_s0 + $0x100] sm:$0xf0] }
  0x19   :  { %v1920_v41 = vld [vmem:[%s2777_s0 + $0x9c] sm:$0xf]  ;;  %v1515_v61 = vld [vmem:[%s2777_s0 + $0xe0] sm:$0xf] }
  0x1a   :  { %2080 = vmatpush.bf16.msra.mxu1 %v1956_v6  ;;  %2081 = vmatpush.bf16.msra.mxu2 %v1956_v6  ;;  %v1516_v3 = vor.u32 %v1933_v62, %v1515_v61  ;;  %v1423_v61 = vld [vmem:[%s2777_s0 + $0x18] sm:$0xf]  ;;  %v1908_v62 = vld [vmem:[%s2777_s0 + $0x38] sm:$0xf0] }
  0x1b   :  { %2082 = vmatpush.bf16.msra.mxu3 %v1956_v6  ;;  %973 = vmatpush.bf16.msra.mxu0 %v1956_v6  ;;  %v1415_v6 = vld [vmem:[%s2777_s0 + $0x10] sm:$0xf] }
  0x1e   :  { %2083 = vmatpush.bf16.msra.mxu1 %v1955_v8  ;;  %2084 = vmatpush.bf16.msra.mxu2 %v1955_v8 }
  0x1f   :  { %2085 = vmatpush.bf16.msra.mxu3 %v1955_v8  ;;  %974 = vmatpush.bf16.msra.mxu0 %v1955_v8  ;;  %v1907_v8 = vld [vmem:[%s2777_s0 + $0x30] sm:$0xf0] }
  0x20   :  { %v1416_v13 = vor.u32 %v1907_v8, %v1415_v6  ;;  %v2004_v6 = vld [vmem:[%s2775_s1 + $0x188] sm:$0xff] }
  0x21   :  { %985 = vmatmul.bf16.vlgmr.msra.gmra.mxu1 %v1472_v18  ;;  %995 = vmatmul.bf16.vlgmr.msra.gmra.mxu2 %v1544_v19  ;;  %v2008_v18 = vld [vmem:[%s2775_s1 + $0x1a8] sm:$0xff] }
  0x22   :  { %1053 = vmatpush.bf16.msrb.mxu2 %v1978_v17  ;;  %975 = vmatmul.bf16.vlgmr.msra.gmra.mxu0 %v1400_v20  ;;  %v2025_v17 = vld [vmem:[%s2775_s1 + $0x230] sm:$0xff]  ;;  %v2016_v19 = vld [vmem:[%s2775_s1 + $0x1e8] sm:$0xff] }
  0x23   :  { %1096 = vmatpush.bf16.msrb.mxu3 %v1986_v16  ;;  %1010 = vmatpush.bf16.msrb.mxu1 %v1970_v21  ;;  %v2001_v16 = vld [vmem:[%s2775_s1 + $0x170] sm:$0xff]  ;;  %v2000_v20 = vld [vmem:[%s2775_s1 + $0x168] sm:$0xff] }
  0x24   :  { %1139 = vmatpush.bf16.msrb.mxu0 %v1994_v22  ;;  %1005 = vmatmul.bf16.vlgmr.msra.gmra.mxu3 %v463_v23  ;;  %v2024_v21 = vld [vmem:[%s2775_s1 + $0x228] sm:$0xff]  ;;  %v2007_v22 = vld [vmem:[%s2775_s1 + $0x1a0] sm:$0xff] }
  0x25   :  { %v2015_v23 = vld [vmem:[%s2775_s1 + $0x1e0] sm:$0xff]  ;;  %v2012_v8 = vld [vmem:[%s2775_s1 + $0x1c8] sm:$0xff] }
  0x26   :  { %1054 = vmatpush.bf16.msrb.mxu2 %v1977_v25  ;;  %v1445_v25 = vld [vmem:[%s2777_s0 + $0x74] sm:$0xf0] }
  0x27   :  { %1097 = vmatpush.bf16.msrb.mxu3 %v1985_v24  ;;  %1011 = vmatpush.bf16.msrb.mxu1 %v1969_v26  ;;  %v1911_v24 = vld [vmem:[%s2777_s0 + $0x54] sm:$0xf]  ;;  %v1910_v26 = vld [vmem:[%s2777_s0 + $0x4c] sm:$0xf] }
  0x28   :  { %1140 = vmatpush.bf16.msrb.mxu0 %v1993_v27  ;;  %v1437_v27 = vld [vmem:[%s2777_s0 + $0x6c] sm:$0xf0] }
  0x2a   :  { %1055 = vmatpush.bf16.msrb.mxu2 %v1976_v29  ;;  %v1915_v29 = vld [vmem:[%s2777_s0 + $0x70] sm:$0xf0] }
  0x2b   :  { %1098 = vmatpush.bf16.msrb.mxu3 %v1984_v28  ;;  %1012 = vmatpush.bf16.msrb.mxu1 %v1968_v30  ;;  %v1443_v28 = vld [vmem:[%s2777_s0 + $0x50] sm:$0xf]  ;;  %v1448_v30 = vor.u32 %v1911_v24, %v1445_v25  ;;  %v2011_v24 = vld [vmem:[%s2775_s1 + $0x1c0] sm:$0xff]  ;;  %v1947_v25 = vld [vmem:[%s2777_s0 + $0x174] sm:$0xf] }
  0x2c   :  { %1141 = vmatpush.bf16.msrb.mxu0 %v1992_v31  ;;  %v1451_v31 = vld [vmem:[%s2777_s0 + $0x58] sm:$0xf] }
  0x2e   :  { %1056 = vmatpush.bf16.msrb.mxu2 %v1975_v33  ;;  %v1440_v33 = vor.u32 %v1910_v26, %v1437_v27  ;;  %v1589_v26 = vld [vmem:[%s2777_s0 + $0x194] sm:$0xf0]  ;;  %v1995_v27 = vld [vmem:[%s2775_s1 + $0x140] sm:$0xff] }
  0x2f   :  { %1099 = vmatpush.bf16.msrb.mxu3 %v1983_v32  ;;  %1013 = vmatpush.bf16.msrb.mxu1 %v1967_v34  ;;  %v1916_v32 = vld [vmem:[%s2777_s0 + $0x78] sm:$0xf0]  ;;  %v1444_v34 = vor.u32 %v1915_v29, %v1443_v28  ;;  %v1946_v28 = vld [vmem:[%s2777_s0 + $0x16c] sm:$0xf]  ;;  %v1581_v29 = vld [vmem:[%s2777_s0 + $0x18c] sm:$0xf0] }
  0x30   :  { %1142 = vmatpush.bf16.msrb.mxu0 %v1991_v39  ;;  %v1452_v35 = vor.u32 %v1916_v32, %v1451_v31  ;;  %v2014_v39 = vld [vmem:[%s2775_s1 + $0x1d8] sm:$0xff]  ;;  %v1951_v31 = vld [vmem:[%s2777_s0 + $0x190] sm:$0xf0]  ;;  %v1592_v32 = vor.u32 %v1947_v25, %v1589_v26 }
  0x31   :  { %990 = vmatmul.bf16.gmra.mxu1 %v1508_v44  ;;  %1000 = vmatmul.bf16.gmra.mxu2 %v1580_v45  ;;  %v1473_v44 = vld [vmem:[%s2777_s0 + $0xb4] sm:$0xf0] }
  0x32   :  { %1057 = vmatpush.bf16.msrb.mxu2 %v1974_v43  ;;  %980 = vmatmul.bf16.gmra.mxu0 %v1436_v46  ;;  %v1919_v43 = vld [vmem:[%s2777_s0 + $0x94] sm:$0xf]  ;;  %v1479_v45 = vld [vmem:[%s2777_s0 + $0x98] sm:$0xf]  ;;  %v1924_v46 = vld [vmem:[%s2777_s0 + $0xb8] sm:$0xf0] }
  0x33   :  { %1100 = vmatpush.bf16.msrb.mxu3 %v1982_v42  ;;  %1014 = vmatpush.bf16.msrb.mxu1 %v1966_v47  ;;  %v1481_v42 = vld [vmem:[%s2777_s0 + $0xbc] sm:$0xf0] }
  0x34   :  { %1143 = vmatpush.bf16.msrb.mxu0 %v1990_v48  ;;  %v1484_v47 = vor.u32 %v1920_v41, %v1481_v42  ;;  %v1487_v48 = vld [vmem:[%s2777_s0 + $0xa0] sm:$0xf]  ;;  %v401_v42 = vunpack.c.h.b16 %v2131_v7 }
  0x35   :  { %v2515_v41 = vld [vmem:[%s2777_s0 + $0x1c0] sm:$0x11] }
  0x36   :  { %1058 = vmatpush.bf16.msrb.mxu2 %v1973_v50  ;;  %v1476_v50 = vor.u32 %v1919_v43, %v1473_v44  ;;  %v404_v44 = vunpack.c.l.b16 %v2515_v41 }
  0x37   :  { %1101 = vmatpush.bf16.msrb.mxu3 %v1981_v49  ;;  %1015 = vmatpush.bf16.msrb.mxu1 %v1965_v51  ;;  %v1925_v49 = vld [vmem:[%s2777_s0 + $0xc0] sm:$0xf0]  ;;  %v1480_v51 = vor.u32 %v1924_v46, %v1479_v45  ;;  %v464_v46 = vpack.c.b16 %v401_v42, %v401_v42  ;;  %v1922_v42 = vld [vmem:[%s2777_s0 + $0xac] sm:$0xf] }
  0x38   :  { %1144 = vmatpush.bf16.msrb.mxu0 %v1989_v52  ;;  %v1488_v52 = vor.u32 %v1925_v49, %v1487_v48  ;;  %v467_v49 = vpack.c.b16 %v404_v44, %v404_v44  ;;  %v1921_v44 = vld [vmem:[%s2777_s0 + $0xa4] sm:$0xf] }
  0x3a   :  { %1059 = vmatpush.bf16.msrb.mxu2 %v1972_v54  ;;  %v2005_v54 = vld [vmem:[%s2775_s1 + $0x190] sm:$0xff] }
  0x3b   :  { %1102 = vmatpush.bf16.msrb.mxu3 %v1980_v53  ;;  %1016 = vmatpush.bf16.msrb.mxu1 %v1964_v55  ;;  %v2022_v53 = vld [vmem:[%s2775_s1 + $0x218] sm:$0xff]  ;;  %v2013_v55 = vld [vmem:[%s2775_s1 + $0x1d0] sm:$0xff] }
  0x3c   :  { %1145 = vmatpush.bf16.msrb.mxu0 %v1988_v57  ;;  %v1929_v57 = vld [vmem:[%s2777_s0 + $0xe4] sm:$0xf] }
  0x3e   :  { %1060 = vmatpush.bf16.msrb.mxu2 %v1971_v58  ;;  %v1517_v58 = vld [vmem:[%s2777_s0 + $0x104] sm:$0xf0] }
  0x3f   :  { %1103 = vmatpush.bf16.msrb.mxu3 %v1979_v56  ;;  %1017 = vmatpush.bf16.msrb.mxu1 %v1963_v59  ;;  %v1997_v56 = vld [vmem:[%s2775_s1 + $0x150] sm:$0xff]  ;;  %v1928_v59 = vld [vmem:[%s2777_s0 + $0xdc] sm:$0xf] }
  0x40   :  { %1146 = vmatpush.bf16.msrb.mxu0 %v1987_v5  ;;  %v1512_v2 = vor.u32 %v1928_v59, %v1509_v60  ;;  %v2021_v5 = vld [vmem:[%s2775_s1 + $0x210] sm:$0xff]  ;;  %v1417_v60 = vld [vmem:[%s2777_s0 + $0x34] sm:$0xf0] }
  0x41   :  { %1061 = vmatmul.bf16.vlgmr.msrb.gmra.mxu2 %v1408_v12  ;;  %v1937_v12 = vld [vmem:[%s2777_s0 + $0x124] sm:$0xf]  ;;  %v1903_v59 = vld [vmem:[%s2777_s0 + $0x14] sm:$0xf] }
  0x42   :  { %1225 = vmatpush.bf16.msra.mxu2 %v2010_v63  ;;  %1104 = vmatmul.bf16.vlgmr.msrb.gmra.mxu3 %v1412_v4  ;;  %v1520_v63 = vor.u32 %v1929_v57, %v1517_v58  ;;  %v1904_v57 = vld [vmem:[%s2777_s0 + $0x1c] sm:$0xf]  ;;  %v1425_v58 = vld [vmem:[%s2777_s0 + $0x3c] sm:$0xf0] }
  0x43   :  { %1268 = vmatpush.bf16.msra.mxu3 %v2018_v0  ;;  %1182 = vmatpush.bf16.msra.mxu1 %v2002_v9  ;;  %v1523_v0 = vld [vmem:[%s2777_s0 + $0xe8] sm:$0xf] }
  0x44   :  { %1311 = vmatpush.bf16.msra.mxu0 %v2026_v10  ;;  %1018 = vmatmul.bf16.vlgmr.msrb.gmra.mxu1 %v1404_v11  ;;  %v1524_v4 = vor.u32 %v1934_v1, %v1523_v0  ;;  %v1996_v9 = vld [vmem:[%s2775_s1 + $0x148] sm:$0xff]  ;;  %v1553_v11 = vld [vmem:[%s2777_s0 + $0x14c] sm:$0xf0]  ;;  %v1431_v0 = vld [vmem:[%s2777_s0 + $0x20] sm:$0xf] }
  0x45   :  { %1147 = vmatmul.bf16.vlgmr.msrb.gmra.mxu0 %v1416_v13  ;;  %v1938_v10 = vld [vmem:[%s2777_s0 + $0x12c] sm:$0xf]  ;;  %v1545_v13 = vld [vmem:[%s2777_s0 + $0x144] sm:$0xf0]  ;;  %v1909_v1 = vld [vmem:[%s2777_s0 + $0x40] sm:$0xf0] }
  0x46   :  { %1226 = vmatpush.bf16.msra.mxu2 %v2009_v14  ;;  %v1551_v14 = vld [vmem:[%s2777_s0 + $0x128] sm:$0xf] }
  0x47   :  { %1269 = vmatpush.bf16.msra.mxu3 %v2017_v15  ;;  %1183 = vmatpush.bf16.msra.mxu1 %v2001_v16  ;;  %v1942_v15 = vld [vmem:[%s2777_s0 + $0x148] sm:$0xf0]  ;;  %v1556_v16 = vor.u32 %v1938_v10, %v1553_v11 }
  0x48   :  { %1312 = vmatpush.bf16.msra.mxu0 %v2025_v17  ;;  %v1559_v17 = vld [vmem:[%s2777_s0 + $0x130] sm:$0xf] }
  0x4a   :  { %1227 = vmatpush.bf16.msra.mxu2 %v2008_v18  ;;  %v1943_v18 = vld [vmem:[%s2777_s0 + $0x150] sm:$0xf0] }
  0x4b   :  { %1270 = vmatpush.bf16.msra.mxu3 %v2016_v19  ;;  %1184 = vmatpush.bf16.msra.mxu1 %v2000_v20  ;;  %v1548_v19 = vor.u32 %v1937_v12, %v1545_v13  ;;  %v1552_v20 = vor.u32 %v1942_v15, %v1551_v14  ;;  %v1913_v15 = vld [vmem:[%s2777_s0 + $0x64] sm:$0xf] }
  0x4c   :  { %1313 = vmatpush.bf16.msra.mxu0 %v2024_v21  ;;  %v1560_v21 = vor.u32 %v1943_v18, %v1559_v17  ;;  %v1912_v17 = vld [vmem:[%s2777_s0 + $0x5c] sm:$0xf]  ;;  %v1453_v18 = vld [vmem:[%s2777_s0 + $0x7c] sm:$0xf0] }
  0x4e   :  { %1228 = vmatpush.bf16.msra.mxu2 %v2007_v22  ;;  %v2020_v22 = vld [vmem:[%s2775_s1 + $0x208] sm:$0xff] }
  0x4f   :  { %1271 = vmatpush.bf16.msra.mxu3 %v2015_v23  ;;  %1185 = vmatpush.bf16.msra.mxu1 %v1999_v36  ;;  %v2003_v23 = vld [vmem:[%s2775_s1 + $0x180] sm:$0xff] }
  0x50   :  { %1314 = vmatpush.bf16.msra.mxu0 %v2023_v37  ;;  %v2019_v37 = vld [vmem:[%s2775_s1 + $0x200] sm:$0xff] }
  0x51   :  { %1066 = vmatmul.bf16.gmra.mxu2 %v1444_v34  ;;  %v1952_v34 = vld [vmem:[%s2777_s0 + $0x198] sm:$0xf0] }
  0x52   :  { %1109 = vmatmul.bf16.gmra.mxu3 %v1448_v30  ;;  %1229 = vmatpush.bf16.msra.mxu2 %v2006_v38  ;;  %v1587_v30 = vld [vmem:[%s2777_s0 + $0x170] sm:$0xf] }
  0x53   :  { %1272 = vmatpush.bf16.msra.mxu3 %v2014_v39  ;;  %1186 = vmatpush.bf16.msra.mxu1 %v1998_v40  ;;  %v1588_v36 = vor.u32 %v1951_v31, %v1587_v30  ;;  %v75_v39 = vld [vmem:[%s2777_s0 + $0x1b8] sm:$0x11] }
  0x54   :  { %1023 = vmatmul.bf16.gmra.mxu1 %v1440_v33  ;;  %1315 = vmatpush.bf16.msra.mxu0 %v2022_v53  ;;  %v1595_v33 = vld [vmem:[%s2777_s0 + $0x178] sm:$0xf]  ;;  %v403_v40 = vunpack.c.h.b16 %v75_v39  ;;  %v402_v43 = vunpack.c.l.b16 %v75_v39 }
  0x55   :  { %1152 = vmatmul.bf16.gmra.mxu0 %v1452_v35  ;;  %v1584_v35 = vor.u32 %v1946_v28, %v1581_v29  ;;  %v1596_v38 = vor.u32 %v1952_v34, %v1595_v33 }
  0x56   :  { %1230 = vmatpush.bf16.msra.mxu2 %v2005_v54  ;;  %v466_v45 = vpack.c.b16 %v403_v40, %v403_v40 }
  0x57   :  { %1273 = vmatpush.bf16.msra.mxu3 %v2013_v55  ;;  %1187 = vmatpush.bf16.msra.mxu1 %v1997_v56 }
  0x58   :  { %1316 = vmatpush.bf16.msra.mxu0 %v2021_v5  ;;  %v1424_v5 = vor.u32 %v1908_v62, %v1423_v61 }
  0x5a   :  { %1231 = vmatpush.bf16.msra.mxu2 %v2004_v6 }
  0x5b   :  { %1274 = vmatpush.bf16.msra.mxu3 %v2012_v8  ;;  %1188 = vmatpush.bf16.msra.mxu1 %v1996_v9  ;;  %v1432_v8 = vor.u32 %v1909_v1, %v1431_v0 }
  0x5c   :  { %1317 = vmatpush.bf16.msra.mxu0 %v2020_v22  ;;  %v1467_v22 = vld [vmem:[%s2777_s0 + $0x68] sm:$0xf] }
  0x5e   :  { %1232 = vmatpush.bf16.msra.mxu2 %v2003_v23  ;;  %v1918_v23 = vld [vmem:[%s2777_s0 + $0x88] sm:$0xf0] }
  0x5f   :  { %1275 = vmatpush.bf16.msra.mxu3 %v2011_v24  ;;  %1189 = vmatpush.bf16.msra.mxu1 %v1995_v27  ;;  %v1456_v27 = vor.u32 %v1912_v17, %v1453_v18  ;;  %v1468_v30 = vor.u32 %v1918_v23, %v1467_v22  ;;  %v1931_v18 = vld [vmem:[%s2777_s0 + $0xf4] sm:$0xf]  ;;  %v1525_v22 = vld [vmem:[%s2777_s0 + $0x10c] sm:$0xf0] }
  0x60   :  { %1318 = vmatpush.bf16.msra.mxu0 %v2019_v37  ;;  %v1531_v23 = vld [vmem:[%s2777_s0 + $0xf0] sm:$0xf] }
  0x61   :  { %1071 = vmatmul.bf16.gmra.mxu2 %v1480_v51  ;;  %v2524_v51 = vld [vmem:[%s2776_s2] ss:$0 sm:$0xff] }
  0x62   :  { %1114 = vmatmul.bf16.gmra.mxu3 %v1484_v47  ;;  %v465_v47 = vpack.c.b16 %v402_v43, %v402_v43  ;;  %v1497_v43 = vld [vmem:[%s2777_s0 + $0xcc] sm:$0xf0] }
  0x64   :  { %1028 = vmatmul.bf16.gmra.mxu1 %v1476_v50 }
  0x65   :  { %1157 = vmatmul.bf16.gmra.mxu0 %v1488_v52 }
  0x71   :  { %1076 = vmatmul.bf16.gmra.mxu2 %v1516_v3 }
  0x72   :  { %1119 = vmatmul.bf16.gmra.mxu3 %v1520_v63  ;;  %v1428_v63 = vor.u32 %v1904_v57, %v1425_v58 }
  0x74   :  { %1033 = vmatmul.bf16.gmra.mxu1 %v1512_v2 }
  0x75   :  { %1162 = vmatmul.bf16.gmra.mxu0 %v1524_v4  ;;  %v1420_v4 = vor.u32 %v1903_v59, %v1417_v60 }
  0x81   :  { %1081 = vmatmul.bf16.gmra.mxu2 %v1552_v20  ;;  %v1917_v20 = vld [vmem:[%s2777_s0 + $0x80] sm:$0xf0] }
  0x82   :  { %1124 = vmatmul.bf16.gmra.mxu3 %v1556_v16  ;;  %v1461_v16 = vld [vmem:[%s2777_s0 + $0x84] sm:$0xf0] }
  0x84   :  { %1038 = vmatmul.bf16.gmra.mxu1 %v1548_v19  ;;  %v1459_v19 = vld [vmem:[%s2777_s0 + $0x60] sm:$0xf] }
  0x85   :  { %1167 = vmatmul.bf16.gmra.mxu0 %v1560_v21  ;;  %v1464_v21 = vor.u32 %v1913_v15, %v1461_v16  ;;  %v1460_v28 = vor.u32 %v1917_v20, %v1459_v19  ;;  %v1533_v19 = vld [vmem:[%s2777_s0 + $0x114] sm:$0xf0]  ;;  %v1930_v20 = vld [vmem:[%s2777_s0 + $0xec] sm:$0xf] }
  0x91   :  { %1086 = vmatmul.bf16.gmra.mxu2 %v1588_v36 }
  0x92   :  { %1129 = vmatmul.bf16.gmra.mxu3 %v1592_v32 }
  0x94   :  { %1043 = vmatmul.bf16.gmra.mxu1 %v1584_v35 }
  0x95   :  { %1172 = vmatmul.bf16.gmra.mxu0 %v1596_v38 }
  0x9e   :  { %v2519_v48 = vpop.f32.mrf.mxu1 }
  0x9f   :  { %v976_v50 = vpop.f32.mrf.mxu0 }
  0xa0   :  { %v977_v25 = vadd.f32 %v2524_v51, %v976_v50  ;;  %v1926_v50 = vld [vmem:[%s2777_s0 + $0xc8] sm:$0xf0] }
  0xa1   :  { %1091 = vmatmul.bf16.gmra.mxu2 %v465_v47  ;;  %v1489_v47 = vld [vmem:[%s2777_s0 + $0xc4] sm:$0xf0] }
  0xa2   :  { %1134 = vmatmul.bf16.gmra.mxu3 %v466_v45  ;;  %v1492_v60 = vor.u32 %v1921_v44, %v1489_v47 }
  0xa4   :  { %1048 = vmatmul.bf16.gmra.mxu1 %v464_v46  ;;  %v996_v7 = vpop.f32.mrf.mxu2 }
  0xa5   :  { %1177 = vmatmul.bf16.gmra.mxu0 %v467_v49  ;;  %v2527_v52 = vadd.f32 %v2524_v51, %v996_v7  ;;  %v1495_v49 = vld [vmem:[%s2777_s0 + $0xa8] sm:$0xf]  ;;  %v1500_v7 = vor.u32 %v1922_v42, %v1497_v43 }
  0xa6   :  { %v2529_v53 = vpop.f32.mrf.mxu1  ;;  %v1496_v61 = vor.u32 %v1926_v50, %v1495_v49  ;;  %v1940_v50 = vld [vmem:[%s2777_s0 + $0x13c] sm:$0xf] }
  0xa7   :  { %v1006_v54 = vpop.f32.mrf.mxu3  ;;  %v978_v55 = vpop.f32.mrf.mxu0  ;;  %v989_v43 = vadd.f32 %v2524_v51, %v2529_v53 }
  0xa8   :  { %v2532_v56 = vadd.f32 %v2524_v51, %v1006_v54  ;;  %v979_v35 = vadd.f32 %v2524_v51, %v978_v55  ;;  %v1503_v54 = vld [vmem:[%s2777_s0 + $0xb0] sm:$0xf]  ;;  %v1927_v55 = vld [vmem:[%s2777_s0 + $0xd0] sm:$0xf0] }
  0xac   :  { %v998_v2 = vpop.f32.mrf.mxu2 }
  0xad   :  { %v2559_v3 = vadd.f32 %v2524_v51, %v998_v2 }
  0xae   :  { %v2561_v6 = vpop.f32.mrf.mxu1 }
  0xaf   :  { %v1008_v9 = vpop.f32.mrf.mxu3  ;;  %v981_v10 = vpop.f32.mrf.mxu0 }
  0xb0   :  { %v982_v58 = vadd.f32 %v2524_v51, %v981_v10 }
  0xb1   :  { %1233 = vmatmul.bf16.vlgmr.msra.gmra.mxu2 %v1424_v5 }
  0xb2   :  { %1276 = vmatmul.bf16.vlgmr.msra.gmra.mxu3 %v1428_v63  ;;  %v1504_v63 = vor.u32 %v1927_v55, %v1503_v54  ;;  %v1939_v54 = vld [vmem:[%s2777_s0 + $0x134] sm:$0xf] }
  0xb4   :  { %1190 = vmatmul.bf16.vlgmr.msra.gmra.mxu1 %v1420_v4  ;;  %v1001_v11 = vpop.f32.mrf.mxu2 }
  0xb5   :  { %1319 = vmatmul.bf16.vlgmr.msra.gmra.mxu0 %v1432_v8  ;;  %v2564_v12 = vadd.f32 %v2524_v51, %v1001_v11 }
  0xb6   :  { %v2566_v13 = vpop.f32.mrf.mxu1 }
  0xb7   :  { %v983_v14 = vpop.f32.mrf.mxu0 }
  0xb8   :  { %v984_v9 = vadd.f32 %v2524_v51, %v983_v14 }
  0xbc   :  { %v1003_v24 = vpop.f32.mrf.mxu2 }
  0xbd   :  { %v2594_v26 = vadd.f32 %v2524_v51, %v1003_v24  ;;  %v1935_v24 = vld [vmem:[%s2777_s0 + $0x110] sm:$0xf0] }
  0xc1   :  { %v1019_v29 = vpop.f32.mrf.mxu1  ;;  %1238 = vmatmul.bf16.gmra.mxu2 %v1460_v28  ;;  %v1936_v28 = vld [vmem:[%s2777_s0 + $0x118] sm:$0xf0] }
  0xc2   :  { %v1020_v31 = vadd.f32 %v1019_v29, %v977_v25  ;;  %1281 = vmatmul.bf16.gmra.mxu3 %v1464_v21  ;;  %v1148_v32 = vpop.f32.mrf.mxu0  ;;  %v1536_v25 = vor.u32 %v1931_v18, %v1533_v19  ;;  %v994_v19 = vadd.f32 %v2524_v51, %v2566_v13  ;;  %v1597_v13 = vld [vmem:[%s2777_s0 + $0x19c] sm:$0xf0] }
  0xc4   :  { %1195 = vmatmul.bf16.gmra.mxu1 %v1456_v27  ;;  %v1062_v34 = vpop.f32.mrf.mxu2  ;;  %v1539_v27 = vld [vmem:[%s2777_s0 + $0xf8] sm:$0xf] }
  0xc5   :  { %v1105_v33 = vpop.f32.mrf.mxu3  ;;  %1324 = vmatmul.bf16.gmra.mxu0 %v1468_v30  ;;  %v1063_v36 = vadd.f32 %v1062_v34, %v1020_v31  ;;  %v987_v30 = vadd.f32 %v2524_v51, %v2519_v48 }
  0xc7   :  { %v1106_v38 = vadd.f32 %v1105_v33, %v1063_v36  ;;  %v1532_v33 = vor.u32 %v1935_v24, %v1531_v23  ;;  %v1949_v24 = vld [vmem:[%s2777_s0 + $0x184] sm:$0xf] }
  0xc9   :  { %v1021_v37 = vpop.f32.mrf.mxu1  ;;  %v2606_v45 = vadd.f32 %v1148_v32, %v1106_v38  ;;  %v1528_v32 = vor.u32 %v1930_v20, %v1525_v22 }
  0xca   :  { %v1022_v39 = vadd.f32 %v1021_v37, %v979_v35  ;;  %v1150_v40 = vpop.f32.mrf.mxu0  ;;  %v1540_v35 = vor.u32 %v1936_v28, %v1539_v27  ;;  %v1948_v27 = vld [vmem:[%s2777_s0 + $0x17c] sm:$0xf] }
  0xcc   :  { %v1064_v57 = vpop.f32.mrf.mxu2 }
  0xcd   :  { %v1107_v46 = vpop.f32.mrf.mxu3  ;;  %v1065_v59 = vadd.f32 %v1064_v57, %v1022_v39  ;;  %v1561_v57 = vld [vmem:[%s2777_s0 + $0x154] sm:$0xf0] }
  0xcf   :  { %v1108_v0 = vadd.f32 %v1107_v46, %v1065_v59  ;;  %v1944_v59 = vld [vmem:[%s2777_s0 + $0x158] sm:$0xf0] }
  0xd1   :  { %v1024_v62 = vpop.f32.mrf.mxu1  ;;  %1243 = vmatmul.bf16.gmra.mxu2 %v1496_v61  ;;  %v2624_v4 = vadd.f32 %v1150_v40, %v1108_v0  ;;  %v1575_v61 = vld [vmem:[%s2777_s0 + $0x140] sm:$0xf]  ;;  %v992_v0 = vadd.f32 %v2524_v51, %v2561_v6 }
  0xd2   :  { %v1025_v1 = vadd.f32 %v1024_v62, %v982_v58  ;;  %1286 = vmatmul.bf16.gmra.mxu3 %v1500_v7  ;;  %v1153_v2 = vpop.f32.mrf.mxu0  ;;  %v1569_v7 = vld [vmem:[%s2777_s0 + $0x15c] sm:$0xf0]  ;;  %v1567_v58 = vld [vmem:[%s2777_s0 + $0x138] sm:$0xf]  ;;  %v1945_v62 = vld [vmem:[%s2777_s0 + $0x160] sm:$0xf0] }
  0xd4   :  { %1200 = vmatmul.bf16.gmra.mxu1 %v1492_v60  ;;  %v1067_v8 = vpop.f32.mrf.mxu2  ;;  %v1572_v60 = vor.u32 %v1940_v50, %v1569_v7 }
  0xd5   :  { %v1110_v5 = vpop.f32.mrf.mxu3  ;;  %1329 = vmatmul.bf16.gmra.mxu0 %v1504_v63  ;;  %v1068_v11 = vadd.f32 %v1067_v8, %v1025_v1 }
  0xd7   :  { %v1111_v15 = vadd.f32 %v1110_v5, %v1068_v11  ;;  %v1568_v5 = vor.u32 %v1944_v59, %v1567_v58  ;;  %v78_v58 = vld [vmem:[%s2777_s0 + $0x1d0] sm:$0x1]  ;;  %v405_v59 = vunpack.c.h.b16 %v2515_v41 }
  0xd9   :  { %v1026_v10 = vpop.f32.mrf.mxu1  ;;  %v2636_v21 = vadd.f32 %v1153_v2, %v1111_v15  ;;  %v1564_v2 = vor.u32 %v1939_v54, %v1561_v57 }
  0xda   :  { %v1027_v16 = vadd.f32 %v1026_v10, %v984_v9  ;;  %v1155_v17 = vpop.f32.mrf.mxu0  ;;  %v1576_v9 = vor.u32 %v1945_v62, %v1575_v61 }
  0xdc   :  { %v1069_v29 = vpop.f32.mrf.mxu2 }
  0xdd   :  { %v1112_v14 = vpop.f32.mrf.mxu3  ;;  %v1070_v31 = vadd.f32 %v1069_v29, %v1027_v16  ;;  %v1603_v29 = vld [vmem:[%s2777_s0 + $0x180] sm:$0xf] }
  0xdf   :  { %v1113_v36 = vadd.f32 %v1112_v14, %v1070_v31 }
  0xe1   :  { %v1029_v34 = vpop.f32.mrf.mxu1  ;;  %1248 = vmatmul.bf16.gmra.mxu2 %v1532_v33  ;;  %v2655_v39 = vadd.f32 %v1155_v17, %v1113_v36  ;;  %v1954_v33 = vld [vmem:[%s2777_s0 + $0x1a8] sm:$0xf0]  ;;  %v1600_v36 = vor.u32 %v1948_v27, %v1597_v13 }
  0xe2   :  { %v1030_v37 = vadd.f32 %v1029_v34, %v987_v30  ;;  %1291 = vmatmul.bf16.gmra.mxu3 %v1536_v25  ;;  %v1158_v38 = vpop.f32.mrf.mxu0  ;;  %v1605_v25 = vld [vmem:[%s2777_s0 + $0x1a4] sm:$0xf0]  ;;  %v1953_v30 = vld [vmem:[%s2777_s0 + $0x1a0] sm:$0xf0] }
  0xe3   :  { %v1608_v31 = vor.u32 %v1949_v24, %v1605_v25 }
  0xe4   :  { %1205 = vmatmul.bf16.gmra.mxu1 %v1528_v32  ;;  %v1072_v42 = vpop.f32.mrf.mxu2  ;;  %v1611_v32 = vld [vmem:[%s2777_s0 + $0x188] sm:$0xf] }
  0xe5   :  { %v1115_v40 = vpop.f32.mrf.mxu3  ;;  %1334 = vmatmul.bf16.gmra.mxu0 %v1540_v35  ;;  %v1073_v48 = vadd.f32 %v1072_v42, %v1030_v37  ;;  %v1604_v37 = vor.u32 %v1953_v30, %v1603_v29 }
  0xe7   :  { %v1116_v46 = vadd.f32 %v1115_v40, %v1073_v48  ;;  %v1612_v40 = vor.u32 %v1954_v33, %v1611_v32 }
  0xe9   :  { %v1031_v44 = vpop.f32.mrf.mxu1  ;;  %v2668_v55 = vadd.f32 %v1158_v38, %v1116_v46 }
  0xea   :  { %v1032_v47 = vadd.f32 %v1031_v44, %v989_v43  ;;  %v1160_v49 = vpop.f32.mrf.mxu0 }
  0xec   :  { %v1074_v63 = vpop.f32.mrf.mxu2 }
  0xed   :  { %v1117_v53 = vpop.f32.mrf.mxu3  ;;  %v1075_v1 = vadd.f32 %v1074_v63, %v1032_v47  ;;  %v408_v63 = vunpack.c.l.b16 %v78_v58 }
  0xef   :  { %v1118_v11 = vadd.f32 %v1117_v53, %v1075_v1 }
  0xf1   :  { %v1034_v8 = vpop.f32.mrf.mxu1  ;;  %1253 = vmatmul.bf16.gmra.mxu2 %v1568_v5  ;;  %v2687_v16 = vadd.f32 %v1160_v49, %v1118_v11  ;;  %v77_v49 = vld [vmem:[%s2777_s0 + $0x1c8] sm:$0x11]  ;;  %v468_v5 = vpack.c.b16 %v405_v59, %v405_v59 }
  0xf2   :  { %v1035_v10 = vadd.f32 %v1034_v8, %v992_v0  ;;  %1296 = vmatmul.bf16.gmra.mxu3 %v1572_v60  ;;  %v1163_v15 = vpop.f32.mrf.mxu0  ;;  %v406_v60 = vunpack.c.l.b16 %v77_v49 }
  0xf4   :  { %1210 = vmatmul.bf16.gmra.mxu1 %v1564_v2  ;;  %v1077_v18 = vpop.f32.mrf.mxu2  ;;  %v469_v8 = vpack.c.b16 %v406_v60, %v406_v60 }
  0xf5   :  { %v1120_v17 = vpop.f32.mrf.mxu3  ;;  %1339 = vmatmul.bf16.gmra.mxu0 %v1576_v9  ;;  %v1078_v6 = vadd.f32 %v1077_v18, %v1035_v10 }
  0xf7   :  { %v1121_v14 = vadd.f32 %v1120_v17, %v1078_v6 }
  0xf9   :  { %v1036_v20 = vpop.f32.mrf.mxu1  ;;  %v2700_v28 = vadd.f32 %v1163_v15, %v1121_v14 }
  0xfa   :  { %v1037_v22 = vadd.f32 %v1036_v20, %v994_v19  ;;  %v1165_v23 = vpop.f32.mrf.mxu0 }
  0xfc   :  { %v1079_v34 = vpop.f32.mrf.mxu2 }
  0xfd   :  { %v1122_v51 = vpop.f32.mrf.mxu3  ;;  %v1080_v35 = vadd.f32 %v1079_v34, %v1037_v22 }
  0xff   :  { %v1123_v42 = vadd.f32 %v1122_v51, %v1080_v35 }
 0x101   :  { %v1039_v38 = vpop.f32.mrf.mxu1  ;;  %1258 = vmatmul.bf16.gmra.mxu2 %v1604_v37  ;;  %v2718_v44 = vadd.f32 %v1165_v23, %v1123_v42 }
 0x102   :  { %v1040_v43 = vadd.f32 %v1039_v38, %v2527_v52  ;;  %1301 = vmatmul.bf16.gmra.mxu3 %v1608_v31  ;;  %v1168_v48 = vpop.f32.mrf.mxu0  ;;  %v407_v52 = vunpack.c.h.b16 %v77_v49 }
 0x104   :  { %1215 = vmatmul.bf16.gmra.mxu1 %v1600_v36  ;;  %v1082_v47 = vpop.f32.mrf.mxu2  ;;  %v470_v0 = vpack.c.b16 %v407_v52, %v407_v52 }
 0x105   :  { %v1125_v46 = vpop.f32.mrf.mxu3  ;;  %1344 = vmatmul.bf16.gmra.mxu0 %v1612_v40  ;;  %v1083_v50 = vadd.f32 %v1082_v47, %v1040_v43 }
 0x107   :  { %v1126_v54 = vadd.f32 %v1125_v46, %v1083_v50 }
 0x109   :  { %v1041_v7 = vpop.f32.mrf.mxu1  ;;  %v2728_v61 = vadd.f32 %v1168_v48, %v1126_v54 }
 0x10a   :  { %v1042_v53 = vadd.f32 %v1041_v7, %v2559_v3  ;;  %v1170_v57 = vpop.f32.mrf.mxu0  ;;  %v471_v3 = vpack.c.b16 %v408_v63, %v408_v63 }
 0x10c   :  { %v1084_v1 = vpop.f32.mrf.mxu2 }
 0x10d   :  { %v1127_v62 = vpop.f32.mrf.mxu3  ;;  %v1085_v2 = vadd.f32 %v1084_v1, %v1042_v53 }
 0x10f   :  { %v1128_v11 = vadd.f32 %v1127_v62, %v1085_v2 }
 0x111   :  { %v1044_v9 = vpop.f32.mrf.mxu1  ;;  %1263 = vmatmul.bf16.gmra.mxu2 %v469_v8  ;;  %v2731_v41 = vadd.f32 %v1170_v57, %v1128_v11 }
 0x112   :  { %v1045_v10 = vadd.f32 %v1044_v9, %v2564_v12  ;;  %1306 = vmatmul.bf16.gmra.mxu3 %v470_v0  ;;  %v1173_v15 = vpop.f32.mrf.mxu0 }
 0x114   :  { %1220 = vmatmul.bf16.gmra.mxu1 %v468_v5  ;;  %v1087_v18 = vpop.f32.mrf.mxu2 }
 0x115   :  { %v1130_v17 = vpop.f32.mrf.mxu3  ;;  %1349 = vmatmul.bf16.gmra.mxu0 %v471_v3  ;;  %v1088_v19 = vadd.f32 %v1087_v18, %v1045_v10 }
 0x117   :  { %v1131_v20 = vadd.f32 %v1130_v17, %v1088_v19 }
 0x119   :  { %v1046_v6 = vpop.f32.mrf.mxu1  ;;  %v2734_v23 = vadd.f32 %v1173_v15, %v1131_v20 }
 0x11a   :  { %v1047_v14 = vadd.f32 %v1046_v6, %v2594_v26  ;;  %v1175_v22 = vpop.f32.mrf.mxu0 }
 0x11c   :  { %v1089_v25 = vpop.f32.mrf.mxu2 }
 0x11d   :  { %v1132_v24 = vpop.f32.mrf.mxu3  ;;  %v1090_v12 = vadd.f32 %v1089_v25, %v1047_v14 }
 0x11f   :  { %v1133_v51 = vadd.f32 %v1132_v24, %v1090_v12 }
 0x121   :  { %v1049_v27 = vpop.f32.mrf.mxu1  ;;  %v2737_v30 = vadd.f32 %v1175_v22, %v1133_v51 }
 0x122   :  { %v1050_v13 = vadd.f32 %v1049_v27, %v2532_v56  ;;  %v1178_v29 = vpop.f32.mrf.mxu0 }
 0x124   :  { %v1092_v32 = vpop.f32.mrf.mxu2 }
 0x125   :  { %v1135_v31 = vpop.f32.mrf.mxu3  ;;  %v1093_v33 = vadd.f32 %v1092_v32, %v1050_v13 }
 0x127   :  { %v1136_v35 = vadd.f32 %v1135_v31, %v1093_v33 }
 0x129   :  { %v1051_v34 = vpop.f32.mrf.mxu1  ;;  %v2739_v26 = vadd.f32 %v1178_v29, %v1136_v35 }
 0x12a   :  { %v1180_v36 = vpop.f32.mrf.mxu0 }
 0x12c   :  { %v1094_v38 = vpop.f32.mrf.mxu2 }
 0x12d   :  { %v1137_v37 = vpop.f32.mrf.mxu3 }
 0x131   :  { %v1191_v40 = vpop.f32.mrf.mxu1 }
 0x132   :  { %v1320_v42 = vpop.f32.mrf.mxu0  ;;  %v1192_v46 = vadd.f32 %v1191_v40, %v2606_v45 }
 0x134   :  { %v1234_v48 = vpop.f32.mrf.mxu2 }
 0x135   :  { %v1277_v43 = vpop.f32.mrf.mxu3  ;;  %v1235_v47 = vadd.f32 %v1234_v48, %v1192_v46 }
 0x137   :  { %v1278_v7 = vadd.f32 %v1277_v43, %v1235_v47 }
 0x139   :  { %v1193_v56 = vpop.f32.mrf.mxu1  ;;  %v1321_v58 = vadd.f32 %v1320_v42, %v1278_v7 }
 0x13a   :  { %v1322_v49 = vpop.f32.mrf.mxu0  ;;  %v1194_v54 = vadd.f32 %v1193_v56, %v2624_v4 }
 0x13b   :  { %v1354_v0 = vmax.f32 %v1321_v58, 0.0 }
 0x13c   :  { %v1236_v53 = vpop.f32.mrf.mxu2 }
 0x13d   :  { %v1279_v50 = vpop.f32.mrf.mxu3  ;;  %v1237_v57 = vadd.f32 %v1236_v53, %v1194_v54 }
 0x13f   :  { %v1280_v59 = vadd.f32 %v1279_v50, %v1237_v57 }
 0x141   :  { %v1196_v52 = vpop.f32.mrf.mxu1  ;;  %v1323_v62 = vadd.f32 %v1322_v49, %v1280_v59 }
 0x142   :  { %v1325_v60 = vpop.f32.mrf.mxu0  ;;  %v1197_v45 = vadd.f32 %v1196_v52, %v2636_v21 }
 0x143   :  { %v1355_v1 = vmax.f32 %v1323_v62, 0.0 }
 0x144   :  { %v1239_v2 = vpop.f32.mrf.mxu2 }
 0x145   :  { %v1282_v63 = vpop.f32.mrf.mxu3  ;;  %v2030_v5 = vpack.c.bf16 %v1355_v1, %v1354_v0  ;;  %v1240_v4 = vadd.f32 %v1239_v2, %v1197_v45 }
 0x147   :  { %2031 = vst [vmem:[%s2778_s3] sm:$0xff] %v2030_v5   ;;  %v1283_v11 = vadd.f32 %v1282_v63, %v1240_v4 }
 0x149   :  { %v1198_v8 = vpop.f32.mrf.mxu1  ;;  %v1326_v19 = vadd.f32 %v1325_v60, %v1283_v11 }
 0x14a   :  { %v1327_v9 = vpop.f32.mrf.mxu0  ;;  %v1199_v10 = vadd.f32 %v1198_v8, %v2655_v39 }
 0x14b   :  { %v1356_v21 = vmax.f32 %v1326_v19, 0.0 }
 0x14c   :  { %v1241_v15 = vpop.f32.mrf.mxu2 }
 0x14d   :  { %v1284_v3 = vpop.f32.mrf.mxu3  ;;  %v1242_v17 = vadd.f32 %v1241_v15, %v1199_v10 }
 0x14f   :  { %v1285_v6 = vadd.f32 %v1284_v3, %v1242_v17 }
 0x151   :  { %v1201_v18 = vpop.f32.mrf.mxu1  ;;  %v1328_v14 = vadd.f32 %v1327_v9, %v1285_v6 }
 0x152   :  { %v1330_v20 = vpop.f32.mrf.mxu0  ;;  %v1202_v27 = vadd.f32 %v1201_v18, %v2668_v55 }
 0x153   :  { %v1357_v24 = vmax.f32 %v1328_v14, 0.0 }
 0x154   :  { %v1244_v25 = vpop.f32.mrf.mxu2 }
 0x155   :  { %v1287_v22 = vpop.f32.mrf.mxu3  ;;  %v2035_v12 = vpack.c.bf16 %v1357_v24, %v1356_v21  ;;  %v1245_v39 = vadd.f32 %v1244_v25, %v1202_v27 }
 0x157   :  { %2057 = vst [vmem:[%s2778_s3 + $0x8] sm:$0xff] %v2035_v12   ;;  %v1288_v31 = vadd.f32 %v1287_v22, %v1245_v39 }
 0x159   :  { %v1203_v51 = vpop.f32.mrf.mxu1  ;;  %v1331_v36 = vadd.f32 %v1330_v20, %v1288_v31 }
 0x15a   :  { %v1332_v13 = vpop.f32.mrf.mxu0  ;;  %v1204_v32 = vadd.f32 %v1203_v51, %v2687_v16 }
 0x15b   :  { %v1358_v55 = vmax.f32 %v1331_v36, 0.0 }
 0x15c   :  { %v1246_v33 = vpop.f32.mrf.mxu2 }
 0x15d   :  { %v1289_v29 = vpop.f32.mrf.mxu3  ;;  %v1247_v34 = vadd.f32 %v1246_v33, %v1204_v32 }
 0x15f   :  { %v1290_v37 = vadd.f32 %v1289_v29, %v1247_v34 }
 0x161   :  { %v1206_v35 = vpop.f32.mrf.mxu1  ;;  %v1333_v40 = vadd.f32 %v1332_v13, %v1290_v37 }
 0x162   :  { %v1335_v38 = vpop.f32.mrf.mxu0  ;;  %v1207_v56 = vadd.f32 %v1206_v35, %v2700_v28 }
 0x163   :  { %v1359_v43 = vmax.f32 %v1333_v40, 0.0 }
 0x164   :  { %v1249_v48 = vpop.f32.mrf.mxu2 }
 0x165   :  { %v1292_v42 = vpop.f32.mrf.mxu3  ;;  %v2040_v46 = vpack.c.bf16 %v1359_v43, %v1358_v55  ;;  %v1250_v16 = vadd.f32 %v1249_v48, %v1207_v56 }
 0x167   :  { %2058 = vst [vmem:[%s2778_s3 + $0x10] sm:$0xff] %v2040_v46   ;;  %v1293_v7 = vadd.f32 %v1292_v42, %v1250_v16 }
 0x169   :  { %v1208_v47 = vpop.f32.mrf.mxu1  ;;  %v1336_v58 = vadd.f32 %v1335_v38, %v1293_v7 }
 0x16a   :  { %v1337_v49 = vpop.f32.mrf.mxu0  ;;  %v1209_v54 = vadd.f32 %v1208_v47, %v2718_v44 }
 0x16b   :  { %v1360_v28 = vmax.f32 %v1336_v58, 0.0 }
 0x16c   :  { %v1251_v53 = vpop.f32.mrf.mxu2 }
 0x16d   :  { %v1294_v50 = vpop.f32.mrf.mxu3  ;;  %v1252_v57 = vadd.f32 %v1251_v53, %v1209_v54 }
 0x16f   :  { %v1295_v59 = vadd.f32 %v1294_v50, %v1252_v57 }
 0x171   :  { %v1211_v52 = vpop.f32.mrf.mxu1  ;;  %v1338_v62 = vadd.f32 %v1337_v49, %v1295_v59 }
 0x172   :  { %v1340_v60 = vpop.f32.mrf.mxu0  ;;  %v1212_v5 = vadd.f32 %v1211_v52, %v2728_v61 }
 0x173   :  { %v1361_v0 = vmax.f32 %v1338_v62, 0.0 }
 0x174   :  { %v1254_v1 = vpop.f32.mrf.mxu2 }
 0x175   :  { %v1297_v63 = vpop.f32.mrf.mxu3  ;;  %v2045_v2 = vpack.c.bf16 %v1361_v0, %v1360_v28  ;;  %v1255_v44 = vadd.f32 %v1254_v1, %v1212_v5 }
 0x177   :  { %2059 = vst [vmem:[%s2778_s3 + $0x18] sm:$0xff] %v2045_v2   ;;  %v1298_v9 = vadd.f32 %v1297_v63, %v1255_v44 }
 0x179   :  { %v1213_v45 = vpop.f32.mrf.mxu1  ;;  %v1341_v17 = vadd.f32 %v1340_v60, %v1298_v9 }
 0x17a   :  { %v1342_v8 = vpop.f32.mrf.mxu0  ;;  %v1214_v3 = vadd.f32 %v1213_v45, %v2731_v41 }
 0x17b   :  { %v1362_v61 = vmax.f32 %v1341_v17, 0.0 }
 0x17c   :  { %v1256_v11 = vpop.f32.mrf.mxu2 }
 0x17d   :  { %v1299_v4 = vpop.f32.mrf.mxu3  ;;  %v1257_v10 = vadd.f32 %v1256_v11, %v1214_v3 }
 0x17f   :  { %v1300_v18 = vadd.f32 %v1299_v4, %v1257_v10 }
 0x181   :  { %v1216_v15 = vpop.f32.mrf.mxu1  ;;  %v1343_v6 = vadd.f32 %v1342_v8, %v1300_v18 }
 0x182   :  { %v1345_v19 = vpop.f32.mrf.mxu0  ;;  %v1217_v24 = vadd.f32 %v1216_v15, %v2734_v23 }
 0x183   :  { %v1363_v14 = vmax.f32 %v1343_v6, 0.0 }
 0x184   :  { %v1259_v22 = vpop.f32.mrf.mxu2 }
 0x185   :  { %v1302_v20 = vpop.f32.mrf.mxu3  ;;  %v2050_v21 = vpack.c.bf16 %v1363_v14, %v1362_v61  ;;  %v1260_v41 = vadd.f32 %v1259_v22, %v1217_v24 }
 0x187   :  { %2060 = vst [vmem:[%s2778_s3 + $0x20] sm:$0xff] %v2050_v21   ;;  %v1303_v51 = vadd.f32 %v1302_v20, %v1260_v41 }
 0x189   :  { %v1218_v25 = vpop.f32.mrf.mxu1  ;;  %v1346_v32 = vadd.f32 %v1345_v19, %v1303_v51 }
 0x18a   :  { %v1347_v12 = vpop.f32.mrf.mxu0  ;;  %v1219_v39 = vadd.f32 %v1218_v25, %v2737_v30 }
 0x18b   :  { %v1364_v23 = vmax.f32 %v1346_v32, 0.0 }
 0x18c   :  { %v1261_v13 = vpop.f32.mrf.mxu2 }
 0x18d   :  { %v1304_v27 = vpop.f32.mrf.mxu3  ;;  %v1262_v29 = vadd.f32 %v1261_v13, %v1219_v39 }
 0x18f   :  { %v1305_v33 = vadd.f32 %v1304_v27, %v1262_v29 }
 0x191   :  { %v1221_v31 = vpop.f32.mrf.mxu1  ;;  %v1348_v35 = vadd.f32 %v1347_v12, %v1305_v33 }
 0x192   :  { %v1350_v34 = vpop.f32.mrf.mxu0  ;;  %v1222_v38 = vadd.f32 %v1221_v31, %v2739_v26 }
 0x193   :  { %v1365_v37 = vmax.f32 %v1348_v35, 0.0 }
 0x194   :  { %v1264_v40 = vpop.f32.mrf.mxu2 }
 0x195   :  { %v1307_v36 = vpop.f32.mrf.mxu3  ;;  %v2055_v42 = vpack.c.bf16 %v1365_v37, %v1364_v23  ;;  %v1265_v55 = vadd.f32 %v1264_v40, %v1222_v38 }
 0x197   :  { %2061 = vst [vmem:[%s2778_s3 + $0x28] sm:$0xff] %v2055_v42   ;;  %v1308_v30 = vadd.f32 %v1307_v36, %v1265_v55 }
 0x199   :  { %v1223_v43 = vpop.f32.mrf.mxu1  ;;  %v1351_v46 = vadd.f32 %v1350_v34, %v1308_v30 }
 0x19a   :  { %v1352_v48 = vpop.f32.mrf.mxu0 }
 0x19b   :  { %v1366_v47 = vmax.f32 %v1351_v46, 0.0 }
 0x19c   :  { %v1266_v16 = vpop.f32.mrf.mxu2 }
 0x19d   :  { %v1309_v56 = vpop.f32.mrf.mxu3  ;;  %v1379_v49 = vpack.c.bf16 %v1366_v47, %v1366_v47 }
 0x19f   :  { %1392 = vst [vmem:[%s2778_s3 + $0x30] sm:$0x1] %v1379_v49 }

// kernel: vgg11_feat_forward.9
= control target key start
LH: loop header
LB: loop body
LE: loop exit
PB: predicated region body
PF: predicated region fallthrough
CT: control target
= control target key end

     0   :  { %s1595_s1 = inlined_call_operand.vmem [shape: bf16[1152,128], index: 1, kind: input, shape index: {}]   ;;  %s1596_s2 = inlined_call_operand.vmem [shape: f32[1,128], index: 2, kind: input, shape index: {}]   ;;  %s1597_s0 = inlined_call_operand.vmem [shape: bf16[18,1152], index: 0, kind: input, shape index: {}]   ;;  %s1598_s3 = inlined_call_operand.vmem [shape: bf16[18,128], index: 3, kind: output, shape index: {}]  }
   0x1   :  { %v1202_v0 = vld [vmem:[%s1595_s1 + $0x38] sm:$0xff]  ;;  %v1201_v4 = vld [vmem:[%s1595_s1 + $0x30] sm:$0xff]  ;;  %v1200_v8 = vld [vmem:[%s1595_s1 + $0x28] sm:$0xff] }
   0x2   :  { %v1210_v1 = vld [vmem:[%s1595_s1 + $0x78] sm:$0xff]  ;;  %687 = vmatpush.bf16.msra.mxu0 %v1202_v0  ;;  %v1209_v5 = vld [vmem:[%s1595_s1 + $0x70] sm:$0xff]  ;;  %v1208_v9 = vld [vmem:[%s1595_s1 + $0x68] sm:$0xff] }
   0x3   :  { %v1218_v2 = vld [vmem:[%s1595_s1 + $0xb8] sm:$0xff]  ;;  %705 = vmatpush.bf16.msra.mxu1 %v1210_v1  ;;  %v1217_v6 = vld [vmem:[%s1595_s1 + $0xb0] sm:$0xff]  ;;  %v1216_v10 = vld [vmem:[%s1595_s1 + $0xa8] sm:$0xff] }
   0x4   :  { %v1226_v3 = vld [vmem:[%s1595_s1 + $0xf8] sm:$0xff]  ;;  %723 = vmatpush.bf16.msra.mxu2 %v1218_v2  ;;  %v1225_v7 = vld [vmem:[%s1595_s1 + $0xf0] sm:$0xff]  ;;  %v1224_v11 = vld [vmem:[%s1595_s1 + $0xe8] sm:$0xff] }
   0x5   :  { %741 = vmatpush.bf16.msra.mxu3 %v1226_v3  ;;  %v1199_v12 = vld [vmem:[%s1595_s1 + $0x20] sm:$0xff]  ;;  %v1198_v16 = vld [vmem:[%s1595_s1 + $0x18] sm:$0xff]  ;;  %v1197_v20 = vld [vmem:[%s1595_s1 + $0x10] sm:$0xff] }
   0x6   :  { %688 = vmatpush.bf16.msra.mxu0 %v1201_v4  ;;  %v1207_v13 = vld [vmem:[%s1595_s1 + $0x60] sm:$0xff]  ;;  %v1206_v17 = vld [vmem:[%s1595_s1 + $0x58] sm:$0xff]  ;;  %v1205_v21 = vld [vmem:[%s1595_s1 + $0x50] sm:$0xff] }
   0x7   :  { %706 = vmatpush.bf16.msra.mxu1 %v1209_v5  ;;  %v1215_v14 = vld [vmem:[%s1595_s1 + $0xa0] sm:$0xff]  ;;  %v1214_v18 = vld [vmem:[%s1595_s1 + $0x98] sm:$0xff]  ;;  %v1213_v22 = vld [vmem:[%s1595_s1 + $0x90] sm:$0xff] }
   0x8   :  { %724 = vmatpush.bf16.msra.mxu2 %v1217_v6  ;;  %v1223_v15 = vld [vmem:[%s1595_s1 + $0xe0] sm:$0xff]  ;;  %v1222_v19 = vld [vmem:[%s1595_s1 + $0xd8] sm:$0xff]  ;;  %v1221_v23 = vld [vmem:[%s1595_s1 + $0xd0] sm:$0xff] }
   0x9   :  { %742 = vmatpush.bf16.msra.mxu3 %v1225_v7  ;;  %v1196_v24 = vld [vmem:[%s1595_s1 + $0x8] sm:$0xff]  ;;  %v1195_v28 = vld [vmem:[%s1595_s1] sm:$0xff]  ;;  %v874_v39 = vld [vmem:[%s1597_s0 + $0x2c] sm:$0xf0] }
   0xa   :  { %689 = vmatpush.bf16.msra.mxu0 %v1200_v8  ;;  %v1204_v25 = vld [vmem:[%s1595_s1 + $0x48] sm:$0xff]  ;;  %v1203_v29 = vld [vmem:[%s1595_s1 + $0x40] sm:$0xff]  ;;  %v1234_v40 = vld [vmem:[%s1595_s1 + $0x138] sm:$0xff] }
   0xb   :  { %707 = vmatpush.bf16.msra.mxu1 %v1208_v9  ;;  %v1212_v26 = vld [vmem:[%s1595_s1 + $0x88] sm:$0xff]  ;;  %v1211_v30 = vld [vmem:[%s1595_s1 + $0x80] sm:$0xff]  ;;  %v1242_v41 = vld [vmem:[%s1595_s1 + $0x178] sm:$0xff] }
   0xc   :  { %725 = vmatpush.bf16.msra.mxu2 %v1216_v10  ;;  %v1220_v27 = vld [vmem:[%s1595_s1 + $0xc8] sm:$0xff]  ;;  %v1219_v31 = vld [vmem:[%s1595_s1 + $0xc0] sm:$0xff]  ;;  %v1250_v46 = vld [vmem:[%s1595_s1 + $0x1b8] sm:$0xff] }
   0xd   :  { %743 = vmatpush.bf16.msra.mxu3 %v1224_v11  ;;  %v864_v32 = vld [vmem:[%s1597_s0] sm:$0xf]  ;;  %v1190_v33 = vld [vmem:[%s1597_s0 + $0x20] sm:$0xf0]  ;;  %v866_v35 = vld [vmem:[%s1597_s0 + $0x24] sm:$0xf0] }
   0xe   :  { %690 = vmatpush.bf16.msra.mxu0 %v1199_v12  ;;  %v1186_v34 = vld [vmem:[%s1597_s0 + $0x4] sm:$0xf]  ;;  %v872_v36 = vld [vmem:[%s1597_s0 + $0x8] sm:$0xf]  ;;  %v1191_v37 = vld [vmem:[%s1597_s0 + $0x28] sm:$0xf0]  ;;  %v865_v42 = vor.u32 %v1190_v33, %v864_v32 }
   0xf   :  { %708 = vmatpush.bf16.msra.mxu1 %v1207_v13  ;;  %v1187_v38 = vld [vmem:[%s1597_s0 + $0xc] sm:$0xf]  ;;  %v869_v43 = vor.u32 %v1186_v34, %v866_v35  ;;  %v873_v44 = vor.u32 %v1191_v37, %v872_v36  ;;  %v1258_v47 = vld [vmem:[%s1595_s1 + $0x1f8] sm:$0xff]  ;;  %v1233_v48 = vld [vmem:[%s1595_s1 + $0x130] sm:$0xff] }
  0x10   :  { %726 = vmatpush.bf16.msra.mxu2 %v1215_v14  ;;  %v877_v45 = vor.u32 %v1187_v38, %v874_v39  ;;  %v1241_v49 = vld [vmem:[%s1595_s1 + $0x170] sm:$0xff]  ;;  %v1232_v52 = vld [vmem:[%s1595_s1 + $0x128] sm:$0xff]  ;;  %v1231_v58 = vld [vmem:[%s1595_s1 + $0x120] sm:$0xff] }
  0x11   :  { %744 = vmatpush.bf16.msra.mxu3 %v1223_v15  ;;  %v1249_v50 = vld [vmem:[%s1595_s1 + $0x1b0] sm:$0xff]  ;;  %v1240_v53 = vld [vmem:[%s1595_s1 + $0x168] sm:$0xff]  ;;  %v1239_v59 = vld [vmem:[%s1595_s1 + $0x160] sm:$0xff] }
  0x12   :  { %691 = vmatpush.bf16.msra.mxu0 %v1198_v16  ;;  %v1257_v51 = vld [vmem:[%s1595_s1 + $0x1f0] sm:$0xff]  ;;  %v24_v54 = vld [vmem:[%s1597_s0 + $0x48] sm:$0x11]  ;;  %v1247_v0 = vld [vmem:[%s1595_s1 + $0x1a0] sm:$0xff] }
  0x13   :  { %709 = vmatpush.bf16.msra.mxu1 %v1206_v17  ;;  %v1248_v55 = vld [vmem:[%s1595_s1 + $0x1a8] sm:$0xff]  ;;  %v25_v57 = vld [vmem:[%s1597_s0 + $0x50] sm:$0x11]  ;;  %v210_v60 = vunpack.c.l.b16 %v24_v54  ;;  %v211_v61 = vunpack.c.h.b16 %v24_v54  ;;  %v1255_v1 = vld [vmem:[%s1595_s1 + $0x1e0] sm:$0xff] }
  0x14   :  { %727 = vmatpush.bf16.msra.mxu2 %v1214_v18  ;;  %v1256_v56 = vld [vmem:[%s1595_s1 + $0x1e8] sm:$0xff]  ;;  %v212_v62 = vunpack.c.l.b16 %v25_v57  ;;  %v213_v63 = vunpack.c.h.b16 %v25_v57  ;;  %v1230_v2 = vld [vmem:[%s1595_s1 + $0x118] sm:$0xff]  ;;  %v1229_v10 = vld [vmem:[%s1595_s1 + $0x110] sm:$0xff] }
  0x15   :  { %745 = vmatpush.bf16.msra.mxu3 %v1222_v19  ;;  %v1238_v3 = vld [vmem:[%s1595_s1 + $0x158] sm:$0xff]  ;;  %v228_v4 = vpack.c.b16 %v210_v60, %v210_v60  ;;  %v229_v5 = vpack.c.b16 %v211_v61, %v211_v61  ;;  %v1237_v11 = vld [vmem:[%s1595_s1 + $0x150] sm:$0xff]  ;;  %v1228_v14 = vld [vmem:[%s1595_s1 + $0x108] sm:$0xff] }
  0x16   :  { %692 = vmatpush.bf16.msra.mxu0 %v1197_v20  ;;  %v230_v6 = vpack.c.b16 %v212_v62, %v212_v62  ;;  %v231_v7 = vpack.c.b16 %v213_v63, %v213_v63  ;;  %v1246_v8 = vld [vmem:[%s1595_s1 + $0x198] sm:$0xff]  ;;  %v1245_v12 = vld [vmem:[%s1595_s1 + $0x190] sm:$0xff]  ;;  %v1236_v15 = vld [vmem:[%s1595_s1 + $0x148] sm:$0xff] }
  0x17   :  { %710 = vmatpush.bf16.msra.mxu1 %v1205_v21  ;;  %v1254_v9 = vld [vmem:[%s1595_s1 + $0x1d8] sm:$0xff]  ;;  %v1253_v13 = vld [vmem:[%s1595_s1 + $0x1d0] sm:$0xff]  ;;  %v1244_v16 = vld [vmem:[%s1595_s1 + $0x188] sm:$0xff] }
  0x18   :  { %728 = vmatpush.bf16.msra.mxu2 %v1213_v22  ;;  %v1252_v17 = vld [vmem:[%s1595_s1 + $0x1c8] sm:$0xff]  ;;  %v1227_v18 = vld [vmem:[%s1595_s1 + $0x100] sm:$0xff]  ;;  %v880_v22 = vld [vmem:[%s1597_s0 + $0x10] sm:$0xf] }
  0x19   :  { %746 = vmatpush.bf16.msra.mxu3 %v1221_v23  ;;  %v1235_v19 = vld [vmem:[%s1595_s1 + $0x140] sm:$0xff]  ;;  %v1192_v23 = vld [vmem:[%s1597_s0 + $0x30] sm:$0xf0]  ;;  %v1264_v36 = vld [vmem:[%s1595_s1 + $0x228] sm:$0xff] }
  0x1a   :  { %693 = vmatpush.bf16.msra.mxu0 %v1196_v24  ;;  %v1243_v20 = vld [vmem:[%s1595_s1 + $0x180] sm:$0xff]  ;;  %v1266_v24 = vld [vmem:[%s1595_s1 + $0x238] sm:$0xff]  ;;  %v1265_v35 = vld [vmem:[%s1595_s1 + $0x230] sm:$0xff] }
  0x1b   :  { %711 = vmatpush.bf16.msra.mxu1 %v1204_v25  ;;  %v1251_v21 = vld [vmem:[%s1595_s1 + $0x1c0] sm:$0xff]  ;;  %v1188_v25 = vld [vmem:[%s1597_s0 + $0x14] sm:$0xf]  ;;  %v26_v37 = vld [vmem:[%s1597_s0 + $0x58] sm:$0x11] }
  0x1c   :  { %729 = vmatpush.bf16.msra.mxu2 %v1212_v26  ;;  %v882_v26 = vld [vmem:[%s1597_s0 + $0x34] sm:$0xf0]  ;;  %v1263_v38 = vld [vmem:[%s1595_s1 + $0x220] sm:$0xff] }
  0x1d   :  { %747 = vmatpush.bf16.msra.mxu3 %v1220_v27  ;;  %v888_v27 = vld [vmem:[%s1597_s0 + $0x18] sm:$0xf]  ;;  %v885_v32 = vor.u32 %v1188_v25, %v882_v26  ;;  %v27_v39 = vld [vmem:[%s1597_s0 + $0x60] sm:$0x11] }
  0x1e   :  { %694 = vmatpush.bf16.msra.mxu0 %v1195_v28  ;;  %v1193_v28 = vld [vmem:[%s1597_s0 + $0x38] sm:$0xf0]  ;;  %v896_v54 = vld [vmem:[%s1597_s0 + $0x20] sm:$0xf] }
  0x1f   :  { %712 = vmatpush.bf16.msra.mxu1 %v1203_v29  ;;  %v1189_v29 = vld [vmem:[%s1597_s0 + $0x1c] sm:$0xf]  ;;  %v889_v33 = vor.u32 %v1193_v28, %v888_v27 }
  0x20   :  { %730 = vmatpush.bf16.msra.mxu2 %v1211_v30  ;;  %v890_v30 = vld [vmem:[%s1597_s0 + $0x3c] sm:$0xf0] }
  0x21   :  { %748 = vmatpush.bf16.msra.mxu3 %v1219_v31  ;;  %695 = vmatmul.bf16.vlgmr.msra.gmra.mxu0 %v865_v42  ;;  %v881_v31 = vor.u32 %v1192_v23, %v880_v22  ;;  %v893_v34 = vor.u32 %v1189_v29, %v890_v30  ;;  %v216_v42 = vunpack.c.l.b16 %v27_v39 }
  0x22   :  { %759 = vmatpush.bf16.msrb.mxu0 %v1234_v40  ;;  %713 = vmatmul.bf16.vlgmr.msra.gmra.mxu1 %v869_v43  ;;  %v214_v40 = vunpack.c.l.b16 %v26_v37  ;;  %v217_v43 = vunpack.c.h.b16 %v27_v39 }
  0x23   :  { %777 = vmatpush.bf16.msrb.mxu1 %v1242_v41  ;;  %731 = vmatmul.bf16.vlgmr.msra.gmra.mxu2 %v873_v44  ;;  %v215_v41 = vunpack.c.h.b16 %v26_v37  ;;  %v1262_v44 = vld [vmem:[%s1595_s1 + $0x218] sm:$0xff] }
  0x24   :  { %749 = vmatmul.bf16.vlgmr.msra.gmra.mxu3 %v877_v45  ;;  %795 = vmatpush.bf16.msrb.mxu2 %v1250_v46  ;;  %v232_v45 = vpack.c.b16 %v214_v40, %v214_v40 }
  0x25   :  { %813 = vmatpush.bf16.msrb.mxu3 %v1258_v47  ;;  %v233_v46 = vpack.c.b16 %v215_v41, %v215_v41  ;;  %v234_v47 = vpack.c.b16 %v216_v42, %v216_v42 }
  0x26   :  { %760 = vmatpush.bf16.msrb.mxu0 %v1233_v48  ;;  %v235_v48 = vpack.c.b16 %v217_v43, %v217_v43 }
  0x27   :  { %778 = vmatpush.bf16.msrb.mxu1 %v1241_v49  ;;  %v1261_v49 = vld [vmem:[%s1595_s1 + $0x210] sm:$0xff] }
  0x28   :  { %796 = vmatpush.bf16.msrb.mxu2 %v1249_v50  ;;  %v1260_v50 = vld [vmem:[%s1595_s1 + $0x208] sm:$0xff] }
  0x29   :  { %814 = vmatpush.bf16.msrb.mxu3 %v1257_v51  ;;  %v28_v51 = vld [vmem:[%s1597_s0 + $0x68] sm:$0x1] }
  0x2a   :  { %761 = vmatpush.bf16.msrb.mxu0 %v1232_v52  ;;  %v1259_v52 = vld [vmem:[%s1595_s1 + $0x200] sm:$0xff] }
  0x2b   :  { %779 = vmatpush.bf16.msrb.mxu1 %v1240_v53  ;;  %v218_v53 = vunpack.c.l.b16 %v28_v51 }
  0x2c   :  { %797 = vmatpush.bf16.msrb.mxu2 %v1248_v55  ;;  %v1194_v55 = vld [vmem:[%s1597_s0 + $0x40] sm:$0xf0] }
  0x2d   :  { %815 = vmatpush.bf16.msrb.mxu3 %v1256_v56  ;;  %v897_v56 = vor.u32 %v1194_v55, %v896_v54  ;;  %v236_v57 = vpack.c.b16 %v218_v53, %v218_v53 }
  0x2e   :  { %762 = vmatpush.bf16.msrb.mxu0 %v1231_v58 }
  0x2f   :  { %780 = vmatpush.bf16.msrb.mxu1 %v1239_v59 }
  0x30   :  { %798 = vmatpush.bf16.msrb.mxu2 %v1247_v0 }
  0x31   :  { %816 = vmatpush.bf16.msrb.mxu3 %v1255_v1  ;;  %700 = vmatmul.bf16.gmra.mxu0 %v228_v4 }
  0x32   :  { %763 = vmatpush.bf16.msrb.mxu0 %v1230_v2  ;;  %718 = vmatmul.bf16.gmra.mxu1 %v229_v5 }
  0x33   :  { %781 = vmatpush.bf16.msrb.mxu1 %v1238_v3  ;;  %736 = vmatmul.bf16.gmra.mxu2 %v230_v6 }
  0x34   :  { %754 = vmatmul.bf16.gmra.mxu3 %v231_v7  ;;  %799 = vmatpush.bf16.msrb.mxu2 %v1246_v8 }
  0x35   :  { %817 = vmatpush.bf16.msrb.mxu3 %v1254_v9 }
  0x36   :  { %764 = vmatpush.bf16.msrb.mxu0 %v1229_v10 }
  0x37   :  { %782 = vmatpush.bf16.msrb.mxu1 %v1237_v11 }
  0x38   :  { %800 = vmatpush.bf16.msrb.mxu2 %v1245_v12  ;;  %v1280_v12 = vld [vmem:[%s1596_s2] ss:$0 sm:$0xff] }
  0x39   :  { %818 = vmatpush.bf16.msrb.mxu3 %v1253_v13 }
  0x3a   :  { %765 = vmatpush.bf16.msrb.mxu0 %v1228_v14 }
  0x3b   :  { %783 = vmatpush.bf16.msrb.mxu1 %v1236_v15 }
  0x3c   :  { %801 = vmatpush.bf16.msrb.mxu2 %v1244_v16 }
  0x3d   :  { %819 = vmatpush.bf16.msrb.mxu3 %v1252_v17 }
  0x3e   :  { %766 = vmatpush.bf16.msrb.mxu0 %v1227_v18 }
  0x3f   :  { %784 = vmatpush.bf16.msrb.mxu1 %v1235_v19 }
  0x40   :  { %802 = vmatpush.bf16.msrb.mxu2 %v1243_v20 }
  0x41   :  { %820 = vmatpush.bf16.msrb.mxu3 %v1251_v21  ;;  %767 = vmatmul.bf16.vlgmr.msrb.gmra.mxu0 %v881_v31 }
  0x42   :  { %831 = vmatpush.bf16.msra.mxu0 %v1266_v24  ;;  %785 = vmatmul.bf16.vlgmr.msrb.gmra.mxu1 %v885_v32 }
  0x43   :  { %1272 = vmatpush.bf16.msra.mxu1 %v1266_v24  ;;  %803 = vmatmul.bf16.vlgmr.msrb.gmra.mxu2 %v889_v33 }
  0x44   :  { %821 = vmatmul.bf16.vlgmr.msrb.gmra.mxu3 %v893_v34 }
  0x46   :  { %832 = vmatpush.bf16.msra.mxu0 %v1265_v35 }
  0x47   :  { %1273 = vmatpush.bf16.msra.mxu1 %v1265_v35 }
  0x4a   :  { %833 = vmatpush.bf16.msra.mxu0 %v1264_v36 }
  0x4b   :  { %1274 = vmatpush.bf16.msra.mxu1 %v1264_v36 }
  0x4e   :  { %834 = vmatpush.bf16.msra.mxu0 %v1263_v38 }
  0x4f   :  { %1275 = vmatpush.bf16.msra.mxu1 %v1263_v38 }
  0x51   :  { %772 = vmatmul.bf16.gmra.mxu0 %v232_v45 }
  0x52   :  { %835 = vmatpush.bf16.msra.mxu0 %v1262_v44  ;;  %790 = vmatmul.bf16.gmra.mxu1 %v233_v46 }
  0x53   :  { %1276 = vmatpush.bf16.msra.mxu1 %v1262_v44  ;;  %808 = vmatmul.bf16.gmra.mxu2 %v234_v47 }
  0x54   :  { %826 = vmatmul.bf16.gmra.mxu3 %v235_v48 }
  0x56   :  { %836 = vmatpush.bf16.msra.mxu0 %v1261_v49 }
  0x57   :  { %1277 = vmatpush.bf16.msra.mxu1 %v1261_v49 }
  0x5a   :  { %837 = vmatpush.bf16.msra.mxu0 %v1260_v50 }
  0x5b   :  { %1278 = vmatpush.bf16.msra.mxu1 %v1260_v50 }
  0x5e   :  { %838 = vmatpush.bf16.msra.mxu0 %v1259_v52 }
  0x5f   :  { %1279 = vmatpush.bf16.msra.mxu1 %v1259_v52 }
  0x61   :  { %839 = vmatmul.bf16.vlgmr.msra.gmra.mxu0 %v897_v56 }
  0x62   :  { %844 = vmatmul.bf16.vlgmr.msra.gmra.mxu1 %v236_v57 }
  0x9e   :  { %v696_v58 = vpop.f32.mrf.mxu0 }
  0x9f   :  { %v714_v59 = vpop.f32.mrf.mxu1  ;;  %v697_v19 = vadd.f32 %v1280_v12, %v696_v58 }
  0xa1   :  { %v715_v26 = vadd.f32 %v714_v59, %v697_v19 }
  0xa6   :  { %v732_v60 = vpop.f32.mrf.mxu2  ;;  %v698_v62 = vpop.f32.mrf.mxu0 }
  0xa7   :  { %v750_v61 = vpop.f32.mrf.mxu3  ;;  %v716_v63 = vpop.f32.mrf.mxu1  ;;  %v699_v25 = vadd.f32 %v1280_v12, %v698_v62  ;;  %v733_v28 = vadd.f32 %v732_v60, %v715_v26 }
  0xa9   :  { %v717_v29 = vadd.f32 %v716_v63, %v699_v25  ;;  %v751_v36 = vadd.f32 %v750_v61, %v733_v28 }
  0xae   :  { %v734_v0 = vpop.f32.mrf.mxu2  ;;  %v701_v2 = vpop.f32.mrf.mxu0 }
  0xaf   :  { %v752_v1 = vpop.f32.mrf.mxu3  ;;  %v719_v3 = vpop.f32.mrf.mxu1  ;;  %v702_v17 = vadd.f32 %v1280_v12, %v701_v2  ;;  %v735_v31 = vadd.f32 %v734_v0, %v717_v29 }
  0xb1   :  { %v720_v18 = vadd.f32 %v719_v3, %v702_v17  ;;  %v753_v38 = vadd.f32 %v752_v1, %v735_v31 }
  0xb6   :  { %v737_v4 = vpop.f32.mrf.mxu2  ;;  %v703_v6 = vpop.f32.mrf.mxu0 }
  0xb7   :  { %v755_v5 = vpop.f32.mrf.mxu3  ;;  %v721_v7 = vpop.f32.mrf.mxu1  ;;  %v738_v20 = vadd.f32 %v737_v4, %v720_v18 }
  0xb9   :  { %v756_v27 = vadd.f32 %v755_v5, %v738_v20 }
  0xbe   :  { %v739_v8 = vpop.f32.mrf.mxu2  ;;  %v768_v10 = vpop.f32.mrf.mxu0 }
  0xbf   :  { %v757_v9 = vpop.f32.mrf.mxu3  ;;  %v786_v11 = vpop.f32.mrf.mxu1  ;;  %v769_v39 = vadd.f32 %v768_v10, %v751_v36 }
  0xc1   :  { %v787_v42 = vadd.f32 %v786_v11, %v769_v39 }
  0xc6   :  { %v804_v13 = vpop.f32.mrf.mxu2  ;;  %v770_v15 = vpop.f32.mrf.mxu0 }
  0xc7   :  { %v822_v14 = vpop.f32.mrf.mxu3  ;;  %v788_v16 = vpop.f32.mrf.mxu1  ;;  %v771_v41 = vadd.f32 %v770_v15, %v753_v38  ;;  %v805_v48 = vadd.f32 %v804_v13, %v787_v42 }
  0xc9   :  { %v789_v49 = vadd.f32 %v788_v16, %v771_v41  ;;  %v823_v53 = vadd.f32 %v822_v14, %v805_v48 }
  0xce   :  { %v806_v21 = vpop.f32.mrf.mxu2  ;;  %v773_v23 = vpop.f32.mrf.mxu0 }
  0xcf   :  { %v824_v22 = vpop.f32.mrf.mxu3  ;;  %v791_v24 = vpop.f32.mrf.mxu1  ;;  %v774_v30 = vadd.f32 %v773_v23, %v756_v27  ;;  %v807_v51 = vadd.f32 %v806_v21, %v789_v49 }
  0xd1   :  { %v792_v37 = vadd.f32 %v791_v24, %v774_v30  ;;  %v825_v55 = vadd.f32 %v824_v22, %v807_v51 }
  0xd6   :  { %v809_v32 = vpop.f32.mrf.mxu2  ;;  %v775_v34 = vpop.f32.mrf.mxu0 }
  0xd7   :  { %v827_v33 = vpop.f32.mrf.mxu3  ;;  %v793_v35 = vpop.f32.mrf.mxu1  ;;  %v810_v40 = vadd.f32 %v809_v32, %v792_v37 }
  0xd9   :  { %v828_v43 = vadd.f32 %v827_v33, %v810_v40 }
  0xde   :  { %v811_v44 = vpop.f32.mrf.mxu2  ;;  %v840_v46 = vpop.f32.mrf.mxu0 }
  0xdf   :  { %v829_v45 = vpop.f32.mrf.mxu3  ;;  %v845_v47 = vpop.f32.mrf.mxu1  ;;  %v841_v56 = vadd.f32 %v840_v46, %v823_v53 }
  0xe0   :  { %v846_v50 = vadd.f32 %v845_v47, %v828_v43 }
  0xe1   :  { %v849_v60 = vmax.f32 %v841_v56, 0.0 }
  0xe2   :  { %v851_v52 = vmax.f32 %v846_v50, 0.0 }
  0xe4   :  { %v854_v54 = vpack.c.bf16 %v851_v52, %v851_v52 }
  0xe6   :  { %857 = vst [vmem:[%s1598_s3 + $0x8] sm:$0x1] %v854_v54  ;;  %v842_v57 = vpop.f32.mrf.mxu0 }
  0xe7   :  { %v847_v58 = vpop.f32.mrf.mxu1  ;;  %v843_v59 = vadd.f32 %v842_v57, %v825_v55 }
  0xe9   :  { %v850_v61 = vmax.f32 %v843_v59, 0.0 }
  0xeb   :  { %v1270_v62 = vpack.c.bf16 %v850_v61, %v849_v60 }
  0xed   :  { %1271 = vst [vmem:[%s1598_s3] sm:$0xff] %v1270_v62  }

// kernel: vgg11_feat_forward.11
= control target key start
LH: loop header
LB: loop body
LE: loop exit
PB: predicated region body
PF: predicated region fallthrough
CT: control target
= control target key end

     0   :  { %s3807_s0 = inlined_call_operand.vmem [shape: bf16[2,1152], index: 0, kind: input, shape index: {}]   ;;  %s3808_s1 = inlined_call_operand.vmem [shape: bf16[1152,128], index: 1, kind: input, shape index: {}]   ;;  %s3809_s2 = inlined_call_operand.vmem [shape: f32[1,128], index: 2, kind: input, shape index: {}]   ;;  %s3810_s3 = inlined_call_operand.vmem [shape: bf16[128,1024], index: 3, kind: input, shape index: {}]   ;;  %s3811_s4 = inlined_call_operand.vmem [shape: f32[1,1024], index: 4, kind: input, shape index: {}]   ;;  %s3812_s5 = inlined_call_operand.vmem [shape: bf16[1024,128], index: 5, kind: input, shape index: {}]   ;;  %s3813_s6 = inlined_call_operand.vmem [shape: f32[1,128], index: 6, kind: input, shape index: {}]   ;;  %s3814_s7 = inlined_call_operand.hbm [shape: f32[2,128], index: 7, kind: output, shape index: {}]  }
   0x1   :  { %v2716_v0 = vld [vmem:[%s3808_s1 + $0x38] sm:$0xff]  ;;  %v2715_v4 = vld [vmem:[%s3808_s1 + $0x30] sm:$0xff]  ;;  %v2714_v8 = vld [vmem:[%s3808_s1 + $0x28] sm:$0xff] }
   0x2   :  { %v2732_v1 = vld [vmem:[%s3808_s1 + $0xb8] sm:$0xff]  ;;  %631 = vmatpush.bf16.msra.mxu0 %v2716_v0  ;;  %v2731_v5 = vld [vmem:[%s3808_s1 + $0xb0] sm:$0xff]  ;;  %v2730_v9 = vld [vmem:[%s3808_s1 + $0xa8] sm:$0xff] }
   0x3   :  { %v2740_v2 = vld [vmem:[%s3808_s1 + $0xf8] sm:$0xff]  ;;  %657 = vmatpush.bf16.msra.mxu2 %v2732_v1  ;;  %v2739_v6 = vld [vmem:[%s3808_s1 + $0xf0] sm:$0xff]  ;;  %v2738_v10 = vld [vmem:[%s3808_s1 + $0xe8] sm:$0xff] }
   0x4   :  { %v2724_v3 = vld [vmem:[%s3808_s1 + $0x78] sm:$0xff]  ;;  %670 = vmatpush.bf16.msra.mxu3 %v2740_v2  ;;  %v2723_v7 = vld [vmem:[%s3808_s1 + $0x70] sm:$0xff]  ;;  %v2722_v11 = vld [vmem:[%s3808_s1 + $0x68] sm:$0xff] }
   0x5   :  { %644 = vmatpush.bf16.msra.mxu1 %v2724_v3  ;;  %v2713_v12 = vld [vmem:[%s3808_s1 + $0x20] sm:$0xff]  ;;  %v2712_v16 = vld [vmem:[%s3808_s1 + $0x18] sm:$0xff]  ;;  %v2711_v21 = vld [vmem:[%s3808_s1 + $0x10] sm:$0xff] }
   0x6   :  { %632 = vmatpush.bf16.msra.mxu0 %v2715_v4  ;;  %v2729_v13 = vld [vmem:[%s3808_s1 + $0xa0] sm:$0xff]  ;;  %v2728_v17 = vld [vmem:[%s3808_s1 + $0x98] sm:$0xff]  ;;  %v2727_v22 = vld [vmem:[%s3808_s1 + $0x90] sm:$0xff] }
   0x7   :  { %658 = vmatpush.bf16.msra.mxu2 %v2731_v5  ;;  %v2737_v14 = vld [vmem:[%s3808_s1 + $0xe0] sm:$0xff]  ;;  %v2736_v18 = vld [vmem:[%s3808_s1 + $0xd8] sm:$0xff] }
   0x8   :  { %671 = vmatpush.bf16.msra.mxu3 %v2739_v6  ;;  %v2721_v15 = vld [vmem:[%s3808_s1 + $0x60] sm:$0xff]  ;;  %v2720_v19 = vld [vmem:[%s3808_s1 + $0x58] sm:$0xff] }
   0x9   :  { %645 = vmatpush.bf16.msra.mxu1 %v2723_v7  ;;  %v27_v20 = vld [vmem:[%s3807_s0] sm:$0xff] }
   0xa   :  { %633 = vmatpush.bf16.msra.mxu0 %v2714_v8  ;;  %178 = vst [vmem:[#allocation1] ss:$9 sm:$0xff] %v27_v20 }
   0xb   :  { %659 = vmatpush.bf16.msra.mxu2 %v2730_v9 }
   0xc   :  { %672 = vmatpush.bf16.msra.mxu3 %v2738_v10 }
   0xd   :  { %646 = vmatpush.bf16.msra.mxu1 %v2722_v11 }
   0xe   :  { %634 = vmatpush.bf16.msra.mxu0 %v2713_v12 }
   0xf   :  { %660 = vmatpush.bf16.msra.mxu2 %v2729_v13 }
  0x10   :  { %673 = vmatpush.bf16.msra.mxu3 %v2737_v14 }
  0x11   :  { %647 = vmatpush.bf16.msra.mxu1 %v2721_v15 }
  0x12   :  { %635 = vmatpush.bf16.msra.mxu0 %v2712_v16 }
  0x13   :  { %661 = vmatpush.bf16.msra.mxu2 %v2728_v17 }
  0x14   :  { %12 = vsyncpa [#allocation3], 0  ;;  %674 = vmatpush.bf16.msra.mxu3 %v2736_v18  ;;  %v2735_v23 = vld [vmem:[%s3808_s1 + $0xd0] sm:$0xff]  ;;  %v2710_v25 = vld [vmem:[%s3808_s1 + $0x8] sm:$0xff]  ;;  %s2938_s8 = smov [#allocation2]   ;;  %s1900_s11 = sshll.u32 %s3814_s7, 4  ;;  %s1901_s11 = int_to_ptr.hbm [resolvable:$true] %s1900_s11 }
  0x15   :  { %648 = vmatpush.bf16.msra.mxu1 %v2720_v19  ;;  %v2719_v24 = vld [vmem:[%s3808_s1 + $0x50] sm:$0xff]  ;;  %v2726_v26 = vld [vmem:[%s3808_s1 + $0x88] sm:$0xff]  ;;  %v2709_v29 = vld [vmem:[%s3808_s1] sm:$0xff]  ;;  %s1898_s9 = sshll.u32 %s2938_s8, 4  ;;  %s1899_s9 = int_to_ptr.vmem [resolvable:$true] %s1898_s9 }
  0x16   :  { %636 = vmatpush.bf16.msra.mxu0 %v2711_v21  ;;  %v2734_v27 = vld [vmem:[%s3808_s1 + $0xc8] sm:$0xff]  ;;  %v2725_v30 = vld [vmem:[%s3808_s1 + $0x80] sm:$0xff]  ;;  %v2748_v31 = vld [vmem:[%s3808_s1 + $0x138] sm:$0xff] }
  0x17   :  { %662 = vmatpush.bf16.msra.mxu2 %v2727_v22  ;;  %v2718_v28 = vld [vmem:[%s3808_s1 + $0x48] sm:$0xff]  ;;  %v2764_v32 = vld [vmem:[%s3808_s1 + $0x1b8] sm:$0xff]  ;;  %v2733_v33 = vld [vmem:[%s3808_s1 + $0xc0] sm:$0xff] }
  0x18   :  { %675 = vmatpush.bf16.msra.mxu3 %v2735_v23  ;;  %v2717_v34 = vld [vmem:[%s3808_s1 + $0x40] sm:$0xff]  ;;  %v2772_v35 = vld [vmem:[%s3808_s1 + $0x1f8] sm:$0xff]  ;;  %v2747_v37 = vld [vmem:[%s3808_s1 + $0x130] sm:$0xff] }
  0x19   :  { %649 = vmatpush.bf16.msra.mxu1 %v2719_v24  ;;  %v2756_v36 = vld [vmem:[%s3808_s1 + $0x178] sm:$0xff]  ;;  %v2763_v38 = vld [vmem:[%s3808_s1 + $0x1b0] sm:$0xff]  ;;  %v179_v40 = vld [vmem:[#allocation1] sm:$0xff] }
  0x1a   :  { %637 = vmatpush.bf16.msra.mxu0 %v2710_v25  ;;  %v181_v39 = vld [vmem:[#allocation1 + $0x12] sm:$0xff]  ;;  %v182_v43 = vld [vmem:[#allocation1 + $0x1b] sm:$0xff]  ;;  %v180_v44 = vld [vmem:[#allocation1 + $0x9] sm:$0xff] }
  0x1b   :  { %663 = vmatpush.bf16.msra.mxu2 %v2726_v26  ;;  %v2771_v41 = vld [vmem:[%s3808_s1 + $0x1f0] sm:$0xff]  ;;  %v2746_v45 = vld [vmem:[%s3808_s1 + $0x128] sm:$0xff]  ;;  %v186_v49 = vld [vmem:[#allocation1 + $0x3f] sm:$0xff] }
  0x1c   :  { %676 = vmatpush.bf16.msra.mxu3 %v2734_v27  ;;  %v2755_v42 = vld [vmem:[%s3808_s1 + $0x170] sm:$0xff]  ;;  %v2762_v46 = vld [vmem:[%s3808_s1 + $0x1a8] sm:$0xff]  ;;  %v2745_v54 = vld [vmem:[%s3808_s1 + $0x120] sm:$0xff] }
  0x1d   :  { %650 = vmatpush.bf16.msra.mxu1 %v2718_v28  ;;  %v185_v47 = vld [vmem:[#allocation1 + $0x36] sm:$0xff]  ;;  %v183_v48 = vld [vmem:[#allocation1 + $0x24] sm:$0xff]  ;;  %v184_v51 = vld [vmem:[#allocation1 + $0x2d] sm:$0xff] }
  0x1e   :  { %638 = vmatpush.bf16.msra.mxu0 %v2709_v29  ;;  %v28_v50 = vld [vmem:[%s3807_s0 + $0x8] sm:$0x1]  ;;  %v2761_v55 = vld [vmem:[%s3808_s1 + $0x1a0] sm:$0xff]  ;;  %v2744_v58 = vld [vmem:[%s3808_s1 + $0x118] sm:$0xff] }
  0x1f   :  { %664 = vmatpush.bf16.msra.mxu2 %v2725_v30  ;;  %v2770_v52 = vld [vmem:[%s3808_s1 + $0x1e8] sm:$0xff]  ;;  %188 = vst [vmem:[#allocation1] ss:$9 sm:$0xff] %v28_v50  ;;  %v2769_v56 = vld [vmem:[%s3808_s1 + $0x1e0] sm:$0xff]  ;;  %v2760_v59 = vld [vmem:[%s3808_s1 + $0x198] sm:$0xff] }
  0x20   :  { %677 = vmatpush.bf16.msra.mxu3 %v2733_v33  ;;  %v2754_v53 = vld [vmem:[%s3808_s1 + $0x168] sm:$0xff]  ;;  %v2753_v57 = vld [vmem:[%s3808_s1 + $0x160] sm:$0xff]  ;;  %v2768_v60 = vld [vmem:[%s3808_s1 + $0x1d8] sm:$0xff] }
  0x21   :  { %651 = vmatpush.bf16.msra.mxu1 %v2717_v34  ;;  %639 = vmatmul.bf16.vlgmr.msra.gmra.mxu0 %v179_v40  ;;  %v2752_v61 = vld [vmem:[%s3808_s1 + $0x158] sm:$0xff]  ;;  %v2743_v62 = vld [vmem:[%s3808_s1 + $0x110] sm:$0xff]  ;;  %v2742_v2 = vld [vmem:[%s3808_s1 + $0x108] sm:$0xff] }
  0x22   :  { %683 = vmatpush.bf16.msrb.mxu0 %v2748_v31  ;;  %665 = vmatmul.bf16.vlgmr.msra.gmra.mxu2 %v181_v39  ;;  %v2759_v63 = vld [vmem:[%s3808_s1 + $0x190] sm:$0xff]  ;;  %v2758_v3 = vld [vmem:[%s3808_s1 + $0x188] sm:$0xff]  ;;  %v2741_v6 = vld [vmem:[%s3808_s1 + $0x100] sm:$0xff] }
  0x23   :  { %709 = vmatpush.bf16.msrb.mxu2 %v2764_v32  ;;  %678 = vmatmul.bf16.vlgmr.msra.gmra.mxu3 %v182_v43  ;;  %v2767_v0 = vld [vmem:[%s3808_s1 + $0x1d0] sm:$0xff]  ;;  %v2766_v4 = vld [vmem:[%s3808_s1 + $0x1c8] sm:$0xff]  ;;  %v2757_v7 = vld [vmem:[%s3808_s1 + $0x180] sm:$0xff] }
  0x24   :  { %722 = vmatpush.bf16.msrb.mxu3 %v2772_v35  ;;  %652 = vmatmul.bf16.vlgmr.msra.gmra.mxu1 %v180_v44  ;;  %v2751_v1 = vld [vmem:[%s3808_s1 + $0x150] sm:$0xff]  ;;  %v2750_v5 = vld [vmem:[%s3808_s1 + $0x148] sm:$0xff]  ;;  %v2780_v8 = vld [vmem:[%s3808_s1 + $0x238] sm:$0xff] }
  0x25   :  { %696 = vmatpush.bf16.msrb.mxu1 %v2756_v36  ;;  %v2765_v9 = vld [vmem:[%s3808_s1 + $0x1c0] sm:$0xff]  ;;  %v2779_v11 = vld [vmem:[%s3808_s1 + $0x230] sm:$0xff]  ;;  %v2778_v12 = vld [vmem:[%s3808_s1 + $0x228] sm:$0xff] }
  0x26   :  { %684 = vmatpush.bf16.msrb.mxu0 %v2747_v37  ;;  %v2749_v10 = vld [vmem:[%s3808_s1 + $0x140] sm:$0xff]  ;;  %v2776_v14 = vld [vmem:[%s3808_s1 + $0x218] sm:$0xff]  ;;  %v2775_v15 = vld [vmem:[%s3808_s1 + $0x210] sm:$0xff] }
  0x27   :  { %710 = vmatpush.bf16.msrb.mxu2 %v2763_v38  ;;  %v2777_v13 = vld [vmem:[%s3808_s1 + $0x220] sm:$0xff]  ;;  %v2774_v16 = vld [vmem:[%s3808_s1 + $0x208] sm:$0xff] }
  0x28   :  { %723 = vmatpush.bf16.msrb.mxu3 %v2771_v41  ;;  %v2773_v17 = vld [vmem:[%s3808_s1 + $0x200] sm:$0xff]  ;;  %v2431_v24 = vld [vmem:[%s3810_s3 + $0x1c8] sm:$0xf]  ;;  %v2838_v28 = vld [vmem:[%s3810_s3 + $0x1cc] sm:$0xf] }
  0x29   :  { %697 = vmatpush.bf16.msrb.mxu1 %v2755_v42  ;;  %v189_v18 = vld [vmem:[#allocation1] sm:$0xff]  ;;  %v2842_v25 = vld [vmem:[%s3810_s3 + $0x1e4] sm:$0xf0]  ;;  %v2433_v29 = vld [vmem:[%s3810_s3 + $0x1e8] sm:$0xf0] }
  0x2a   :  { %685 = vmatpush.bf16.msrb.mxu0 %v2746_v45  ;;  %v2423_v19 = vld [vmem:[%s3810_s3 + $0x1c0] sm:$0xf]  ;;  %v2837_v21 = vld [vmem:[%s3810_s3 + $0x1c4] sm:$0xf]  ;;  %v2432_v27 = vor.u32 %v2842_v25, %v2431_v24  ;;  %v2436_v30 = vor.u32 %v2838_v28, %v2433_v29  ;;  %v2399_v36 = vld [vmem:[%s3810_s3 + $0x188] sm:$0xf] }
  0x2b   :  { %711 = vmatpush.bf16.msrb.mxu2 %v2762_v46  ;;  %v2841_v20 = vld [vmem:[%s3810_s3 + $0x1dc] sm:$0xf0]  ;;  %v2425_v23 = vld [vmem:[%s3810_s3 + $0x1e0] sm:$0xf0]  ;;  %v2834_v37 = vld [vmem:[%s3810_s3 + $0x1a4] sm:$0xf0] }
  0x2c   :  { %724 = vmatpush.bf16.msrb.mxu3 %v2770_v52  ;;  %v2424_v22 = vor.u32 %v2841_v20, %v2423_v19  ;;  %v2428_v26 = vor.u32 %v2837_v21, %v2425_v23  ;;  %v2391_v31 = vld [vmem:[%s3810_s3 + $0x180] sm:$0xf]  ;;  %v2829_v33 = vld [vmem:[%s3810_s3 + $0x184] sm:$0xf]  ;;  %v2400_v39 = vor.u32 %v2834_v37, %v2399_v36  ;;  %v2830_v40 = vld [vmem:[%s3810_s3 + $0x18c] sm:$0xf] }
  0x2d   :  { %698 = vmatpush.bf16.msrb.mxu1 %v2754_v53  ;;  %v2833_v32 = vld [vmem:[%s3810_s3 + $0x19c] sm:$0xf0]  ;;  %v2393_v35 = vld [vmem:[%s3810_s3 + $0x1a0] sm:$0xf0]  ;;  %v2401_v41 = vld [vmem:[%s3810_s3 + $0x1a8] sm:$0xf0] }
  0x2e   :  { %686 = vmatpush.bf16.msrb.mxu0 %v2745_v54  ;;  %v2392_v34 = vor.u32 %v2833_v32, %v2391_v31  ;;  %v2396_v38 = vor.u32 %v2829_v33, %v2393_v35  ;;  %v2359_v42 = vld [vmem:[%s3810_s3 + $0x140] sm:$0xf]  ;;  %v2404_v43 = vor.u32 %v2830_v40, %v2401_v41  ;;  %v2821_v45 = vld [vmem:[%s3810_s3 + $0x144] sm:$0xf]  ;;  %v2826_v50 = vld [vmem:[%s3810_s3 + $0x164] sm:$0xf0] }
  0x2f   :  { %712 = vmatpush.bf16.msrb.mxu2 %v2761_v55  ;;  %v2825_v44 = vld [vmem:[%s3810_s3 + $0x15c] sm:$0xf0]  ;;  %v2361_v46 = vld [vmem:[%s3810_s3 + $0x160] sm:$0xf0]  ;;  %v2369_v53 = vld [vmem:[%s3810_s3 + $0x168] sm:$0xf0] }
  0x30   :  { %725 = vmatpush.bf16.msrb.mxu3 %v2769_v56  ;;  %v2327_v55 = vld [vmem:[%s3810_s3 + $0x100] sm:$0xf]  ;;  %v2797_v19 = vld [vmem:[%s3810_s3 + $0x84] sm:$0xf]  ;;  %v2271_v23 = vld [vmem:[%s3810_s3 + $0x88] sm:$0xf] }
  0x31   :  { %699 = vmatpush.bf16.msrb.mxu1 %v2753_v57  ;;  %v2817_v56 = vld [vmem:[%s3810_s3 + $0x11c] sm:$0xf0]  ;;  %v2813_v57 = vld [vmem:[%s3810_s3 + $0x104] sm:$0xf]  ;;  %v2802_v24 = vld [vmem:[%s3810_s3 + $0xa4] sm:$0xf0] }
  0x32   :  { %687 = vmatpush.bf16.msrb.mxu0 %v2744_v58  ;;  %v2328_v58 = vor.u32 %v2817_v56, %v2327_v55  ;;  %v2273_v28 = vld [vmem:[%s3810_s3 + $0xa8] sm:$0xf0]  ;;  %v2231_v29 = vld [vmem:[%s3810_s3 + $0x40] sm:$0xf]  ;;  %v2233_v35 = vld [vmem:[%s3810_s3 + $0x60] sm:$0xf0] }
  0x33   :  { %713 = vmatpush.bf16.msrb.mxu2 %v2760_v59  ;;  %v2329_v59 = vld [vmem:[%s3810_s3 + $0x120] sm:$0xf0]  ;;  %v2793_v33 = vld [vmem:[%s3810_s3 + $0x5c] sm:$0xf0]  ;;  %v2790_v40 = vld [vmem:[%s3810_s3 + $0x4c] sm:$0xf] }
  0x34   :  { %726 = vmatpush.bf16.msrb.mxu3 %v2768_v60  ;;  %v2335_v60 = vld [vmem:[%s3810_s3 + $0x108] sm:$0xf]  ;;  %v2232_v36 = vor.u32 %v2793_v33, %v2231_v29  ;;  %v2439_v56 = vld [vmem:[%s3810_s3 + $0x1d0] sm:$0xf]  ;;  %v2910_v29 = vld [vmem:[%s3809_s2] ss:$0 sm:$0xff] }
  0x35   :  { %700 = vmatpush.bf16.msrb.mxu1 %v2752_v61  ;;  %v2818_v61 = vld [vmem:[%s3810_s3 + $0x124] sm:$0xf0]  ;;  %v2824_v33 = vld [vmem:[%s3810_s3 + $0x15c] sm:$0xf] }
  0x36   :  { %688 = vmatpush.bf16.msrb.mxu0 %v2743_v62  ;;  %v2332_v62 = vor.u32 %v2813_v57, %v2329_v59  ;;  %v2843_v57 = vld [vmem:[%s3810_s3 + $0x1ec] sm:$0xf0] }
  0x37   :  { %714 = vmatpush.bf16.msrb.mxu2 %v2759_v63  ;;  %v2336_v63 = vor.u32 %v2818_v61, %v2335_v60  ;;  %v2440_v61 = vor.u32 %v2843_v57, %v2439_v56  ;;  %v2319_v56 = vld [vmem:[%s3810_s3 + $0xd8] sm:$0xf] }
  0x38   :  { %727 = vmatpush.bf16.msrb.mxu3 %v2767_v0  ;;  %v2814_v0 = vld [vmem:[%s3810_s3 + $0x10c] sm:$0xf]  ;;  %v2812_v57 = vld [vmem:[%s3810_s3 + $0xf4] sm:$0xf0] }
  0x39   :  { %701 = vmatpush.bf16.msrb.mxu1 %v2751_v1  ;;  %v2337_v1 = vld [vmem:[%s3810_s3 + $0x128] sm:$0xf0] }
  0x3a   :  { %689 = vmatpush.bf16.msrb.mxu0 %v2742_v2  ;;  %v2340_v2 = vor.u32 %v2814_v0, %v2337_v1  ;;  %v2844_v0 = vld [vmem:[%s3810_s3 + $0x1f4] sm:$0xf0] }
  0x3b   :  { %715 = vmatpush.bf16.msrb.mxu2 %v2758_v3 }
  0x3c   :  { %728 = vmatpush.bf16.msrb.mxu3 %v2766_v4  ;;  %v2295_v4 = vld [vmem:[%s3810_s3 + $0xc0] sm:$0xf] }
  0x3d   :  { %702 = vmatpush.bf16.msrb.mxu1 %v2750_v5  ;;  %v2809_v5 = vld [vmem:[%s3810_s3 + $0xdc] sm:$0xf0] }
  0x3e   :  { %690 = vmatpush.bf16.msrb.mxu0 %v2741_v6  ;;  %v2805_v6 = vld [vmem:[%s3810_s3 + $0xc4] sm:$0xf] }
  0x3f   :  { %716 = vmatpush.bf16.msrb.mxu2 %v2757_v7  ;;  %v2296_v7 = vor.u32 %v2809_v5, %v2295_v4  ;;  %v2840_v4 = vld [vmem:[%s3810_s3 + $0x1dc] sm:$0xf] }
  0x40   :  { %729 = vmatpush.bf16.msrb.mxu3 %v2765_v9  ;;  %v2303_v9 = vld [vmem:[%s3810_s3 + $0xc8] sm:$0xf]  ;;  %v2449_v5 = vld [vmem:[%s3810_s3 + $0x1f8] sm:$0xf0] }
  0x41   :  { %703 = vmatpush.bf16.msrb.mxu1 %v2749_v10  ;;  %691 = vmatmul.bf16.vlgmr.msrb.gmra.mxu0 %v183_v48  ;;  %v2364_v48 = vor.u32 %v2821_v45, %v2361_v46  ;;  %v2810_v10 = vld [vmem:[%s3810_s3 + $0xe4] sm:$0xf0]  ;;  %v2785_v45 = vld [vmem:[%s3810_s3 + $0x1c] sm:$0xf0] }
  0x42   :  { %735 = vmatpush.bf16.msra.mxu0 %v2780_v8  ;;  %717 = vmatmul.bf16.vlgmr.msrb.gmra.mxu2 %v185_v47  ;;  %v2360_v47 = vor.u32 %v2825_v44, %v2359_v42  ;;  %v2297_v8 = vld [vmem:[%s3810_s3 + $0xe0] sm:$0xf0]  ;;  %v2199_v44 = vld [vmem:[%s3810_s3] sm:$0xf] }
  0x43   :  { %730 = vmatmul.bf16.vlgmr.msrb.gmra.mxu3 %v186_v49  ;;  %1165 = vmatpush.bf16.msra.mxu2 %v2428_v26  ;;  %v2367_v49 = vld [vmem:[%s3810_s3 + $0x148] sm:$0xf]  ;;  %v2272_v26 = vor.u32 %v2802_v24, %v2271_v23  ;;  %v2827_v23 = vld [vmem:[%s3810_s3 + $0x16c] sm:$0xf0]  ;;  %v2823_v24 = vld [vmem:[%s3810_s3 + $0x154] sm:$0xf] }
  0x44   :  { %704 = vmatmul.bf16.vlgmr.msrb.gmra.mxu1 %v184_v51  ;;  %1178 = vmatpush.bf16.msra.mxu3 %v2432_v27  ;;  %v2822_v51 = vld [vmem:[%s3810_s3 + $0x14c] sm:$0xf]  ;;  %v2368_v52 = vor.u32 %v2826_v50, %v2367_v49  ;;  %v2207_v49 = vld [vmem:[%s3810_s3 + $0x8] sm:$0xf]  ;;  %v2200_v50 = vor.u32 %v2785_v45, %v2199_v44 }
  0x45   :  { %1152 = vmatpush.bf16.msra.mxu1 %v2424_v22  ;;  %v2372_v54 = vor.u32 %v2822_v51, %v2369_v53  ;;  %v2265_v22 = vld [vmem:[%s3810_s3 + $0xa0] sm:$0xf0]  ;;  %v2798_v27 = vld [vmem:[%s3810_s3 + $0x8c] sm:$0xf]  ;;  %v2786_v51 = vld [vmem:[%s3810_s3 + $0x24] sm:$0xf0] }
  0x46   :  { %736 = vmatpush.bf16.msra.mxu0 %v2779_v11  ;;  %v2268_v25 = vor.u32 %v2797_v19, %v2265_v22  ;;  %v2276_v32 = vor.u32 %v2798_v27, %v2273_v28  ;;  %v2209_v53 = vld [vmem:[%s3810_s3 + $0x28] sm:$0xf0]  ;;  %v2208_v55 = vor.u32 %v2786_v51, %v2207_v49  ;;  %v2375_v22 = vld [vmem:[%s3810_s3 + $0x150] sm:$0xf]  ;;  %v2383_v27 = vld [vmem:[%s3810_s3 + $0x158] sm:$0xf] }
  0x47   :  { %1166 = vmatpush.bf16.msra.mxu2 %v2396_v38  ;;  %v2239_v38 = vld [vmem:[%s3810_s3 + $0x48] sm:$0xf]  ;;  %v2828_v28 = vld [vmem:[%s3810_s3 + $0x174] sm:$0xf0]  ;;  %v2811_v51 = vld [vmem:[%s3810_s3 + $0xec] sm:$0xf0] }
  0x48   :  { %1179 = vmatpush.bf16.msra.mxu3 %v2400_v39  ;;  %v2794_v39 = vld [vmem:[%s3810_s3 + $0x64] sm:$0xf0] }
  0x49   :  { %1153 = vmatpush.bf16.msra.mxu1 %v2392_v34  ;;  %v2789_v34 = vld [vmem:[%s3810_s3 + $0x44] sm:$0xf]  ;;  %v2240_v42 = vor.u32 %v2794_v39, %v2239_v38  ;;  %v2815_v38 = vld [vmem:[%s3810_s3 + $0x114] sm:$0xf] }
  0x4a   :  { %737 = vmatpush.bf16.msra.mxu0 %v2778_v12  ;;  %v2300_v12 = vor.u32 %v2805_v6, %v2297_v8  ;;  %v2236_v37 = vor.u32 %v2789_v34, %v2233_v35  ;;  %v2407_v6 = vld [vmem:[%s3810_s3 + $0x190] sm:$0xf]  ;;  %v2452_v8 = vor.u32 %v2840_v4, %v2449_v5  ;;  %v2385_v34 = vld [vmem:[%s3810_s3 + $0x178] sm:$0xf0] }
  0x4b   :  { %1167 = vmatpush.bf16.msra.mxu2 %v2364_v48  ;;  %v2201_v48 = vld [vmem:[%s3810_s3 + $0x20] sm:$0xf0]  ;;  %v2388_v35 = vor.u32 %v2824_v33, %v2385_v34  ;;  %v2217_v34 = vld [vmem:[%s3810_s3 + $0x30] sm:$0xf0] }
  0x4c   :  { %1180 = vmatpush.bf16.msra.mxu3 %v2368_v52  ;;  %v2782_v52 = vld [vmem:[%s3810_s3 + $0xc] sm:$0xf] }
  0x4d   :  { %1154 = vmatpush.bf16.msra.mxu1 %v2360_v47  ;;  %v2781_v47 = vld [vmem:[%s3810_s3 + $0x4] sm:$0xf]  ;;  %v2212_v60 = vor.u32 %v2782_v52, %v2209_v53  ;;  %v2807_v52 = vld [vmem:[%s3810_s3 + $0xd4] sm:$0xf] }
  0x4e   :  { %738 = vmatpush.bf16.msra.mxu0 %v2777_v13  ;;  %v2304_v13 = vor.u32 %v2810_v10, %v2303_v9  ;;  %v2835_v9 = vld [vmem:[%s3810_s3 + $0x1ac] sm:$0xf0]  ;;  %v2831_v10 = vld [vmem:[%s3810_s3 + $0x194] sm:$0xf] }
  0x4f   :  { %1168 = vmatpush.bf16.msra.mxu2 %v2332_v62  ;;  %v2441_v62 = vld [vmem:[%s3810_s3 + $0x1f0] sm:$0xf0] }
  0x50   :  { %1181 = vmatpush.bf16.msra.mxu3 %v2336_v63  ;;  %v2447_v63 = vld [vmem:[%s3810_s3 + $0x1d8] sm:$0xf] }
  0x51   :  { %1155 = vmatpush.bf16.msra.mxu1 %v2328_v58  ;;  %v2839_v58 = vld [vmem:[%s3810_s3 + $0x1d4] sm:$0xf] }
  0x52   :  { %739 = vmatpush.bf16.msra.mxu0 %v2776_v14  ;;  %v2806_v14 = vld [vmem:[%s3810_s3 + $0xcc] sm:$0xf]  ;;  %v2444_v1 = vor.u32 %v2839_v58, %v2441_v62 }
  0x53   :  { %1169 = vmatpush.bf16.msra.mxu2 %v2300_v12  ;;  %v2409_v12 = vld [vmem:[%s3810_s3 + $0x1b0] sm:$0xf0] }
  0x54   :  { %1182 = vmatpush.bf16.msra.mxu3 %v2304_v13  ;;  %v2415_v13 = vld [vmem:[%s3810_s3 + $0x198] sm:$0xf] }
  0x55   :  { %1156 = vmatpush.bf16.msra.mxu1 %v2296_v7 }
  0x56   :  { %740 = vmatpush.bf16.msra.mxu0 %v2775_v15  ;;  %v2305_v15 = vld [vmem:[%s3810_s3 + $0xe8] sm:$0xf0] }
  0x57   :  { %1170 = vmatpush.bf16.msra.mxu2 %v2268_v25  ;;  %v2376_v25 = vor.u32 %v2827_v23, %v2375_v22  ;;  %v2796_v22 = vld [vmem:[%s3810_s3 + $0x74] sm:$0xf0]  ;;  %v2792_v23 = vld [vmem:[%s3810_s3 + $0x5c] sm:$0xf] }
  0x58   :  { %1183 = vmatpush.bf16.msra.mxu3 %v2272_v26  ;;  %v2377_v26 = vld [vmem:[%s3810_s3 + $0x170] sm:$0xf0] }
  0x5a   :  { %741 = vmatpush.bf16.msra.mxu0 %v2774_v16  ;;  %v2308_v16 = vor.u32 %v2806_v14, %v2305_v15  ;;  %v2836_v14 = vld [vmem:[%s3810_s3 + $0x1b4] sm:$0xf0]  ;;  %v2832_v15 = vld [vmem:[%s3810_s3 + $0x19c] sm:$0xf] }
  0x5b   :  { %1171 = vmatpush.bf16.msra.mxu2 %v2236_v37  ;;  %v2416_v19 = vor.u32 %v2836_v14, %v2415_v13  ;;  %v2819_v37 = vld [vmem:[%s3810_s3 + $0x12c] sm:$0xf0]  ;;  %v2289_v14 = vld [vmem:[%s3810_s3 + $0xb8] sm:$0xf0] }
  0x5c   :  { %1184 = vmatpush.bf16.msra.mxu3 %v2240_v42  ;;  %v2820_v42 = vld [vmem:[%s3810_s3 + $0x134] sm:$0xf0] }
  0x5e   :  { %742 = vmatpush.bf16.msra.mxu0 %v2773_v17  ;;  %v2263_v17 = vld [vmem:[%s3810_s3 + $0x80] sm:$0xf] }
  0x60   :  { %1185 = vmatpush.bf16.msra.mxu3 %v2208_v55  ;;  %v2313_v55 = vld [vmem:[%s3810_s3 + $0xf0] sm:$0xf0] }
  0x61   :  { %743 = vmatmul.bf16.vlgmr.msra.gmra.mxu0 %v189_v18  ;;  %v2801_v18 = vld [vmem:[%s3810_s3 + $0x9c] sm:$0xf0]  ;;  %v2316_v58 = vor.u32 %v2807_v52, %v2313_v55 }
  0x62   :  { %1191 = vmatpush.bf16.msrb.mxu0 %v2436_v30  ;;  %v2264_v21 = vor.u32 %v2801_v18, %v2263_v17  ;;  %v2417_v17 = vld [vmem:[%s3810_s3 + $0x1b8] sm:$0xf0]  ;;  %v2412_v18 = vor.u32 %v2831_v10, %v2409_v12 }
  0x64   :  { %1157 = vmatpush.bf16.msra.mxu1 %v2264_v21  ;;  %v2420_v21 = vor.u32 %v2832_v15, %v2417_v17  ;;  %v2247_v15 = vld [vmem:[%s3810_s3 + $0x50] sm:$0xf] }
  0x66   :  { %1192 = vmatpush.bf16.msrb.mxu0 %v2404_v43  ;;  %v2241_v43 = vld [vmem:[%s3810_s3 + $0x68] sm:$0xf0] }
  0x67   :  { %v2244_v46 = vor.u32 %v2790_v40, %v2241_v43  ;;  %v2345_v40 = vld [vmem:[%s3810_s3 + $0x130] sm:$0xf0] }
  0x68   :  { %1158 = vmatpush.bf16.msra.mxu1 %v2232_v36  ;;  %v2343_v36 = vld [vmem:[%s3810_s3 + $0x110] sm:$0xf]  ;;  %v2348_v45 = vor.u32 %v2815_v38, %v2345_v40 }
  0x69   :  { %v2344_v39 = vor.u32 %v2819_v37, %v2343_v36  ;;  %v2788_v36 = vld [vmem:[%s3810_s3 + $0x34] sm:$0xf0]  ;;  %v2784_v37 = vld [vmem:[%s3810_s3 + $0x1c] sm:$0xf] }
  0x6a   :  { %1193 = vmatpush.bf16.msrb.mxu0 %v2372_v54  ;;  %v2204_v54 = vor.u32 %v2781_v47, %v2201_v48  ;;  %v2816_v47 = vld [vmem:[%s3810_s3 + $0x11c] sm:$0xf] }
  0x6b   :  { %v2353_v48 = vld [vmem:[%s3810_s3 + $0x138] sm:$0xf0] }
  0x6c   :  { %1159 = vmatpush.bf16.msra.mxu1 %v2200_v50  ;;  %1172 = vmatpush.bf16.msra.mxu2 %v2204_v54  ;;  %v2356_v49 = vor.u32 %v2816_v47, %v2353_v48 }
  0x6e   :  { %1194 = vmatpush.bf16.msrb.mxu0 %v2340_v2  ;;  %v2448_v2 = vor.u32 %v2844_v0, %v2447_v63  ;;  %v2803_v0 = vld [vmem:[%s3810_s3 + $0xac] sm:$0xf0] }
  0x70   :  { %1204 = vmatpush.bf16.msrb.mxu1 %v2440_v61  ;;  %1217 = vmatpush.bf16.msrb.mxu2 %v2444_v1  ;;  %v2279_v61 = vld [vmem:[%s3810_s3 + $0x90] sm:$0xf]  ;;  %v2799_v1 = vld [vmem:[%s3810_s3 + $0x94] sm:$0xf] }
  0x71   :  { %1230 = vmatpush.bf16.msrb.mxu3 %v2448_v2  ;;  %v2281_v2 = vld [vmem:[%s3810_s3 + $0xb0] sm:$0xf0]  ;;  %v2280_v4 = vor.u32 %v2803_v0, %v2279_v61  ;;  %v2858_v61 = vld [vmem:[%s3812_s5 + $0x68] sm:$0xff]  ;;  %v2873_v0 = vld [vmem:[%s3812_s5 + $0xe0] sm:$0xff] }
  0x72   :  { %1195 = vmatpush.bf16.msrb.mxu0 %v2308_v16  ;;  %v2408_v16 = vor.u32 %v2835_v9, %v2407_v6  ;;  %v2284_v5 = vor.u32 %v2799_v1, %v2281_v2  ;;  %v2287_v6 = vld [vmem:[%s3810_s3 + $0x98] sm:$0xf]  ;;  %v2857_v1 = vld [vmem:[%s3812_s5 + $0x60] sm:$0xff] }
  0x73   :  { %v2865_v2 = vld [vmem:[%s3812_s5 + $0xa0] sm:$0xff] }
  0x74   :  { %1205 = vmatpush.bf16.msrb.mxu1 %v2408_v16  ;;  %1218 = vmatpush.bf16.msrb.mxu2 %v2412_v18  ;;  %v2795_v16 = vld [vmem:[%s3810_s3 + $0x6c] sm:$0xf0]  ;;  %v2249_v18 = vld [vmem:[%s3810_s3 + $0x70] sm:$0xf0] }
  0x75   :  { %1231 = vmatpush.bf16.msrb.mxu3 %v2416_v19  ;;  %v2255_v19 = vld [vmem:[%s3810_s3 + $0x58] sm:$0xf] }
  0x76   :  { %1196 = vmatpush.bf16.msrb.mxu0 %v2276_v32  ;;  %v2384_v32 = vor.u32 %v2828_v28, %v2383_v27  ;;  %v2256_v27 = vor.u32 %v2796_v22, %v2255_v19  ;;  %v2215_v28 = vld [vmem:[%s3810_s3 + $0x10] sm:$0xf]  ;;  %v2908_v19 = vld [vmem:[%s3812_s5 + $0x1f8] sm:$0xff]  ;;  %v2861_v22 = vld [vmem:[%s3812_s5 + $0x80] sm:$0xff] }
  0x78   :  { %1206 = vmatpush.bf16.msrb.mxu1 %v2376_v25 }
  0x79   :  { %1232 = vmatpush.bf16.msrb.mxu3 %v2384_v32 }
  0x7a   :  { %1197 = vmatpush.bf16.msrb.mxu0 %v2244_v46 }
  0x7c   :  { %1207 = vmatpush.bf16.msrb.mxu1 %v2344_v39 }
  0x7e   :  { %1198 = vmatpush.bf16.msrb.mxu0 %v2212_v60  ;;  %v2321_v60 = vld [vmem:[%s3810_s3 + $0xf8] sm:$0xf0] }
  0x82   :  { %1243 = vmatpush.bf16.msra.mxu0 %v2452_v8  ;;  %v2800_v8 = vld [vmem:[%s3810_s3 + $0x9c] sm:$0xf] }
  0x83   :  { %v2292_v17 = vor.u32 %v2800_v8, %v2289_v14  ;;  %v2847_v8 = vld [vmem:[%s3812_s5 + $0x10] sm:$0xff]  ;;  %v2870_v14 = vld [vmem:[%s3812_s5 + $0xc8] sm:$0xff] }
  0x86   :  { %1244 = vmatpush.bf16.msra.mxu0 %v2420_v21  ;;  %v2248_v21 = vor.u32 %v2795_v16, %v2247_v15  ;;  %v2854_v15 = vld [vmem:[%s3812_s5 + $0x48] sm:$0xff] }
  0x87   :  { %v2862_v16 = vld [vmem:[%s3812_s5 + $0x88] sm:$0xff] }
  0x8a   :  { %1245 = vmatpush.bf16.msra.mxu0 %v2388_v35  ;;  %v2223_v35 = vld [vmem:[%s3810_s3 + $0x18] sm:$0xf] }
  0x8e   :  { %1246 = vmatpush.bf16.msra.mxu0 %v2356_v49 }
  0x9e   :  { %v3297_v3 = vpop.f32.mrf.mxu0 }
  0x9f   :  { %v641_v43 = vadd.f32 %v2910_v29, %v3297_v3  ;;  %v2311_v3 = vld [vmem:[%s3810_s3 + $0xd0] sm:$0xf] }
  0xa0   :  { %v2312_v54 = vor.u32 %v2811_v51, %v2311_v3  ;;  %v2787_v29 = vld [vmem:[%s3810_s3 + $0x2c] sm:$0xf0] }
  0xa1   :  { %v3317_v11 = vpop.f32.mrf.mxu1  ;;  %v2216_v39 = vor.u32 %v2787_v29, %v2215_v28  ;;  %v2906_v28 = vld [vmem:[%s3812_s5 + $0x1e8] sm:$0xff]  ;;  %v2891_v29 = vld [vmem:[%s3812_s5 + $0x170] sm:$0xff] }
  0xa2   :  { %v654_v53 = vadd.f32 %v3317_v11, %v641_v43  ;;  %v2808_v11 = vld [vmem:[%s3810_s3 + $0xdc] sm:$0xf]  ;;  %1208 = vmatpush.bf16.msrb.mxu1 %v2312_v54 }
  0xa3   :  { %v2324_v63 = vor.u32 %v2808_v11, %v2321_v60  ;;  %v2860_v54 = vld [vmem:[%s3812_s5 + $0x78] sm:$0xff]  ;;  %v2850_v11 = vld [vmem:[%s3812_s5 + $0x28] sm:$0xff] }
  0xa4   :  { %v2874_v60 = vld [vmem:[%s3812_s5 + $0xe8] sm:$0xff] }
  0xa5   :  { %v3334_v20 = vpop.f32.mrf.mxu2  ;;  %1247 = vmatpush.bf16.msra.mxu0 %v2324_v63  ;;  %v2849_v63 = vld [vmem:[%s3812_s5 + $0x20] sm:$0xff] }
  0xa6   :  { %v3354_v30 = vpop.f32.mrf.mxu3  ;;  %v642_v31 = vpop.f32.mrf.mxu0  ;;  %v667_v9 = vadd.f32 %v3334_v20, %v654_v53  ;;  %v2791_v20 = vld [vmem:[%s3810_s3 + $0x54] sm:$0xf]  ;;  %1209 = vmatpush.bf16.msrb.mxu1 %v2280_v4  ;;  %v2852_v53 = vld [vmem:[%s3812_s5 + $0x38] sm:$0xff] }
  0xa7   :  { %v2380_v31 = vor.u32 %v2823_v24, %v2377_v26  ;;  %v2257_v24 = vld [vmem:[%s3810_s3 + $0x78] sm:$0xf0]  ;;  %v2252_v26 = vor.u32 %v2791_v20, %v2249_v18  ;;  %v2869_v20 = vld [vmem:[%s3812_s5 + $0xc0] sm:$0xff] }
  0xa8   :  { %v680_v32 = vadd.f32 %v3354_v30, %v667_v9  ;;  %v2260_v33 = vor.u32 %v2792_v23, %v2257_v24  ;;  %v2225_v30 = vld [vmem:[%s3810_s3 + $0x38] sm:$0xf0]  ;;  %v2871_v9 = vld [vmem:[%s3812_s5 + $0xd0] sm:$0xff] }
  0xa9   :  { %v655_v41 = vpop.f32.mrf.mxu1  ;;  %1219 = vmatpush.bf16.msrb.mxu2 %v2380_v31  ;;  %v2783_v31 = vld [vmem:[%s3810_s3 + $0x14] sm:$0xf]  ;;  %1248 = vmatpush.bf16.msra.mxu0 %v2292_v17  ;;  %v2848_v4 = vld [vmem:[%s3812_s5 + $0x18] sm:$0xff]  ;;  %v2845_v17 = vld [vmem:[%s3812_s5] sm:$0xff] }
  0xaa   :  { %v2351_v41 = vld [vmem:[%s3810_s3 + $0x118] sm:$0xf]  ;;  %1210 = vmatpush.bf16.msrb.mxu1 %v2248_v21  ;;  %v2220_v40 = vor.u32 %v2783_v31, %v2217_v34  ;;  %v2853_v21 = vld [vmem:[%s3812_s5 + $0x40] sm:$0xff]  ;;  %v2899_v31 = vld [vmem:[%s3812_s5 + $0x1b0] sm:$0xff] }
  0xab   :  { %v2352_v46 = vor.u32 %v2820_v42, %v2351_v41  ;;  %v2224_v41 = vor.u32 %v2788_v36, %v2223_v35  ;;  %v2884_v18 = vld [vmem:[%s3812_s5 + $0x138] sm:$0xff]  ;;  %v2890_v34 = vld [vmem:[%s3812_s5 + $0x168] sm:$0xff] }
  0xac   :  { %v2892_v23 = vld [vmem:[%s3812_s5 + $0x178] sm:$0xff]  ;;  %v2898_v35 = vld [vmem:[%s3812_s5 + $0x1a8] sm:$0xff] }
  0xad   :  { %v668_v59 = vpop.f32.mrf.mxu2  ;;  %1220 = vmatpush.bf16.msrb.mxu2 %v2348_v45  ;;  %1233 = vmatpush.bf16.msrb.mxu3 %v2352_v46  ;;  %v2228_v45 = vor.u32 %v2784_v37, %v2225_v30  ;;  %v2900_v24 = vld [vmem:[%s3812_s5 + $0x1b8] sm:$0xff]  ;;  %v2889_v30 = vld [vmem:[%s3812_s5 + $0x160] sm:$0xff] }
  0xae   :  { %v681_v7 = vpop.f32.mrf.mxu3  ;;  %v2320_v59 = vor.u32 %v2812_v57, %v2319_v56  ;;  %1249 = vmatpush.bf16.msra.mxu0 %v2260_v33  ;;  %1211 = vmatpush.bf16.msrb.mxu1 %v2216_v39  ;;  %v2851_v56 = vld [vmem:[%s3812_s5 + $0x30] sm:$0xff]  ;;  %v2905_v33 = vld [vmem:[%s3812_s5 + $0x1e0] sm:$0xff]  ;;  %v2880_v36 = vld [vmem:[%s3812_s5 + $0x118] sm:$0xff] }
  0xaf   :  { %v2804_v7 = vld [vmem:[%s3810_s3 + $0xb4] sm:$0xf0]  ;;  %v2875_v57 = vld [vmem:[%s3812_s5 + $0xf0] sm:$0xff] }
  0xb0   :  { %v2288_v13 = vor.u32 %v2804_v7, %v2287_v6  ;;  %v2856_v6 = vld [vmem:[%s3812_s5 + $0x58] sm:$0xff]  ;;  %v2879_v39 = vld [vmem:[%s3812_s5 + $0x110] sm:$0xff] }
  0xb1   :  { %1221 = vmatpush.bf16.msrb.mxu2 %v2316_v58  ;;  %1234 = vmatpush.bf16.msrb.mxu3 %v2320_v59  ;;  %v2859_v58 = vld [vmem:[%s3812_s5 + $0x70] sm:$0xff]  ;;  %v2864_v7 = vld [vmem:[%s3812_s5 + $0x98] sm:$0xff] }
  0xb2   :  { %1250 = vmatpush.bf16.msra.mxu0 %v2228_v45  ;;  %v2867_v59 = vld [vmem:[%s3812_s5 + $0xb0] sm:$0xff]  ;;  %v2904_v37 = vld [vmem:[%s3812_s5 + $0x1d8] sm:$0xff]  ;;  %v2902_v45 = vld [vmem:[%s3812_s5 + $0x1c8] sm:$0xff] }
  0xb5   :  { %1222 = vmatpush.bf16.msrb.mxu2 %v2284_v5  ;;  %1235 = vmatpush.bf16.msrb.mxu3 %v2288_v13  ;;  %v2872_v5 = vld [vmem:[%s3812_s5 + $0xd8] sm:$0xff]  ;;  %v2846_v13 = vld [vmem:[%s3812_s5 + $0x8] sm:$0xff] }
  0xb9   :  { %1223 = vmatpush.bf16.msrb.mxu2 %v2252_v26  ;;  %1236 = vmatpush.bf16.msrb.mxu3 %v2256_v27  ;;  %v2907_v26 = vld [vmem:[%s3812_s5 + $0x1f0] sm:$0xff]  ;;  %v2882_v27 = vld [vmem:[%s3812_s5 + $0x128] sm:$0xff] }
  0xbd   :  { %1224 = vmatpush.bf16.msrb.mxu2 %v2220_v40  ;;  %1237 = vmatpush.bf16.msrb.mxu3 %v2224_v41  ;;  %v2903_v40 = vld [vmem:[%s3812_s5 + $0x1d0] sm:$0xff]  ;;  %v2888_v41 = vld [vmem:[%s3812_s5 + $0x158] sm:$0xff] }
  0xbe   :  { %v3495_v44 = vpop.f32.mrf.mxu0 }
  0xbf   :  { %v693_v42 = vadd.f32 %v3495_v44, %v680_v32  ;;  %v2876_v44 = vld [vmem:[%s3812_s5 + $0xf8] sm:$0xff]  ;;  %v2881_v32 = vld [vmem:[%s3812_s5 + $0x120] sm:$0xff] }
  0xc1   :  { %v3503_v50 = vpop.f32.mrf.mxu1 }
  0xc2   :  { %v706_v46 = vadd.f32 %v3503_v50, %v693_v42  ;;  %v2868_v50 = vld [vmem:[%s3812_s5 + $0xb8] sm:$0xff] }
  0xc3   :  { %v2896_v42 = vld [vmem:[%s3812_s5 + $0x198] sm:$0xff] }
  0xc5   :  { %v718_v62 = vpop.f32.mrf.mxu2 }
  0xc6   :  { %v731_v10 = vpop.f32.mrf.mxu3  ;;  %v694_v12 = vpop.f32.mrf.mxu0  ;;  %v719_v47 = vadd.f32 %v718_v62, %v706_v46  ;;  %v2866_v62 = vld [vmem:[%s3812_s5 + $0xa8] sm:$0xff]  ;;  %v2887_v46 = vld [vmem:[%s3812_s5 + $0x150] sm:$0xff] }
  0xc7   :  { %v2863_v12 = vld [vmem:[%s3812_s5 + $0x90] sm:$0xff] }
  0xc8   :  { %v732_v48 = vadd.f32 %v731_v10, %v719_v47  ;;  %v2855_v10 = vld [vmem:[%s3812_s5 + $0x50] sm:$0xff] }
  0xc9   :  { %v707_v25 = vpop.f32.mrf.mxu1  ;;  %v2895_v47 = vld [vmem:[%s3812_s5 + $0x190] sm:$0xff] }
  0xca   :  { %v2883_v25 = vld [vmem:[%s3812_s5 + $0x130] sm:$0xff] }
  0xcd   :  { %v720_v38 = vpop.f32.mrf.mxu2 }
  0xce   :  { %v733_v43 = vpop.f32.mrf.mxu3  ;;  %v2897_v38 = vld [vmem:[%s3812_s5 + $0x1a0] sm:$0xff] }
  0xcf   :  { %v2878_v43 = vld [vmem:[%s3812_s5 + $0x108] sm:$0xff] }
  0xde   :  { %v744_v49 = vpop.f32.mrf.mxu0 }
  0xdf   :  { %v745_v3 = vadd.f32 %v744_v49, %v732_v48  ;;  %v2877_v48 = vld [vmem:[%s3812_s5 + $0x100] sm:$0xff] }
  0xe0   :  { %v2901_v49 = vld [vmem:[%s3812_s5 + $0x1c0] sm:$0xff] }
  0xe1   :  { %v748_v51 = vmax.f32 %v745_v3, 0.0  ;;  %v2886_v3 = vld [vmem:[%s3812_s5 + $0x148] sm:$0xff] }
  0xe3   :  { %v749_v52 = vpack.c.bf16 %v748_v51, %v748_v51  ;;  %v2894_v51 = vld [vmem:[%s3812_s5 + $0x188] sm:$0xff] }
  0xe5   :  { %1160 = vmatmul.bf16.vlgmr.msra.gmra.mxu1 %v749_v52  ;;  %1173 = vmatmul.bf16.vlgmr.msra.gmra.mxu2 %v749_v52 }
  0xe6   :  { %1186 = vmatmul.bf16.vlgmr.msra.gmra.mxu3 %v749_v52  ;;  %1199 = vmatmul.bf16.vlgmr.msrb.gmra.mxu0 %v749_v52  ;;  %v746_v55 = vpop.f32.mrf.mxu0 }
  0xe7   :  { %1788 = vmatpush.bf16.msra.mxu1 %v2852_v53  ;;  %1827 = vmatpush.bf16.msrb.mxu0 %v2876_v44  ;;  %v2893_v53 = vld [vmem:[%s3812_s5 + $0x180] sm:$0xff] }
  0xe8   :  { %1801 = vmatpush.bf16.msra.mxu2 %v2860_v54  ;;  %1814 = vmatpush.bf16.msra.mxu3 %v2868_v50  ;;  %v814_v44 = vld [vmem:[%s3811_s4] sm:$0xff] }
  0xe9   :  { %v816_v54 = vperm.slane %v814_v44, 0  ;;  %v819_v50 = vperm.slane %v814_v44, 3 }
  0xeb   :  { %1789 = vmatpush.bf16.msra.mxu1 %v2851_v56  ;;  %1828 = vmatpush.bf16.msrb.mxu0 %v2875_v57 }
  0xec   :  { %1802 = vmatpush.bf16.msra.mxu2 %v2859_v58  ;;  %1815 = vmatpush.bf16.msra.mxu3 %v2867_v59 }
  0xef   :  { %1790 = vmatpush.bf16.msra.mxu1 %v2850_v11  ;;  %1829 = vmatpush.bf16.msrb.mxu0 %v2874_v60  ;;  %v817_v11 = vperm.slane %v814_v44, 1 }
  0xf0   :  { %1803 = vmatpush.bf16.msra.mxu2 %v2858_v61  ;;  %1816 = vmatpush.bf16.msra.mxu3 %v2866_v62  ;;  %v818_v61 = vperm.slane %v814_v44, 2 }
  0xf3   :  { %1791 = vmatpush.bf16.msra.mxu1 %v2849_v63  ;;  %1830 = vmatpush.bf16.msrb.mxu0 %v2873_v0 }
  0xf4   :  { %1804 = vmatpush.bf16.msra.mxu2 %v2857_v1  ;;  %1817 = vmatpush.bf16.msra.mxu3 %v2865_v2 }
  0xf5   :  { %1212 = vmatmul.bf16.vlgmr.msrb.gmra.mxu1 %v749_v52  ;;  %1225 = vmatmul.bf16.vlgmr.msrb.gmra.mxu2 %v749_v52 }
  0xf6   :  { %1238 = vmatmul.bf16.vlgmr.msrb.gmra.mxu3 %v749_v52  ;;  %1251 = vmatmul.bf16.vlgmr.msra.gmra.mxu0 %v749_v52  ;;  %v2885_v52 = vld [vmem:[%s3812_s5 + $0x140] sm:$0xff] }
  0xf7   :  { %1792 = vmatpush.bf16.msra.mxu1 %v2848_v4  ;;  %1831 = vmatpush.bf16.msrb.mxu0 %v2872_v5 }
  0xf8   :  { %1805 = vmatpush.bf16.msra.mxu2 %v2856_v6  ;;  %1818 = vmatpush.bf16.msra.mxu3 %v2864_v7 }
  0xfb   :  { %1793 = vmatpush.bf16.msra.mxu1 %v2847_v8  ;;  %1832 = vmatpush.bf16.msrb.mxu0 %v2871_v9 }
  0xfc   :  { %1806 = vmatpush.bf16.msra.mxu2 %v2855_v10  ;;  %1819 = vmatpush.bf16.msra.mxu3 %v2863_v12  ;;  %v820_v12 = vperm.slane %v814_v44, 4 }
  0xff   :  { %1794 = vmatpush.bf16.msra.mxu1 %v2846_v13  ;;  %1833 = vmatpush.bf16.msrb.mxu0 %v2870_v14  ;;  %v823_v14 = vperm.slane %v814_v44, 7 }
 0x100   :  { %1807 = vmatpush.bf16.msra.mxu2 %v2854_v15  ;;  %1820 = vmatpush.bf16.msra.mxu3 %v2862_v16 }
 0x103   :  { %1795 = vmatpush.bf16.msra.mxu1 %v2845_v17  ;;  %1834 = vmatpush.bf16.msrb.mxu0 %v2869_v20 }
 0x104   :  { %1808 = vmatpush.bf16.msra.mxu2 %v2853_v21  ;;  %1821 = vmatpush.bf16.msra.mxu3 %v2861_v22  ;;  %v821_v21 = vperm.slane %v814_v44, 5 }
 0x107   :  { %1840 = vmatpush.bf16.msrb.mxu1 %v2884_v18  ;;  %1879 = vmatpush.bf16.msra.mxu0 %v2908_v19 }
 0x108   :  { %1853 = vmatpush.bf16.msrb.mxu2 %v2892_v23  ;;  %1866 = vmatpush.bf16.msrb.mxu3 %v2900_v24  ;;  %v822_v23 = vperm.slane %v814_v44, 6 }
 0x10b   :  { %1841 = vmatpush.bf16.msrb.mxu1 %v2883_v25  ;;  %1880 = vmatpush.bf16.msra.mxu0 %v2907_v26 }
 0x10c   :  { %1854 = vmatpush.bf16.msrb.mxu2 %v2891_v29  ;;  %1867 = vmatpush.bf16.msrb.mxu3 %v2899_v31 }
 0x10f   :  { %1842 = vmatpush.bf16.msrb.mxu1 %v2882_v27  ;;  %1881 = vmatpush.bf16.msra.mxu0 %v2906_v28 }
 0x110   :  { %1855 = vmatpush.bf16.msrb.mxu2 %v2890_v34  ;;  %1868 = vmatpush.bf16.msrb.mxu3 %v2898_v35 }
 0x113   :  { %1843 = vmatpush.bf16.msrb.mxu1 %v2881_v32  ;;  %1882 = vmatpush.bf16.msra.mxu0 %v2905_v33 }
 0x114   :  { %1856 = vmatpush.bf16.msrb.mxu2 %v2889_v30  ;;  %1869 = vmatpush.bf16.msrb.mxu3 %v2897_v38 }
 0x117   :  { %1844 = vmatpush.bf16.msrb.mxu1 %v2880_v36  ;;  %1883 = vmatpush.bf16.msra.mxu0 %v2904_v37 }
 0x118   :  { %1857 = vmatpush.bf16.msrb.mxu2 %v2888_v41  ;;  %1870 = vmatpush.bf16.msrb.mxu3 %v2896_v42  ;;  %v2911_v41 = vld [vmem:[%s3813_s6] ss:$0 sm:$0xff] }
 0x11b   :  { %1845 = vmatpush.bf16.msrb.mxu1 %v2879_v39  ;;  %1884 = vmatpush.bf16.msra.mxu0 %v2903_v40 }
 0x11c   :  { %1858 = vmatpush.bf16.msrb.mxu2 %v2887_v46  ;;  %1871 = vmatpush.bf16.msrb.mxu3 %v2895_v47 }
 0x11f   :  { %1846 = vmatpush.bf16.msrb.mxu1 %v2878_v43  ;;  %1885 = vmatpush.bf16.msra.mxu0 %v2902_v45 }
 0x120   :  { %1859 = vmatpush.bf16.msrb.mxu2 %v2886_v3  ;;  %1872 = vmatpush.bf16.msrb.mxu3 %v2894_v51 }
 0x123   :  { %1847 = vmatpush.bf16.msrb.mxu1 %v2877_v48  ;;  %1886 = vmatpush.bf16.msra.mxu0 %v2901_v49 }
 0x124   :  { %1860 = vmatpush.bf16.msrb.mxu2 %v2885_v52  ;;  %1873 = vmatpush.bf16.msrb.mxu3 %v2893_v53 }
 0x162   :  { %v1161_v55 = vpop.f32.mrf.mxu1 }
 0x163   :  { %v1162_v56 = vadd.f32 %v1161_v55, %v816_v54  ;;  %v1200_v57 = vpop.f32.mrf.mxu0 }
 0x164   :  { %v1201_v58 = vadd.f32 %v1200_v57, %v819_v50 }
 0x165   :  { %v1256_v59 = vmax.f32 %v1162_v56, 0.0 }
 0x166   :  { %v1259_v60 = vmax.f32 %v1201_v58, 0.0 }
 0x167   :  { %v1264_v62 = vpack.c.bf16 %v1256_v59, %v1256_v59 }
 0x168   :  { %v1267_v63 = vpack.c.bf16 %v1259_v60, %v1259_v60  ;;  %v1174_v0 = vpop.f32.mrf.mxu2 }
 0x169   :  { %v1175_v1 = vadd.f32 %v1174_v0, %v817_v11  ;;  %v1187_v2 = vpop.f32.mrf.mxu3  ;;  %1796 = vmatmul.bf16.vlgmr.msra.gmra.mxu1 %v1264_v62 }
 0x16a   :  { %v1188_v4 = vadd.f32 %v1187_v2, %v818_v61  ;;  %1835 = vmatmul.bf16.vlgmr.msrb.gmra.mxu0 %v1267_v63  ;;  %v1163_v5 = vpop.f32.mrf.mxu1 }
 0x16b   :  { %v1257_v6 = vmax.f32 %v1175_v1, 0.0  ;;  %v1202_v7 = vpop.f32.mrf.mxu0 }
 0x16c   :  { %v1258_v8 = vmax.f32 %v1188_v4, 0.0 }
 0x16d   :  { %v1265_v9 = vpack.c.bf16 %v1257_v6, %v1257_v6 }
 0x16e   :  { %v1266_v10 = vpack.c.bf16 %v1258_v8, %v1258_v8 }
 0x16f   :  { %1809 = vmatmul.bf16.vlgmr.msra.gmra.mxu2 %v1265_v9 }
 0x170   :  { %1822 = vmatmul.bf16.vlgmr.msra.gmra.mxu3 %v1266_v10  ;;  %v1176_v13 = vpop.f32.mrf.mxu2 }
 0x171   :  { %v1189_v15 = vpop.f32.mrf.mxu3 }
 0x172   :  { %v1213_v16 = vpop.f32.mrf.mxu1 }
 0x173   :  { %v1214_v17 = vadd.f32 %v1213_v16, %v820_v12  ;;  %v1252_v20 = vpop.f32.mrf.mxu0 }
 0x174   :  { %v1253_v18 = vadd.f32 %v1252_v20, %v823_v14 }
 0x175   :  { %v1260_v19 = vmax.f32 %v1214_v17, 0.0 }
 0x176   :  { %v1263_v22 = vmax.f32 %v1253_v18, 0.0 }
 0x177   :  { %v1268_v24 = vpack.c.bf16 %v1260_v19, %v1260_v19 }
 0x178   :  { %v1271_v25 = vpack.c.bf16 %v1263_v22, %v1263_v22  ;;  %v1226_v26 = vpop.f32.mrf.mxu2 }
 0x179   :  { %v1227_v27 = vadd.f32 %v1226_v26, %v821_v21  ;;  %v1239_v28 = vpop.f32.mrf.mxu3  ;;  %1848 = vmatmul.bf16.vlgmr.msrb.gmra.mxu1 %v1268_v24 }
 0x17a   :  { %v1240_v29 = vadd.f32 %v1239_v28, %v822_v23  ;;  %1887 = vmatmul.bf16.vlgmr.msra.gmra.mxu0 %v1271_v25  ;;  %v1215_v31 = vpop.f32.mrf.mxu1 }
 0x17b   :  { %v1261_v32 = vmax.f32 %v1227_v27, 0.0  ;;  %v1254_v33 = vpop.f32.mrf.mxu0 }
 0x17c   :  { %v1262_v34 = vmax.f32 %v1240_v29, 0.0 }
 0x17d   :  { %v1269_v35 = vpack.c.bf16 %v1261_v32, %v1261_v32 }
 0x17e   :  { %v1270_v36 = vpack.c.bf16 %v1262_v34, %v1262_v34 }
 0x17f   :  { %1861 = vmatmul.bf16.vlgmr.msrb.gmra.mxu2 %v1269_v35 }
 0x180   :  { %1874 = vmatmul.bf16.vlgmr.msrb.gmra.mxu3 %v1270_v36  ;;  %v1228_v37 = vpop.f32.mrf.mxu2 }
 0x181   :  { %v1241_v30 = vpop.f32.mrf.mxu3 }
 0x1e6   :  { %v1797_v38 = vpop.f32.mrf.mxu1 }
 0x1e7   :  { %v1836_v39 = vpop.f32.mrf.mxu0  ;;  %v1798_v45 = vadd.f32 %v2911_v41, %v1797_v38 }
 0x1ee   :  { %v1799_v40 = vpop.f32.mrf.mxu1 }
 0x1ef   :  { %v1838_v42 = vpop.f32.mrf.mxu0 }
 0x1f2   :  { %v1810_v43 = vpop.f32.mrf.mxu2 }
 0x1f3   :  { %v1823_v46 = vpop.f32.mrf.mxu3  ;;  %v1811_v47 = vadd.f32 %v1810_v43, %v1798_v45 }
 0x1f5   :  { %v1824_v3 = vadd.f32 %v1823_v46, %v1811_v47 }
 0x1f6   :  { %v1849_v48 = vpop.f32.mrf.mxu1 }
 0x1f7   :  { %v1888_v49 = vpop.f32.mrf.mxu0  ;;  %v1837_v53 = vadd.f32 %v1836_v39, %v1824_v3 }
 0x1f9   :  { %v1850_v50 = vadd.f32 %v1849_v48, %v1837_v53 }
 0x1fa   :  { %v1812_v51 = vpop.f32.mrf.mxu2 }
 0x1fb   :  { %v1825_v52 = vpop.f32.mrf.mxu3 }
 0x1fe   :  { %v1851_v44 = vpop.f32.mrf.mxu1 }
 0x1ff   :  { %v1890_v54 = vpop.f32.mrf.mxu0 }
 0x202   :  { %v1862_v55 = vpop.f32.mrf.mxu2 }
 0x203   :  { %v1863_v56 = vadd.f32 %v1862_v55, %v1850_v50  ;;  %v1875_v57 = vpop.f32.mrf.mxu3 }
 0x205   :  { %v1876_v58 = vadd.f32 %v1875_v57, %v1863_v56 }
 0x207   :  { %v1889_v59 = vadd.f32 %v1888_v49, %v1876_v58 }
 0x209   :  { %1892 = vst [vmem:[#allocation2] sm:$0x3] %v1889_v59 }
 0x20a   :  { %v1864_v11 = vpop.f32.mrf.mxu2  ;;  %1903 = dma.vmem_to_hbm [thread:$0]  %s1899_s9, 32, %s1901_s11, [#allocation3]  }
 0x20b   :  { %v1877_v60 = vpop.f32.mrf.mxu3 }
 0x20c   :  { %2936 = dma.done.wait [#allocation3], 32  }
 0x20d   :  { %2937 = vsyncadd [#allocation3], 4294967264 }
 0x20e   :  { %1908 = vsyncpa [#allocation3], 1 }

</bundles_post_ra>
